<compile_context>
chip_gen: v5e
topology: v5e:2x2
jax: 0.10.0
libtpu: 0.0.40
codegen_flags: <defaults>
</compile_context>

<pallas_src>
import functools
import math

import numpy as np
import jax
import jax.numpy as jnp
from jax.experimental import pallas as pl
from jax.experimental.pallas import tpu as pltpu  # noqa: F401  (kept for TPU-specific tuning hooks)


# Large negative instead of -inf: identical softmax result whenever a row has
# at least one unmasked key, and avoids NaN if a row were ever fully masked.
_MASK_VALUE = -1e30


def _vspec(shape):
    """Whole-array-in-VMEM BlockSpec (no grid)."""
    zeros = (0,) * len(shape)

    def index_map():
        return zeros

    return pl.BlockSpec(shape, index_map)


# ----------------------------------------------------------------------------
# In-kernel building blocks (trace-time helpers, run inside Pallas kernels)
# ----------------------------------------------------------------------------

def _layernorm(x, g, b, eps=1e-5):
    mean = jnp.mean(x, axis=-1, keepdims=True)
    cen = x - mean
    var = jnp.mean(cen * cen, axis=-1, keepdims=True)
    return cen * jax.lax.rsqrt(var + eps) * g + b


def _mha_compute(q2, k2, v2, wo, bias, B, Lq, Lk, H, hd, w_ref=None):
    """Multi-head attention on 2-D slabs, fully resident in VMEM.

    q2: [B*Lq, H*hd], k2/v2: [B*Lk, H*hd], wo: [H*hd, D],
    bias: [B, Lq, Lk] additive mask (0 or _MASK_VALUE).
    Per head the output projection uses the matching row-block of Wo and the
    head contributions are summed, which equals concat(heads) @ Wo.
    If w_ref is given ([H, B, Lq, Lk]) the softmax weights are stored per head.
    """
    scale = 1.0 / math.sqrt(float(hd))
    out = None
    for h in range(H):
        sl = slice(h * hd, (h + 1) * hd)
        qh = (q2[:, sl] * scale).reshape(B, Lq, hd)   # fold 1/sqrt(d) into q
        kh = k2[:, sl].reshape(B, Lk, hd)
        vh = v2[:, sl].reshape(B, Lk, hd)
        s = jnp.einsum("bqd,bkd->bqk", qh, kh,
                       preferred_element_type=jnp.float32) + bias
        m = jnp.max(s, axis=-1, keepdims=True)
        e = jnp.exp(s - m)
        denom = jnp.sum(e, axis=-1, keepdims=True)
        w = e * pl.reciprocal(denom, approx=True)     # EUP reciprocal, no divide
        if w_ref is not None:
            w_ref[h] = w
        a = jnp.einsum("bqk,bkd->bqd", w, vh,
                       preferred_element_type=jnp.float32)
        contrib = jnp.dot(a.reshape(B * Lq, hd), wo[sl, :],
                          preferred_element_type=jnp.float32)
        out = contrib if out is None else out + contrib
    return out


# ----------------------------------------------------------------------------
# Fused per-layer Pallas kernels
# ----------------------------------------------------------------------------

def _encoder_layer_kernel(x_ref, bias_ref, wqkv_ref, wo_ref,
                          w1_ref, b1_ref, w2_ref, b2_ref,
                          ln1g_ref, ln1b_ref, ln2g_ref, ln2b_ref,
                          o_ref, *, B, L, H, hd):
    D = H * hd
    x = x_ref[...]                                                    # [B*L, D]
    qkv = jnp.dot(x, wqkv_ref[...], preferred_element_type=jnp.float32)
    attn = _mha_compute(qkv[:, :D], qkv[:, D:2 * D], qkv[:, 2 * D:],
                        wo_ref[...], bias_ref[...], B, L, L, H, hd)
    # dropout1 -> identity (inference)
    out1 = _layernorm(x + attn, ln1g_ref[...], ln1b_ref[...])
    h1 = jnp.maximum(
        jnp.dot(out1, w1_ref[...], preferred_element_type=jnp.float32) + b1_ref[...],
        0.0)
    ffn = jnp.dot(h1, w2_ref[...], preferred_element_type=jnp.float32) + b2_ref[...]
    # dropout2 -> identity
    o_ref[...] = _layernorm(ffn + out1, ln2g_ref[...], ln2b_ref[...])


def encoder_layer(x2, bias, p, B, L, H):
    D = x2.shape[-1]
    hd = D // H
    args = (x2, bias, p["wqkv"], p["wo"],
            p["ffn_w1"], p["ffn_b1"], p["ffn_w2"], p["ffn_b2"],
            p["ln1_g"], p["ln1_b"], p["ln2_g"], p["ln2_b"])
    return pl.pallas_call(
        functools.partial(_encoder_layer_kernel, B=B, L=L, H=H, hd=hd),
        out_shape=jax.ShapeDtypeStruct((B * L, D), jnp.float32),
        in_specs=[_vspec(a.shape) for a in args],
        out_specs=_vspec((B * L, D)),
    )(*args)


def _decoder_layer_kernel(x_ref, enc_ref, bs_ref, bc_ref,
                          wqkv1_ref, wo1_ref, wq2_ref, wkv2_ref, wo2_ref,
                          w1_ref, b1_ref, w2_ref, b2_ref,
                          ln1g_ref, ln1b_ref, ln2g_ref, ln2b_ref,
                          o_ref, sw_ref, cw_ref, *, B, Lq, Lk, H, hd):
    D = H * hd
    x = x_ref[...]                                                    # [B*Lq, D]
    enc = enc_ref[...]                                                # [B*Lk, D]
    # --- masked self-attention ---
    qkv = jnp.dot(x, wqkv1_ref[...], preferred_element_type=jnp.float32)
    sa = _mha_compute(qkv[:, :D], qkv[:, D:2 * D], qkv[:, 2 * D:],
                      wo1_ref[...], bs_ref[...], B, Lq, Lq, H, hd, w_ref=sw_ref)
    out1 = _layernorm(x + sa, ln1g_ref[...], ln1b_ref[...])           # dropout1 -> id
    # --- cross-attention ---
    q2 = jnp.dot(out1, wq2_ref[...], preferred_element_type=jnp.float32)
    kv2 = jnp.dot(enc, wkv2_ref[...], preferred_element_type=jnp.float32)
    ca = _mha_compute(q2, kv2[:, :D], kv2[:, D:],
                      wo2_ref[...], bc_ref[...], B, Lq, Lk, H, hd, w_ref=cw_ref)
    out2 = _layernorm(out1 + ca, ln2g_ref[...], ln2b_ref[...])        # dropout2 -> id
    # --- FFN ---
    h1 = jnp.maximum(
        jnp.dot(out2, w1_ref[...], preferred_element_type=jnp.float32) + b1_ref[...],
        0.0)
    ffn = jnp.dot(h1, w2_ref[...], preferred_element_type=jnp.float32) + b2_ref[...]
    # NOTE: the reference module reuses layernorm2 (not layernorm3) here; reproduce that.
    o_ref[...] = _layernorm(ffn + out2, ln2g_ref[...], ln2b_ref[...])


def decoder_layer(x2, enc2, bias_self, bias_cross, p, B, Lq, Lk, H):
    D = x2.shape[-1]
    hd = D // H
    args = (x2, enc2, bias_self, bias_cross,
            p["wqkv1"], p["wo1"], p["wq2"], p["wkv2"], p["wo2"],
            p["ffn_w1"], p["ffn_b1"], p["ffn_w2"], p["ffn_b2"],
            p["ln1_g"], p["ln1_b"], p["ln2_g"], p["ln2_b"])
    out, sw, cw = pl.pallas_call(
        functools.partial(_decoder_layer_kernel, B=B, Lq=Lq, Lk=Lk, H=H, hd=hd),
        out_shape=(jax.ShapeDtypeStruct((B * Lq, D), jnp.float32),
                   jax.ShapeDtypeStruct((H, B, Lq, Lq), jnp.float32),
                   jax.ShapeDtypeStruct((H, B, Lq, Lk), jnp.float32)),
        in_specs=[_vspec(a.shape) for a in args],
        out_specs=(_vspec((B * Lq, D)),
                   _vspec((H, B, Lq, Lq)),
                   _vspec((H, B, Lq, Lk))),
    )(*args)
    return out, sw, cw


def _final_proj_kernel(x_ref, w_ref, o_ref):
    o_ref[...] = jnp.dot(x_ref[...], w_ref[...], preferred_element_type=jnp.float32)


def final_projection(x2, w):
    M, K = x2.shape
    N = w.shape[1]
    return pl.pallas_call(
        _final_proj_kernel,
        out_shape=jax.ShapeDtypeStruct((M, N), jnp.float32),
        in_specs=[_vspec((M, K)), _vspec((K, N))],
        out_specs=_vspec((M, N)),
    )(x2, w)


# ----------------------------------------------------------------------------
# Model glue (mirrors the PyTorch module structure)
# ----------------------------------------------------------------------------

def _build_attn_bias(B, Lq, Lk, attn_mask=None, key_padding_mask=None):
    """Additive [B, Lq, Lk] bias (0 or _MASK_VALUE); 1 in a mask means 'mask out'."""
    bias = jnp.zeros((B, Lq, Lk), jnp.float32)
    if attn_mask is not None:
        bias = jnp.where(attn_mask.astype(bool)[None, :, :], _MASK_VALUE, bias)
    if key_padding_mask is not None:
        bias = jnp.where(key_padding_mask.astype(bool)[:, None, :], _MASK_VALUE, bias)
    return bias


def encoder_forward(p, X_ids, enc_padding_mask, num_heads):
    D = p["embedding"].shape[1]
    B, L = X_ids.shape
    # TODO(synk): embedding gather kept in plain JAX (no clean tiny-Pallas gather).
    X = p["embedding"][X_ids] * math.sqrt(float(D)) + p["pos_emb"][:, :L, :]
    # dropout_pre_encoder -> identity
    x2 = X.reshape(B * L, D)
    bias = _build_attn_bias(B, L, L, key_padding_mask=enc_padding_mask)
    for layer_p in p["layers"]:
        x2 = encoder_layer(x2, bias, layer_p, B, L, num_heads)
    return x2                                            # [B*L, D], row order (b, l)


def decoder_forward(p, X_ids, enc_x2, Lin, lookahead_mask, key_padding_mask, num_heads):
    D = p["embedding"].shape[1]
    B, Lout = X_ids.shape
    X = p["embedding"][X_ids] * math.sqrt(float(D)) + p["pos_emb"][:, :Lout, :]
    # dropout_pre_decoder -> identity
    x2 = X.reshape(B * Lout, D)
    bias_self = _build_attn_bias(B, Lout, Lout, attn_mask=lookahead_mask)
    bias_cross = _build_attn_bias(B, Lout, Lin, key_padding_mask=key_padding_mask)
    self_ws, cross_ws = [], []
    for layer_p in p["layers"]:
        x2, sw, cw = decoder_layer(x2, enc_x2, bias_self, bias_cross,
                                   layer_p, B, Lout, Lin, num_heads)
        self_ws.append(jnp.transpose(sw, (1, 0, 2, 3)))    # [B, H, Lq, Lq]
        cross_ws.append(jnp.transpose(cw, (1, 0, 2, 3)))   # [B, H, Lq, Lk]
    return x2, self_ws, cross_ws


def transformer_forward(params, input_sentences, output_sentences,
                        enc_padding_mask, attn_mask, dec_padding_mask, num_heads):
    B, Lin = input_sentences.shape
    _, Lout = output_sentences.shape
    enc_x2 = encoder_forward(params["encoder"], input_sentences,
                             enc_padding_mask, num_heads)
    dec_x2, self_ws, cross_ws = decoder_forward(
        params["decoder"], output_sentences, enc_x2, Lin,
        attn_mask, dec_padding_mask, num_heads)
    V = params["final_w"].shape[1]
    logits = final_projection(dec_x2, params["final_w"]).reshape(B, Lout, V)
    # final_relu / final_softmax are defined but unused in the reference forward.
    return logits, self_ws, cross_ws


# ----------------------------------------------------------------------------
# Deterministic parameter construction
# ----------------------------------------------------------------------------

def _dense(key, fan_in, fan_out, scale=0.05):
    return jax.random.normal(key, (fan_in, fan_out), jnp.float32) * scale


def _make_pos_emb(max_len, D):
    pos = np.arange(max_len, dtype=np.float32)[:, None]
    two_j = (np.arange(D) // 2 * 2).astype(np.float32)
    angles = pos / np.power(10000.0, two_j / float(D))
    pe = np.zeros((1, max_len, D), dtype=np.float32)
    pe[:, :, 0::2] = np.sin(angles[:, 0::2])
    pe[:, :, 1::2] = np.cos(angles[:, 1::2])
    return jnp.asarray(pe)


def _init_ffn(keys, D):
    return {"ffn_w1": _dense(keys[0], D, D),
            "ffn_b1": jax.random.normal(keys[1], (1, D), jnp.float32) * 0.01,
            "ffn_w2": _dense(keys[2], D, D),
            "ffn_b2": jax.random.normal(keys[3], (1, D), jnp.float32) * 0.01}


def init_encoder_layer(key, D):
    ks = jax.random.split(key, 6)
    p = {"wqkv": _dense(ks[0], D, 3 * D),        # fused Wq|Wk|Wv
         "wo": _dense(ks[1], D, D)}
    p.update(_init_ffn(ks[2:6], D))
    p.update({"ln1_g": jnp.ones((1, D), jnp.float32), "ln1_b": jnp.zeros((1, D), jnp.float32),
              "ln2_g": jnp.ones((1, D), jnp.float32), "ln2_b": jnp.zeros((1, D), jnp.float32)})
    return p


def init_decoder_layer(key, D):
    ks = jax.random.split(key, 9)
    p = {"wqkv1": _dense(ks[0], D, 3 * D),       # fused self-attn Wq|Wk|Wv
         "wo1": _dense(ks[1], D, D),
         "wq2": _dense(ks[2], D, D),
         "wkv2": _dense(ks[3], D, 2 * D),        # fused cross-attn Wk|Wv
         "wo2": _dense(ks[4], D, D)}
    p.update(_init_ffn(ks[5:9], D))
    p.update({"ln1_g": jnp.ones((1, D), jnp.float32), "ln1_b": jnp.zeros((1, D), jnp.float32),
              "ln2_g": jnp.ones((1, D), jnp.float32), "ln2_b": jnp.zeros((1, D), jnp.float32),
              # layernorm3 exists in the reference __init__ but is never used in forward.
              "ln3_g": jnp.ones((1, D), jnp.float32), "ln3_b": jnp.zeros((1, D), jnp.float32)})
    return p


def init_transformer(key, D, input_vocab, target_vocab, layer_num, max_len):
    k_enc_emb, k_dec_emb, k_enc, k_dec, k_fin = jax.random.split(key, 5)
    enc_layer_keys = jax.random.split(k_enc, layer_num)
    dec_layer_keys = jax.random.split(k_dec, layer_num)
    pos = _make_pos_emb(max_len, D)
    return {
        "encoder": {
            "embedding": jax.random.normal(k_enc_emb, (input_vocab, D), jnp.float32) * 0.1,
            "pos_emb": pos,
            "layers": [init_encoder_layer(k, D) for k in enc_layer_keys],
        },
        "decoder": {
            "embedding": jax.random.normal(k_dec_emb, (target_vocab, D), jnp.float32) * 0.1,
            "pos_emb": pos,
            "layers": [init_decoder_layer(k, D) for k in dec_layer_keys],
        },
        "final_w": _dense(k_fin, D, target_vocab),
    }


# ----------------------------------------------------------------------------
# Main
# ----------------------------------------------------------------------------

if __name__ == "__main__":
    embedding_dim = 32
    num_heads = 4
    layer_num = 2
    input_vocab_dim = 50
    target_vocab_dim = 40
    max_sentence_length = 16
    batch = 2
    in_len = 8
    out_len = 8

    root = jax.random.PRNGKey(0)
    k_params, k_in, k_out = jax.random.split(root, 3)

    params = init_transformer(k_params, embedding_dim, input_vocab_dim,
                              target_vocab_dim, layer_num, max_sentence_length)

    input_sentences = jax.random.randint(k_in, (batch, in_len), 0, input_vocab_dim,
                                         dtype=jnp.int32)
    output_sentences = jax.random.randint(k_out, (batch, out_len), 0, target_vocab_dim,
                                          dtype=jnp.int32)

    # 1 means "mask out" (matches the PyTorch masking convention).
    enc_padding_mask = jnp.zeros((batch, in_len), jnp.float32).at[1, -1].set(1.0)
    dec_padding_mask = enc_padding_mask  # keys of cross-attention are encoder positions
    attn_mask = jnp.triu(jnp.ones((out_len, out_len), jnp.float32), k=1)  # look-ahead

    fwd = jax.jit(functools.partial(transformer_forward, num_heads=num_heads))
    logits, dec_self_attns, dec_cross_attns = fwd(
        params, input_sentences, output_sentences,
        enc_padding_mask, attn_mask, dec_padding_mask)

    jax.block_until_ready(logits)
    for a in dec_self_attns + dec_cross_attns:
        jax.block_until_ready(a)

    assert logits.shape == (batch, out_len, target_vocab_dim)
    assert len(dec_self_attns) == layer_num and len(dec_cross_attns) == layer_num
    assert dec_self_attns[0].shape == (batch, num_heads, out_len, out_len)
    assert dec_cross_attns[0].shape == (batch, num_heads, out_len, in_len)
    assert bool(jnp.all(jnp.isfinite(logits)))
    for a in dec_self_attns + dec_cross_attns:
        assert bool(jnp.all(jnp.isfinite(a)))

    print("KERNEL_OK")
</pallas_src>

<mosaic_0001>
module attributes {stable_mosaic.version = 11 : i64} {
  func.func @_encoder_layer_kernel(%arg0: memref<16x32xf32, #tpu.memory_space<vmem>>, %arg1: memref<2x8x8xf32, #tpu.memory_space<vmem>>, %arg2: memref<32x96xf32, #tpu.memory_space<vmem>>, %arg3: memref<32x32xf32, #tpu.memory_space<vmem>>, %arg4: memref<32x32xf32, #tpu.memory_space<vmem>>, %arg5: memref<1x32xf32, #tpu.memory_space<vmem>>, %arg6: memref<32x32xf32, #tpu.memory_space<vmem>>, %arg7: memref<1x32xf32, #tpu.memory_space<vmem>>, %arg8: memref<1x32xf32, #tpu.memory_space<vmem>>, %arg9: memref<1x32xf32, #tpu.memory_space<vmem>>, %arg10: memref<1x32xf32, #tpu.memory_space<vmem>>, %arg11: memref<1x32xf32, #tpu.memory_space<vmem>>, %arg12: memref<16x32xf32, #tpu.memory_space<vmem>>) attributes {dimension_semantics = [], scalar_prefetch = 0 : i64, scratch_operands = 0 : i64, tpu.core_type = #tpu.core_type<tc>} {
    %c0 = arith.constant 0 : index
    %c0_0 = arith.constant 0 : index
    %0 = vector.load %arg0[%c0, %c0_0] : memref<16x32xf32, #tpu.memory_space<vmem>>, vector<16x32xf32>
    %c0_1 = arith.constant 0 : index
    %c0_2 = arith.constant 0 : index
    %1 = vector.load %arg2[%c0_1, %c0_2] : memref<32x96xf32, #tpu.memory_space<vmem>>, vector<32x96xf32>
    %cst = arith.constant dense<0.000000e+00> : vector<16x96xf32>
    %2 = tpu.matmul %0, %1, %cst {dimension_numbers = #tpu.dot_dimension_numbers<[1], [0], [0], [1], [0, 0, 1, 1], [], []>} : vector<16x32xf32>, vector<32x96xf32>, vector<16x96xf32> -> vector<16x96xf32>
    %3 = vector.extract_strided_slice %2 {offsets = [0, 0], sizes = [16, 32], strides = [1, 1]} : vector<16x96xf32> to vector<16x32xf32>
    %4 = vector.extract_strided_slice %2 {offsets = [0, 32], sizes = [16, 32], strides = [1, 1]} : vector<16x96xf32> to vector<16x32xf32>
    %5 = vector.extract_strided_slice %2 {offsets = [0, 64], sizes = [16, 32], strides = [1, 1]} : vector<16x96xf32> to vector<16x32xf32>
    %c0_3 = arith.constant 0 : index
    %c0_4 = arith.constant 0 : index
    %6 = vector.load %arg3[%c0_3, %c0_4] : memref<32x32xf32, #tpu.memory_space<vmem>>, vector<32x32xf32>
    %c0_5 = arith.constant 0 : index
    %c0_6 = arith.constant 0 : index
    %c0_7 = arith.constant 0 : index
    %7 = vector.load %arg1[%c0_5, %c0_6, %c0_7] : memref<2x8x8xf32, #tpu.memory_space<vmem>>, vector<2x8x8xf32>
    %8 = vector.extract_strided_slice %3 {offsets = [0, 0], sizes = [16, 8], strides = [1, 1]} : vector<16x32xf32> to vector<16x8xf32>
    %cst_8 = arith.constant 0.353553385 : f32
    %9 = vector.broadcast %cst_8 : f32 to vector<16x8xf32>
    %10 = arith.mulf %8, %9 : vector<16x8xf32>
    %11 = vector.shape_cast %10 : vector<16x8xf32> to vector<2x8x8xf32>
    %12 = vector.extract_strided_slice %4 {offsets = [0, 0], sizes = [16, 8], strides = [1, 1]} : vector<16x32xf32> to vector<16x8xf32>
    %13 = vector.shape_cast %12 : vector<16x8xf32> to vector<2x8x8xf32>
    %14 = vector.extract_strided_slice %5 {offsets = [0, 0], sizes = [16, 8], strides = [1, 1]} : vector<16x32xf32> to vector<16x8xf32>
    %15 = vector.shape_cast %14 : vector<16x8xf32> to vector<2x8x8xf32>
    "tpu.trace_start"() <{level = 10 : i32, message = "bqd,bkd->bqk"}> : () -> ()
    %cst_9 = arith.constant dense<0.000000e+00> : vector<2x8x8xf32>
    %16 = tpu.matmul %11, %13, %cst_9 {dimension_numbers = #tpu.dot_dimension_numbers<[2], [2], [1], [1], [0, 0, 0, 1, 1, 1], [0], [0]>} : vector<2x8x8xf32>, vector<2x8x8xf32>, vector<2x8x8xf32> -> vector<2x8x8xf32>
    "tpu.trace_stop"() : () -> ()
    %17 = arith.addf %16, %7 : vector<2x8x8xf32>
    %cst_10 = arith.constant dense<0xFF800000> : vector<2x8xf32>
    %18 = vector.multi_reduction <maximumf>, %17, %cst_10 [2] : vector<2x8x8xf32> to vector<2x8xf32>
    %19 = vector.shape_cast %18 : vector<2x8xf32> to vector<2x8x1xf32>
    %20 = vector.broadcast %19 : vector<2x8x1xf32> to vector<2x8x8xf32>
    %21 = arith.subf %17, %20 : vector<2x8x8xf32>
    %22 = math.exp %21 : vector<2x8x8xf32>
    %cst_11 = arith.constant dense<0.000000e+00> : vector<2x8xf32>
    %23 = vector.multi_reduction <add>, %22, %cst_11 [2] : vector<2x8x8xf32> to vector<2x8xf32>
    %24 = vector.shape_cast %23 : vector<2x8xf32> to vector<2x8x1xf32>
    %25 = tpu.reciprocal %24 {approx = true} : vector<2x8x1xf32> -> vector<2x8x1xf32>
    %26 = vector.broadcast %25 : vector<2x8x1xf32> to vector<2x8x8xf32>
    %27 = arith.mulf %22, %26 : vector<2x8x8xf32>
    "tpu.trace_start"() <{level = 10 : i32, message = "bqk,bkd->bqd"}> : () -> ()
    %cst_12 = arith.constant dense<0.000000e+00> : vector<2x8x8xf32>
    %28 = tpu.matmul %27, %15, %cst_12 {dimension_numbers = #tpu.dot_dimension_numbers<[2], [1], [1], [2], [0, 0, 0, 1, 1, 2], [0], [0]>} : vector<2x8x8xf32>, vector<2x8x8xf32>, vector<2x8x8xf32> -> vector<2x8x8xf32>
    "tpu.trace_stop"() : () -> ()
    %29 = vector.shape_cast %28 : vector<2x8x8xf32> to vector<16x8xf32>
    %30 = vector.extract_strided_slice %6 {offsets = [0, 0], sizes = [8, 32], strides = [1, 1]} : vector<32x32xf32> to vector<8x32xf32>
    %cst_13 = arith.constant dense<0.000000e+00> : vector<16x32xf32>
    %31 = tpu.matmul %29, %30, %cst_13 {dimension_numbers = #tpu.dot_dimension_numbers<[1], [0], [0], [1], [0, 0, 1, 1], [], []>} : vector<16x8xf32>, vector<8x32xf32>, vector<16x32xf32> -> vector<16x32xf32>
    %32 = vector.extract_strided_slice %3 {offsets = [0, 8], sizes = [16, 8], strides = [1, 1]} : vector<16x32xf32> to vector<16x8xf32>
    %cst_14 = arith.constant 0.353553385 : f32
    %33 = vector.broadcast %cst_14 : f32 to vector<16x8xf32>
    %34 = arith.mulf %32, %33 : vector<16x8xf32>
    %35 = vector.shape_cast %34 : vector<16x8xf32> to vector<2x8x8xf32>
    %36 = vector.extract_strided_slice %4 {offsets = [0, 8], sizes = [16, 8], strides = [1, 1]} : vector<16x32xf32> to vector<16x8xf32>
    %37 = vector.shape_cast %36 : vector<16x8xf32> to vector<2x8x8xf32>
    %38 = vector.extract_strided_slice %5 {offsets = [0, 8], sizes = [16, 8], strides = [1, 1]} : vector<16x32xf32> to vector<16x8xf32>
    %39 = vector.shape_cast %38 : vector<16x8xf32> to vector<2x8x8xf32>
    "tpu.trace_start"() <{level = 10 : i32, message = "bqd,bkd->bqk"}> : () -> ()
    %cst_15 = arith.constant dense<0.000000e+00> : vector<2x8x8xf32>
    %40 = tpu.matmul %35, %37, %cst_15 {dimension_numbers = #tpu.dot_dimension_numbers<[2], [2], [1], [1], [0, 0, 0, 1, 1, 1], [0], [0]>} : vector<2x8x8xf32>, vector<2x8x8xf32>, vector<2x8x8xf32> -> vector<2x8x8xf32>
    "tpu.trace_stop"() : () -> ()
    %41 = arith.addf %40, %7 : vector<2x8x8xf32>
    %cst_16 = arith.constant dense<0xFF800000> : vector<2x8xf32>
    %42 = vector.multi_reduction <maximumf>, %41, %cst_16 [2] : vector<2x8x8xf32> to vector<2x8xf32>
    %43 = vector.shape_cast %42 : vector<2x8xf32> to vector<2x8x1xf32>
    %44 = vector.broadcast %43 : vector<2x8x1xf32> to vector<2x8x8xf32>
    %45 = arith.subf %41, %44 : vector<2x8x8xf32>
    %46 = math.exp %45 : vector<2x8x8xf32>
    %cst_17 = arith.constant dense<0.000000e+00> : vector<2x8xf32>
    %47 = vector.multi_reduction <add>, %46, %cst_17 [2] : vector<2x8x8xf32> to vector<2x8xf32>
    %48 = vector.shape_cast %47 : vector<2x8xf32> to vector<2x8x1xf32>
    %49 = tpu.reciprocal %48 {approx = true} : vector<2x8x1xf32> -> vector<2x8x1xf32>
    %50 = vector.broadcast %49 : vector<2x8x1xf32> to vector<2x8x8xf32>
    %51 = arith.mulf %46, %50 : vector<2x8x8xf32>
    "tpu.trace_start"() <{level = 10 : i32, message = "bqk,bkd->bqd"}> : () -> ()
    %cst_18 = arith.constant dense<0.000000e+00> : vector<2x8x8xf32>
    %52 = tpu.matmul %51, %39, %cst_18 {dimension_numbers = #tpu.dot_dimension_numbers<[2], [1], [1], [2], [0, 0, 0, 1, 1, 2], [0], [0]>} : vector<2x8x8xf32>, vector<2x8x8xf32>, vector<2x8x8xf32> -> vector<2x8x8xf32>
    "tpu.trace_stop"() : () -> ()
    %53 = vector.shape_cast %52 : vector<2x8x8xf32> to vector<16x8xf32>
    %54 = vector.extract_strided_slice %6 {offsets = [8, 0], sizes = [8, 32], strides = [1, 1]} : vector<32x32xf32> to vector<8x32xf32>
    %cst_19 = arith.constant dense<0.000000e+00> : vector<16x32xf32>
    %55 = tpu.matmul %53, %54, %cst_19 {dimension_numbers = #tpu.dot_dimension_numbers<[1], [0], [0], [1], [0, 0, 1, 1], [], []>} : vector<16x8xf32>, vector<8x32xf32>, vector<16x32xf32> -> vector<16x32xf32>
    %56 = arith.addf %31, %55 : vector<16x32xf32>
    %57 = vector.extract_strided_slice %3 {offsets = [0, 16], sizes = [16, 8], strides = [1, 1]} : vector<16x32xf32> to vector<16x8xf32>
    %cst_20 = arith.constant 0.353553385 : f32
    %58 = vector.broadcast %cst_20 : f32 to vector<16x8xf32>
    %59 = arith.mulf %57, %58 : vector<16x8xf32>
    %60 = vector.shape_cast %59 : vector<16x8xf32> to vector<2x8x8xf32>
    %61 = vector.extract_strided_slice %4 {offsets = [0, 16], sizes = [16, 8], strides = [1, 1]} : vector<16x32xf32> to vector<16x8xf32>
    %62 = vector.shape_cast %61 : vector<16x8xf32> to vector<2x8x8xf32>
    %63 = vector.extract_strided_slice %5 {offsets = [0, 16], sizes = [16, 8], strides = [1, 1]} : vector<16x32xf32> to vector<16x8xf32>
    %64 = vector.shape_cast %63 : vector<16x8xf32> to vector<2x8x8xf32>
    "tpu.trace_start"() <{level = 10 : i32, message = "bqd,bkd->bqk"}> : () -> ()
    %cst_21 = arith.constant dense<0.000000e+00> : vector<2x8x8xf32>
    %65 = tpu.matmul %60, %62, %cst_21 {dimension_numbers = #tpu.dot_dimension_numbers<[2], [2], [1], [1], [0, 0, 0, 1, 1, 1], [0], [0]>} : vector<2x8x8xf32>, vector<2x8x8xf32>, vector<2x8x8xf32> -> vector<2x8x8xf32>
    "tpu.trace_stop"() : () -> ()
    %66 = arith.addf %65, %7 : vector<2x8x8xf32>
    %cst_22 = arith.constant dense<0xFF800000> : vector<2x8xf32>
    %67 = vector.multi_reduction <maximumf>, %66, %cst_22 [2] : vector<2x8x8xf32> to vector<2x8xf32>
    %68 = vector.shape_cast %67 : vector<2x8xf32> to vector<2x8x1xf32>
    %69 = vector.broadcast %68 : vector<2x8x1xf32> to vector<2x8x8xf32>
    %70 = arith.subf %66, %69 : vector<2x8x8xf32>
    %71 = math.exp %70 : vector<2x8x8xf32>
    %cst_23 = arith.constant dense<0.000000e+00> : vector<2x8xf32>
    %72 = vector.multi_reduction <add>, %71, %cst_23 [2] : vector<2x8x8xf32> to vector<2x8xf32>
    %73 = vector.shape_cast %72 : vector<2x8xf32> to vector<2x8x1xf32>
    %74 = tpu.reciprocal %73 {approx = true} : vector<2x8x1xf32> -> vector<2x8x1xf32>
    %75 = vector.broadcast %74 : vector<2x8x1xf32> to vector<2x8x8xf32>
    %76 = arith.mulf %71, %75 : vector<2x8x8xf32>
    "tpu.trace_start"() <{level = 10 : i32, message = "bqk,bkd->bqd"}> : () -> ()
    %cst_24 = arith.constant dense<0.000000e+00> : vector<2x8x8xf32>
    %77 = tpu.matmul %76, %64, %cst_24 {dimension_numbers = #tpu.dot_dimension_numbers<[2], [1], [1], [2], [0, 0, 0, 1, 1, 2], [0], [0]>} : vector<2x8x8xf32>, vector<2x8x8xf32>, vector<2x8x8xf32> -> vector<2x8x8xf32>
    "tpu.trace_stop"() : () -> ()
    %78 = vector.shape_cast %77 : vector<2x8x8xf32> to vector<16x8xf32>
    %79 = vector.extract_strided_slice %6 {offsets = [16, 0], sizes = [8, 32], strides = [1, 1]} : vector<32x32xf32> to vector<8x32xf32>
    %cst_25 = arith.constant dense<0.000000e+00> : vector<16x32xf32>
    %80 = tpu.matmul %78, %79, %cst_25 {dimension_numbers = #tpu.dot_dimension_numbers<[1], [0], [0], [1], [0, 0, 1, 1], [], []>} : vector<16x8xf32>, vector<8x32xf32>, vector<16x32xf32> -> vector<16x32xf32>
    %81 = arith.addf %56, %80 : vector<16x32xf32>
    %82 = vector.extract_strided_slice %3 {offsets = [0, 24], sizes = [16, 8], strides = [1, 1]} : vector<16x32xf32> to vector<16x8xf32>
    %cst_26 = arith.constant 0.353553385 : f32
    %83 = vector.broadcast %cst_26 : f32 to vector<16x8xf32>
    %84 = arith.mulf %82, %83 : vector<16x8xf32>
    %85 = vector.shape_cast %84 : vector<16x8xf32> to vector<2x8x8xf32>
    %86 = vector.extract_strided_slice %4 {offsets = [0, 24], sizes = [16, 8], strides = [1, 1]} : vector<16x32xf32> to vector<16x8xf32>
    %87 = vector.shape_cast %86 : vector<16x8xf32> to vector<2x8x8xf32>
    %88 = vector.extract_strided_slice %5 {offsets = [0, 24], sizes = [16, 8], strides = [1, 1]} : vector<16x32xf32> to vector<16x8xf32>
    %89 = vector.shape_cast %88 : vector<16x8xf32> to vector<2x8x8xf32>
    "tpu.trace_start"() <{level = 10 : i32, message = "bqd,bkd->bqk"}> : () -> ()
    %cst_27 = arith.constant dense<0.000000e+00> : vector<2x8x8xf32>
    %90 = tpu.matmul %85, %87, %cst_27 {dimension_numbers = #tpu.dot_dimension_numbers<[2], [2], [1], [1], [0, 0, 0, 1, 1, 1], [0], [0]>} : vector<2x8x8xf32>, vector<2x8x8xf32>, vector<2x8x8xf32> -> vector<2x8x8xf32>
    "tpu.trace_stop"() : () -> ()
    %91 = arith.addf %90, %7 : vector<2x8x8xf32>
    %cst_28 = arith.constant dense<0xFF800000> : vector<2x8xf32>
    %92 = vector.multi_reduction <maximumf>, %91, %cst_28 [2] : vector<2x8x8xf32> to vector<2x8xf32>
    %93 = vector.shape_cast %92 : vector<2x8xf32> to vector<2x8x1xf32>
    %94 = vector.broadcast %93 : vector<2x8x1xf32> to vector<2x8x8xf32>
    %95 = arith.subf %91, %94 : vector<2x8x8xf32>
    %96 = math.exp %95 : vector<2x8x8xf32>
    %cst_29 = arith.constant dense<0.000000e+00> : vector<2x8xf32>
    %97 = vector.multi_reduction <add>, %96, %cst_29 [2] : vector<2x8x8xf32> to vector<2x8xf32>
    %98 = vector.shape_cast %97 : vector<2x8xf32> to vector<2x8x1xf32>
    %99 = tpu.reciprocal %98 {approx = true} : vector<2x8x1xf32> -> vector<2x8x1xf32>
    %100 = vector.broadcast %99 : vector<2x8x1xf32> to vector<2x8x8xf32>
    %101 = arith.mulf %96, %100 : vector<2x8x8xf32>
    "tpu.trace_start"() <{level = 10 : i32, message = "bqk,bkd->bqd"}> : () -> ()
    %cst_30 = arith.constant dense<0.000000e+00> : vector<2x8x8xf32>
    %102 = tpu.matmul %101, %89, %cst_30 {dimension_numbers = #tpu.dot_dimension_numbers<[2], [1], [1], [2], [0, 0, 0, 1, 1, 2], [0], [0]>} : vector<2x8x8xf32>, vector<2x8x8xf32>, vector<2x8x8xf32> -> vector<2x8x8xf32>
    "tpu.trace_stop"() : () -> ()
    %103 = vector.shape_cast %102 : vector<2x8x8xf32> to vector<16x8xf32>
    %104 = vector.extract_strided_slice %6 {offsets = [24, 0], sizes = [8, 32], strides = [1, 1]} : vector<32x32xf32> to vector<8x32xf32>
    %cst_31 = arith.constant dense<0.000000e+00> : vector<16x32xf32>
    %105 = tpu.matmul %103, %104, %cst_31 {dimension_numbers = #tpu.dot_dimension_numbers<[1], [0], [0], [1], [0, 0, 1, 1], [], []>} : vector<16x8xf32>, vector<8x32xf32>, vector<16x32xf32> -> vector<16x32xf32>
    %106 = arith.addf %81, %105 : vector<16x32xf32>
    %107 = arith.addf %0, %106 : vector<16x32xf32>
    %c0_32 = arith.constant 0 : index
    %c0_33 = arith.constant 0 : index
    %108 = vector.load %arg8[%c0_32, %c0_33] : memref<1x32xf32, #tpu.memory_space<vmem>>, vector<1x32xf32>
    %c0_34 = arith.constant 0 : index
    %c0_35 = arith.constant 0 : index
    %109 = vector.load %arg9[%c0_34, %c0_35] : memref<1x32xf32, #tpu.memory_space<vmem>>, vector<1x32xf32>
    %cst_36 = arith.constant dense<0.000000e+00> : vector<16xf32>
    %110 = vector.multi_reduction <add>, %107, %cst_36 [1] : vector<16x32xf32> to vector<16xf32>
    %111 = vector.shape_cast %110 : vector<16xf32> to vector<16x1xf32>
    %cst_37 = arith.constant 3.200000e+01 : f32
    %112 = vector.broadcast %cst_37 : f32 to vector<16x1xf32>
    %113 = arith.divf %111, %112 : vector<16x1xf32>
    %114 = vector.broadcast %113 : vector<16x1xf32> to vector<16x32xf32>
    %115 = arith.subf %107, %114 : vector<16x32xf32>
    %116 = arith.mulf %115, %115 : vector<16x32xf32>
    %cst_38 = arith.constant dense<0.000000e+00> : vector<16xf32>
    %117 = vector.multi_reduction <add>, %116, %cst_38 [1] : vector<16x32xf32> to vector<16xf32>
    %118 = vector.shape_cast %117 : vector<16xf32> to vector<16x1xf32>
    %cst_39 = arith.constant 3.200000e+01 : f32
    %119 = vector.broadcast %cst_39 : f32 to vector<16x1xf32>
    %120 = arith.divf %118, %119 : vector<16x1xf32>
    %cst_40 = arith.constant 9.99999974E-6 : f32
    %121 = vector.broadcast %cst_40 : f32 to vector<16x1xf32>
    %122 = arith.addf %120, %121 : vector<16x1xf32>
    %123 = math.rsqrt %122 : vector<16x1xf32>
    %124 = vector.broadcast %123 : vector<16x1xf32> to vector<16x32xf32>
    %125 = arith.mulf %115, %124 : vector<16x32xf32>
    %126 = vector.broadcast %108 : vector<1x32xf32> to vector<16x32xf32>
    %127 = arith.mulf %125, %126 : vector<16x32xf32>
    %128 = vector.broadcast %109 : vector<1x32xf32> to vector<16x32xf32>
    %129 = arith.addf %127, %128 : vector<16x32xf32>
    %c0_41 = arith.constant 0 : index
    %c0_42 = arith.constant 0 : index
    %130 = vector.load %arg4[%c0_41, %c0_42] : memref<32x32xf32, #tpu.memory_space<vmem>>, vector<32x32xf32>
    %cst_43 = arith.constant dense<0.000000e+00> : vector<16x32xf32>
    %131 = tpu.matmul %129, %130, %cst_43 {dimension_numbers = #tpu.dot_dimension_numbers<[1], [0], [0], [1], [0, 0, 1, 1], [], []>} : vector<16x32xf32>, vector<32x32xf32>, vector<16x32xf32> -> vector<16x32xf32>
    %c0_44 = arith.constant 0 : index
    %c0_45 = arith.constant 0 : index
    %132 = vector.load %arg5[%c0_44, %c0_45] : memref<1x32xf32, #tpu.memory_space<vmem>>, vector<1x32xf32>
    %133 = vector.broadcast %132 : vector<1x32xf32> to vector<16x32xf32>
    %134 = arith.addf %131, %133 : vector<16x32xf32>
    %cst_46 = arith.constant 0.000000e+00 : f32
    %135 = vector.broadcast %cst_46 : f32 to vector<16x32xf32>
    %136 = arith.maximumf %134, %135 : vector<16x32xf32>
    %c0_47 = arith.constant 0 : index
    %c0_48 = arith.constant 0 : index
    %137 = vector.load %arg6[%c0_47, %c0_48] : memref<32x32xf32, #tpu.memory_space<vmem>>, vector<32x32xf32>
    %cst_49 = arith.constant dense<0.000000e+00> : vector<16x32xf32>
    %138 = tpu.matmul %136, %137, %cst_49 {dimension_numbers = #tpu.dot_dimension_numbers<[1], [0], [0], [1], [0, 0, 1, 1], [], []>} : vector<16x32xf32>, vector<32x32xf32>, vector<16x32xf32> -> vector<16x32xf32>
    %c0_50 = arith.constant 0 : index
    %c0_51 = arith.constant 0 : index
    %139 = vector.load %arg7[%c0_50, %c0_51] : memref<1x32xf32, #tpu.memory_space<vmem>>, vector<1x32xf32>
    %140 = vector.broadcast %139 : vector<1x32xf32> to vector<16x32xf32>
    %141 = arith.addf %138, %140 : vector<16x32xf32>
    %142 = arith.addf %141, %129 : vector<16x32xf32>
    %c0_52 = arith.constant 0 : index
    %c0_53 = arith.constant 0 : index
    %143 = vector.load %arg10[%c0_52, %c0_53] : memref<1x32xf32, #tpu.memory_space<vmem>>, vector<1x32xf32>
    %c0_54 = arith.constant 0 : index
    %c0_55 = arith.constant 0 : index
    %144 = vector.load %arg11[%c0_54, %c0_55] : memref<1x32xf32, #tpu.memory_space<vmem>>, vector<1x32xf32>
    %cst_56 = arith.constant dense<0.000000e+00> : vector<16xf32>
    %145 = vector.multi_reduction <add>, %142, %cst_56 [1] : vector<16x32xf32> to vector<16xf32>
    %146 = vector.shape_cast %145 : vector<16xf32> to vector<16x1xf32>
    %cst_57 = arith.constant 3.200000e+01 : f32
    %147 = vector.broadcast %cst_57 : f32 to vector<16x1xf32>
    %148 = arith.divf %146, %147 : vector<16x1xf32>
    %149 = vector.broadcast %148 : vector<16x1xf32> to vector<16x32xf32>
    %150 = arith.subf %142, %149 : vector<16x32xf32>
    %151 = arith.mulf %150, %150 : vector<16x32xf32>
    %cst_58 = arith.constant dense<0.000000e+00> : vector<16xf32>
    %152 = vector.multi_reduction <add>, %151, %cst_58 [1] : vector<16x32xf32> to vector<16xf32>
    %153 = vector.shape_cast %152 : vector<16xf32> to vector<16x1xf32>
    %cst_59 = arith.constant 3.200000e+01 : f32
    %154 = vector.broadcast %cst_59 : f32 to vector<16x1xf32>
    %155 = arith.divf %153, %154 : vector<16x1xf32>
    %cst_60 = arith.constant 9.99999974E-6 : f32
    %156 = vector.broadcast %cst_60 : f32 to vector<16x1xf32>
    %157 = arith.addf %155, %156 : vector<16x1xf32>
    %158 = math.rsqrt %157 : vector<16x1xf32>
    %159 = vector.broadcast %158 : vector<16x1xf32> to vector<16x32xf32>
    %160 = arith.mulf %150, %159 : vector<16x32xf32>
    %161 = vector.broadcast %143 : vector<1x32xf32> to vector<16x32xf32>
    %162 = arith.mulf %160, %161 : vector<16x32xf32>
    %163 = vector.broadcast %144 : vector<1x32xf32> to vector<16x32xf32>
    %164 = arith.addf %162, %163 : vector<16x32xf32>
    %c0_61 = arith.constant 0 : index
    %c0_62 = arith.constant 0 : index
    %165 = vector.load %arg12[%c0_61, %c0_62] : memref<16x32xf32, #tpu.memory_space<vmem>>, vector<16x32xf32>
    tpu.vector_store %arg12[%c0_61, %c0_62], %164 {strides = array<i32>} : memref<16x32xf32, #tpu.memory_space<vmem>>, vector<16x32xf32>,
    return
  }
}

module attributes {stable_mosaic.version = 11 : i64} {
  func.func @_decoder_layer_kernel(%arg0: memref<16x32xf32, #tpu.memory_space<vmem>>, %arg1: memref<16x32xf32, #tpu.memory_space<vmem>>, %arg2: memref<2x8x8xf32, #tpu.memory_space<vmem>>, %arg3: memref<2x8x8xf32, #tpu.memory_space<vmem>>, %arg4: memref<32x96xf32, #tpu.memory_space<vmem>>, %arg5: memref<32x32xf32, #tpu.memory_space<vmem>>, %arg6: memref<32x32xf32, #tpu.memory_space<vmem>>, %arg7: memref<32x64xf32, #tpu.memory_space<vmem>>, %arg8: memref<32x32xf32, #tpu.memory_space<vmem>>, %arg9: memref<32x32xf32, #tpu.memory_space<vmem>>, %arg10: memref<1x32xf32, #tpu.memory_space<vmem>>, %arg11: memref<32x32xf32, #tpu.memory_space<vmem>>, %arg12: memref<1x32xf32, #tpu.memory_space<vmem>>, %arg13: memref<1x32xf32, #tpu.memory_space<vmem>>, %arg14: memref<1x32xf32, #tpu.memory_space<vmem>>, %arg15: memref<1x32xf32, #tpu.memory_space<vmem>>, %arg16: memref<1x32xf32, #tpu.memory_space<vmem>>, %arg17: memref<16x32xf32, #tpu.memory_space<vmem>>, %arg18: memref<4x2x8x8xf32, #tpu.memory_space<vmem>>, %arg19: memref<4x2x8x8xf32, #tpu.memory_space<vmem>>) attributes {dimension_semantics = [], scalar_prefetch = 0 : i64, scratch_operands = 0 : i64, tpu.core_type = #tpu.core_type<tc>} {
    %c0 = arith.constant 0 : index
    %c0_0 = arith.constant 0 : index
    %0 = vector.load %arg0[%c0, %c0_0] : memref<16x32xf32, #tpu.memory_space<vmem>>, vector<16x32xf32>
    %c0_1 = arith.constant 0 : index
    %c0_2 = arith.constant 0 : index
    %1 = vector.load %arg1[%c0_1, %c0_2] : memref<16x32xf32, #tpu.memory_space<vmem>>, vector<16x32xf32>
    %c0_3 = arith.constant 0 : index
    %c0_4 = arith.constant 0 : index
    %2 = vector.load %arg4[%c0_3, %c0_4] : memref<32x96xf32, #tpu.memory_space<vmem>>, vector<32x96xf32>
    %cst = arith.constant dense<0.000000e+00> : vector<16x96xf32>
    %3 = tpu.matmul %0, %2, %cst {dimension_numbers = #tpu.dot_dimension_numbers<[1], [0], [0], [1], [0, 0, 1, 1], [], []>} : vector<16x32xf32>, vector<32x96xf32>, vector<16x96xf32> -> vector<16x96xf32>
    %4 = vector.extract_strided_slice %3 {offsets = [0, 0], sizes = [16, 32], strides = [1, 1]} : vector<16x96xf32> to vector<16x32xf32>
    %5 = vector.extract_strided_slice %3 {offsets = [0, 32], sizes = [16, 32], strides = [1, 1]} : vector<16x96xf32> to vector<16x32xf32>
    %6 = vector.extract_strided_slice %3 {offsets = [0, 64], sizes = [16, 32], strides = [1, 1]} : vector<16x96xf32> to vector<16x32xf32>
    %c0_5 = arith.constant 0 : index
    %c0_6 = arith.constant 0 : index
    %7 = vector.load %arg5[%c0_5, %c0_6] : memref<32x32xf32, #tpu.memory_space<vmem>>, vector<32x32xf32>
    %c0_7 = arith.constant 0 : index
    %c0_8 = arith.constant 0 : index
    %c0_9 = arith.constant 0 : index
    %8 = vector.load %arg2[%c0_7, %c0_8, %c0_9] : memref<2x8x8xf32, #tpu.memory_space<vmem>>, vector<2x8x8xf32>
    %9 = vector.extract_strided_slice %4 {offsets = [0, 0], sizes = [16, 8], strides = [1, 1]} : vector<16x32xf32> to vector<16x8xf32>
    %cst_10 = arith.constant 0.353553385 : f32
    %10 = vector.broadcast %cst_10 : f32 to vector<16x8xf32>
    %11 = arith.mulf %9, %10 : vector<16x8xf32>
    %12 = vector.shape_cast %11 : vector<16x8xf32> to vector<2x8x8xf32>
    %13 = vector.extract_strided_slice %5 {offsets = [0, 0], sizes = [16, 8], strides = [1, 1]} : vector<16x32xf32> to vector<16x8xf32>
    %14 = vector.shape_cast %13 : vector<16x8xf32> to vector<2x8x8xf32>
    %15 = vector.extract_strided_slice %6 {offsets = [0, 0], sizes = [16, 8], strides = [1, 1]} : vector<16x32xf32> to vector<16x8xf32>
    %16 = vector.shape_cast %15 : vector<16x8xf32> to vector<2x8x8xf32>
    "tpu.trace_start"() <{level = 10 : i32, message = "bqd,bkd->bqk"}> : () -> ()
    %cst_11 = arith.constant dense<0.000000e+00> : vector<2x8x8xf32>
    %17 = tpu.matmul %12, %14, %cst_11 {dimension_numbers = #tpu.dot_dimension_numbers<[2], [2], [1], [1], [0, 0, 0, 1, 1, 1], [0], [0]>} : vector<2x8x8xf32>, vector<2x8x8xf32>, vector<2x8x8xf32> -> vector<2x8x8xf32>
    "tpu.trace_stop"() : () -> ()
    %18 = arith.addf %17, %8 : vector<2x8x8xf32>
    %cst_12 = arith.constant dense<0xFF800000> : vector<2x8xf32>
    %19 = vector.multi_reduction <maximumf>, %18, %cst_12 [2] : vector<2x8x8xf32> to vector<2x8xf32>
    %20 = vector.shape_cast %19 : vector<2x8xf32> to vector<2x8x1xf32>
    %21 = vector.broadcast %20 : vector<2x8x1xf32> to vector<2x8x8xf32>
    %22 = arith.subf %18, %21 : vector<2x8x8xf32>
    %23 = math.exp %22 : vector<2x8x8xf32>
    %cst_13 = arith.constant dense<0.000000e+00> : vector<2x8xf32>
    %24 = vector.multi_reduction <add>, %23, %cst_13 [2] : vector<2x8x8xf32> to vector<2x8xf32>
    %25 = vector.shape_cast %24 : vector<2x8xf32> to vector<2x8x1xf32>
    %26 = tpu.reciprocal %25 {approx = true} : vector<2x8x1xf32> -> vector<2x8x1xf32>
    %27 = vector.broadcast %26 : vector<2x8x1xf32> to vector<2x8x8xf32>
    %28 = arith.mulf %23, %27 : vector<2x8x8xf32>
    %c0_14 = arith.constant 0 : index
    %c0_15 = arith.constant 0 : index
    %c0_16 = arith.constant 0 : index
    %c0_17 = arith.constant 0 : index
    %29 = vector.load %arg18[%c0_14, %c0_15, %c0_16, %c0_17] : memref<4x2x8x8xf32, #tpu.memory_space<vmem>>, vector<1x2x8x8xf32>
    %30 = vector.shape_cast %29 : vector<1x2x8x8xf32> to vector<2x8x8xf32>
    %31 = vector.shape_cast %28 : vector<2x8x8xf32> to vector<1x2x8x8xf32>
    tpu.vector_store %arg18[%c0_14, %c0_15, %c0_16, %c0_17], %31 {strides = array<i32>} : memref<4x2x8x8xf32, #tpu.memory_space<vmem>>, vector<1x2x8x8xf32>,
    "tpu.trace_start"() <{level = 10 : i32, message = "bqk,bkd->bqd"}> : () -> ()
    %cst_18 = arith.constant dense<0.000000e+00> : vector<2x8x8xf32>
    %32 = tpu.matmul %28, %16, %cst_18 {dimension_numbers = #tpu.dot_dimension_numbers<[2], [1], [1], [2], [0, 0, 0, 1, 1, 2], [0], [0]>} : vector<2x8x8xf32>, vector<2x8x8xf32>, vector<2x8x8xf32> -> vector<2x8x8xf32>
    "tpu.trace_stop"() : () -> ()
    %33 = vector.shape_cast %32 : vector<2x8x8xf32> to vector<16x8xf32>
    %34 = vector.extract_strided_slice %7 {offsets = [0, 0], sizes = [8, 32], strides = [1, 1]} : vector<32x32xf32> to vector<8x32xf32>
    %cst_19 = arith.constant dense<0.000000e+00> : vector<16x32xf32>
    %35 = tpu.matmul %33, %34, %cst_19 {dimension_numbers = #tpu.dot_dimension_numbers<[1], [0], [0], [1], [0, 0, 1, 1], [], []>} : vector<16x8xf32>, vector<8x32xf32>, vector<16x32xf32> -> vector<16x32xf32>
    %36 = vector.extract_strided_slice %4 {offsets = [0, 8], sizes = [16, 8], strides = [1, 1]} : vector<16x32xf32> to vector<16x8xf32>
    %cst_20 = arith.constant 0.353553385 : f32
    %37 = vector.broadcast %cst_20 : f32 to vector<16x8xf32>
    %38 = arith.mulf %36, %37 : vector<16x8xf32>
    %39 = vector.shape_cast %38 : vector<16x8xf32> to vector<2x8x8xf32>
    %40 = vector.extract_strided_slice %5 {offsets = [0, 8], sizes = [16, 8], strides = [1, 1]} : vector<16x32xf32> to vector<16x8xf32>
    %41 = vector.shape_cast %40 : vector<16x8xf32> to vector<2x8x8xf32>
    %42 = vector.extract_strided_slice %6 {offsets = [0, 8], sizes = [16, 8], strides = [1, 1]} : vector<16x32xf32> to vector<16x8xf32>
    %43 = vector.shape_cast %42 : vector<16x8xf32> to vector<2x8x8xf32>
    "tpu.trace_start"() <{level = 10 : i32, message = "bqd,bkd->bqk"}> : () -> ()
    %cst_21 = arith.constant dense<0.000000e+00> : vector<2x8x8xf32>
    %44 = tpu.matmul %39, %41, %cst_21 {dimension_numbers = #tpu.dot_dimension_numbers<[2], [2], [1], [1], [0, 0, 0, 1, 1, 1], [0], [0]>} : vector<2x8x8xf32>, vector<2x8x8xf32>, vector<2x8x8xf32> -> vector<2x8x8xf32>
    "tpu.trace_stop"() : () -> ()
    %45 = arith.addf %44, %8 : vector<2x8x8xf32>
    %cst_22 = arith.constant dense<0xFF800000> : vector<2x8xf32>
    %46 = vector.multi_reduction <maximumf>, %45, %cst_22 [2] : vector<2x8x8xf32> to vector<2x8xf32>
    %47 = vector.shape_cast %46 : vector<2x8xf32> to vector<2x8x1xf32>
    %48 = vector.broadcast %47 : vector<2x8x1xf32> to vector<2x8x8xf32>
    %49 = arith.subf %45, %48 : vector<2x8x8xf32>
    %50 = math.exp %49 : vector<2x8x8xf32>
    %cst_23 = arith.constant dense<0.000000e+00> : vector<2x8xf32>
    %51 = vector.multi_reduction <add>, %50, %cst_23 [2] : vector<2x8x8xf32> to vector<2x8xf32>
    %52 = vector.shape_cast %51 : vector<2x8xf32> to vector<2x8x1xf32>
    %53 = tpu.reciprocal %52 {approx = true} : vector<2x8x1xf32> -> vector<2x8x1xf32>
    %54 = vector.broadcast %53 : vector<2x8x1xf32> to vector<2x8x8xf32>
    %55 = arith.mulf %50, %54 : vector<2x8x8xf32>
    %c1 = arith.constant 1 : index
    %c0_24 = arith.constant 0 : index
    %c0_25 = arith.constant 0 : index
    %c0_26 = arith.constant 0 : index
    %56 = vector.load %arg18[%c1, %c0_24, %c0_25, %c0_26] : memref<4x2x8x8xf32, #tpu.memory_space<vmem>>, vector<1x2x8x8xf32>
    %57 = vector.shape_cast %56 : vector<1x2x8x8xf32> to vector<2x8x8xf32>
    %58 = vector.shape_cast %55 : vector<2x8x8xf32> to vector<1x2x8x8xf32>
    tpu.vector_store %arg18[%c1, %c0_24, %c0_25, %c0_26], %58 {strides = array<i32>} : memref<4x2x8x8xf32, #tpu.memory_space<vmem>>, vector<1x2x8x8xf32>,
    "tpu.trace_start"() <{level = 10 : i32, message = "bqk,bkd->bqd"}> : () -> ()
    %cst_27 = arith.constant dense<0.000000e+00> : vector<2x8x8xf32>
    %59 = tpu.matmul %55, %43, %cst_27 {dimension_numbers = #tpu.dot_dimension_numbers<[2], [1], [1], [2], [0, 0, 0, 1, 1, 2], [0], [0]>} : vector<2x8x8xf32>, vector<2x8x8xf32>, vector<2x8x8xf32> -> vector<2x8x8xf32>
    "tpu.trace_stop"() : () -> ()
    %60 = vector.shape_cast %59 : vector<2x8x8xf32> to vector<16x8xf32>
    %61 = vector.extract_strided_slice %7 {offsets = [8, 0], sizes = [8, 32], strides = [1, 1]} : vector<32x32xf32> to vector<8x32xf32>
    %cst_28 = arith.constant dense<0.000000e+00> : vector<16x32xf32>
    %62 = tpu.matmul %60, %61, %cst_28 {dimension_numbers = #tpu.dot_dimension_numbers<[1], [0], [0], [1], [0, 0, 1, 1], [], []>} : vector<16x8xf32>, vector<8x32xf32>, vector<16x32xf32> -> vector<16x32xf32>
    %63 = arith.addf %35, %62 : vector<16x32xf32>
    %64 = vector.extract_strided_slice %4 {offsets = [0, 16], sizes = [16, 8], strides = [1, 1]} : vector<16x32xf32> to vector<16x8xf32>
    %cst_29 = arith.constant 0.353553385 : f32
    %65 = vector.broadcast %cst_29 : f32 to vector<16x8xf32>
    %66 = arith.mulf %64, %65 : vector<16x8xf32>
    %67 = vector.shape_cast %66 : vector<16x8xf32> to vector<2x8x8xf32>
    %68 = vector.extract_strided_slice %5 {offsets = [0, 16], sizes = [16, 8], strides = [1, 1]} : vector<16x32xf32> to vector<16x8xf32>
    %69 = vector.shape_cast %68 : vector<16x8xf32> to vector<2x8x8xf32>
    %70 = vector.extract_strided_slice %6 {offsets = [0, 16], sizes = [16, 8], strides = [1, 1]} : vector<16x32xf32> to vector<16x8xf32>
    %71 = vector.shape_cast %70 : vector<16x8xf32> to vector<2x8x8xf32>
    "tpu.trace_start"() <{level = 10 : i32, message = "bqd,bkd->bqk"}> : () -> ()
    %cst_30 = arith.constant dense<0.000000e+00> : vector<2x8x8xf32>
    %72 = tpu.matmul %67, %69, %cst_30 {dimension_numbers = #tpu.dot_dimension_numbers<[2], [2], [1], [1], [0, 0, 0, 1, 1, 1], [0], [0]>} : vector<2x8x8xf32>, vector<2x8x8xf32>, vector<2x8x8xf32> -> vector<2x8x8xf32>
    "tpu.trace_stop"() : () -> ()
    %73 = arith.addf %72, %8 : vector<2x8x8xf32>
    %cst_31 = arith.constant dense<0xFF800000> : vector<2x8xf32>
    %74 = vector.multi_reduction <maximumf>, %73, %cst_31 [2] : vector<2x8x8xf32> to vector<2x8xf32>
    %75 = vector.shape_cast %74 : vector<2x8xf32> to vector<2x8x1xf32>
    %76 = vector.broadcast %75 : vector<2x8x1xf32> to vector<2x8x8xf32>
    %77 = arith.subf %73, %76 : vector<2x8x8xf32>
    %78 = math.exp %77 : vector<2x8x8xf32>
    %cst_32 = arith.constant dense<0.000000e+00> : vector<2x8xf32>
    %79 = vector.multi_reduction <add>, %78, %cst_32 [2] : vector<2x8x8xf32> to vector<2x8xf32>
    %80 = vector.shape_cast %79 : vector<2x8xf32> to vector<2x8x1xf32>
    %81 = tpu.reciprocal %80 {approx = true} : vector<2x8x1xf32> -> vector<2x8x1xf32>
    %82 = vector.broadcast %81 : vector<2x8x1xf32> to vector<2x8x8xf32>
    %83 = arith.mulf %78, %82 : vector<2x8x8xf32>
    %c2 = arith.constant 2 : index
    %c0_33 = arith.constant 0 : index
    %c0_34 = arith.constant 0 : index
    %c0_35 = arith.constant 0 : index
    %84 = vector.load %arg18[%c2, %c0_33, %c0_34, %c0_35] : memref<4x2x8x8xf32, #tpu.memory_space<vmem>>, vector<1x2x8x8xf32>
    %85 = vector.shape_cast %84 : vector<1x2x8x8xf32> to vector<2x8x8xf32>
    %86 = vector.shape_cast %83 : vector<2x8x8xf32> to vector<1x2x8x8xf32>
    tpu.vector_store %arg18[%c2, %c0_33, %c0_34, %c0_35], %86 {strides = array<i32>} : memref<4x2x8x8xf32, #tpu.memory_space<vmem>>, vector<1x2x8x8xf32>,
    "tpu.trace_start"() <{level = 10 : i32, message = "bqk,bkd->bqd"}> : () -> ()
    %cst_36 = arith.constant dense<0.000000e+00> : vector<2x8x8xf32>
    %87 = tpu.matmul %83, %71, %cst_36 {dimension_numbers = #tpu.dot_dimension_numbers<[2], [1], [1], [2], [0, 0, 0, 1, 1, 2], [0], [0]>} : vector<2x8x8xf32>, vector<2x8x8xf32>, vector<2x8x8xf32> -> vector<2x8x8xf32>
    "tpu.trace_stop"() : () -> ()
    %88 = vector.shape_cast %87 : vector<2x8x8xf32> to vector<16x8xf32>
    %89 = vector.extract_strided_slice %7 {offsets = [16, 0], sizes = [8, 32], strides = [1, 1]} : vector<32x32xf32> to vector<8x32xf32>
    %cst_37 = arith.constant dense<0.000000e+00> : vector<16x32xf32>
    %90 = tpu.matmul %88, %89, %cst_37 {dimension_numbers = #tpu.dot_dimension_numbers<[1], [0], [0], [1], [0, 0, 1, 1], [], []>} : vector<16x8xf32>, vector<8x32xf32>, vector<16x32xf32> -> vector<16x32xf32>
    %91 = arith.addf %63, %90 : vector<16x32xf32>
    %92 = vector.extract_strided_slice %4 {offsets = [0, 24], sizes = [16, 8], strides = [1, 1]} : vector<16x32xf32> to vector<16x8xf32>
    %cst_38 = arith.constant 0.353553385 : f32
    %93 = vector.broadcast %cst_38 : f32 to vector<16x8xf32>
    %94 = arith.mulf %92, %93 : vector<16x8xf32>
    %95 = vector.shape_cast %94 : vector<16x8xf32> to vector<2x8x8xf32>
    %96 = vector.extract_strided_slice %5 {offsets = [0, 24], sizes = [16, 8], strides = [1, 1]} : vector<16x32xf32> to vector<16x8xf32>
    %97 = vector.shape_cast %96 : vector<16x8xf32> to vector<2x8x8xf32>
    %98 = vector.extract_strided_slice %6 {offsets = [0, 24], sizes = [16, 8], strides = [1, 1]} : vector<16x32xf32> to vector<16x8xf32>
    %99 = vector.shape_cast %98 : vector<16x8xf32> to vector<2x8x8xf32>
    "tpu.trace_start"() <{level = 10 : i32, message = "bqd,bkd->bqk"}> : () -> ()
    %cst_39 = arith.constant dense<0.000000e+00> : vector<2x8x8xf32>
    %100 = tpu.matmul %95, %97, %cst_39 {dimension_numbers = #tpu.dot_dimension_numbers<[2], [2], [1], [1], [0, 0, 0, 1, 1, 1], [0], [0]>} : vector<2x8x8xf32>, vector<2x8x8xf32>, vector<2x8x8xf32> -> vector<2x8x8xf32>
    "tpu.trace_stop"() : () -> ()
    %101 = arith.addf %100, %8 : vector<2x8x8xf32>
    %cst_40 = arith.constant dense<0xFF800000> : vector<2x8xf32>
    %102 = vector.multi_reduction <maximumf>, %101, %cst_40 [2] : vector<2x8x8xf32> to vector<2x8xf32>
    %103 = vector.shape_cast %102 : vector<2x8xf32> to vector<2x8x1xf32>
    %104 = vector.broadcast %103 : vector<2x8x1xf32> to vector<2x8x8xf32>
    %105 = arith.subf %101, %104 : vector<2x8x8xf32>
    %106 = math.exp %105 : vector<2x8x8xf32>
    %cst_41 = arith.constant dense<0.000000e+00> : vector<2x8xf32>
    %107 = vector.multi_reduction <add>, %106, %cst_41 [2] : vector<2x8x8xf32> to vector<2x8xf32>
    %108 = vector.shape_cast %107 : vector<2x8xf32> to vector<2x8x1xf32>
    %109 = tpu.reciprocal %108 {approx = true} : vector<2x8x1xf32> -> vector<2x8x1xf32>
    %110 = vector.broadcast %109 : vector<2x8x1xf32> to vector<2x8x8xf32>
    %111 = arith.mulf %106, %110 : vector<2x8x8xf32>
    %c3 = arith.constant 3 : index
    %c0_42 = arith.constant 0 : index
    %c0_43 = arith.constant 0 : index
    %c0_44 = arith.constant 0 : index
    %112 = vector.load %arg18[%c3, %c0_42, %c0_43, %c0_44] : memref<4x2x8x8xf32, #tpu.memory_space<vmem>>, vector<1x2x8x8xf32>
    %113 = vector.shape_cast %112 : vector<1x2x8x8xf32> to vector<2x8x8xf32>
    %114 = vector.shape_cast %111 : vector<2x8x8xf32> to vector<1x2x8x8xf32>
    tpu.vector_store %arg18[%c3, %c0_42, %c0_43, %c0_44], %114 {strides = array<i32>} : memref<4x2x8x8xf32, #tpu.memory_space<vmem>>, vector<1x2x8x8xf32>,
    "tpu.trace_start"() <{level = 10 : i32, message = "bqk,bkd->bqd"}> : () -> ()
    %cst_45 = arith.constant dense<0.000000e+00> : vector<2x8x8xf32>
    %115 = tpu.matmul %111, %99, %cst_45 {dimension_numbers = #tpu.dot_dimension_numbers<[2], [1], [1], [2], [0, 0, 0, 1, 1, 2], [0], [0]>} : vector<2x8x8xf32>, vector<2x8x8xf32>, vector<2x8x8xf32> -> vector<2x8x8xf32>
    "tpu.trace_stop"() : () -> ()
    %116 = vector.shape_cast %115 : vector<2x8x8xf32> to vector<16x8xf32>
    %117 = vector.extract_strided_slice %7 {offsets = [24, 0], sizes = [8, 32], strides = [1, 1]} : vector<32x32xf32> to vector<8x32xf32>
    %cst_46 = arith.constant dense<0.000000e+00> : vector<16x32xf32>
    %118 = tpu.matmul %116, %117, %cst_46 {dimension_numbers = #tpu.dot_dimension_numbers<[1], [0], [0], [1], [0, 0, 1, 1], [], []>} : vector<16x8xf32>, vector<8x32xf32>, vector<16x32xf32> -> vector<16x32xf32>
    %119 = arith.addf %91, %118 : vector<16x32xf32>
    %120 = arith.addf %0, %119 : vector<16x32xf32>
    %c0_47 = arith.constant 0 : index
    %c0_48 = arith.constant 0 : index
    %121 = vector.load %arg13[%c0_47, %c0_48] : memref<1x32xf32, #tpu.memory_space<vmem>>, vector<1x32xf32>
    %c0_49 = arith.constant 0 : index
    %c0_50 = arith.constant 0 : index
    %122 = vector.load %arg14[%c0_49, %c0_50] : memref<1x32xf32, #tpu.memory_space<vmem>>, vector<1x32xf32>
    %cst_51 = arith.constant dense<0.000000e+00> : vector<16xf32>
    %123 = vector.multi_reduction <add>, %120, %cst_51 [1] : vector<16x32xf32> to vector<16xf32>
    %124 = vector.shape_cast %123 : vector<16xf32> to vector<16x1xf32>
    %cst_52 = arith.constant 3.200000e+01 : f32
    %125 = vector.broadcast %cst_52 : f32 to vector<16x1xf32>
    %126 = arith.divf %124, %125 : vector<16x1xf32>
    %127 = vector.broadcast %126 : vector<16x1xf32> to vector<16x32xf32>
    %128 = arith.subf %120, %127 : vector<16x32xf32>
    %129 = arith.mulf %128, %128 : vector<16x32xf32>
    %cst_53 = arith.constant dense<0.000000e+00> : vector<16xf32>
    %130 = vector.multi_reduction <add>, %129, %cst_53 [1] : vector<16x32xf32> to vector<16xf32>
    %131 = vector.shape_cast %130 : vector<16xf32> to vector<16x1xf32>
    %cst_54 = arith.constant 3.200000e+01 : f32
    %132 = vector.broadcast %cst_54 : f32 to vector<16x1xf32>
    %133 = arith.divf %131, %132 : vector<16x1xf32>
    %cst_55 = arith.constant 9.99999974E-6 : f32
    %134 = vector.broadcast %cst_55 : f32 to vector<16x1xf32>
    %135 = arith.addf %133, %134 : vector<16x1xf32>
    %136 = math.rsqrt %135 : vector<16x1xf32>
    %137 = vector.broadcast %136 : vector<16x1xf32> to vector<16x32xf32>
    %138 = arith.mulf %128, %137 : vector<16x32xf32>
    %139 = vector.broadcast %121 : vector<1x32xf32> to vector<16x32xf32>
    %140 = arith.mulf %138, %139 : vector<16x32xf32>
    %141 = vector.broadcast %122 : vector<1x32xf32> to vector<16x32xf32>
    %142 = arith.addf %140, %141 : vector<16x32xf32>
    %c0_56 = arith.constant 0 : index
    %c0_57 = arith.constant 0 : index
    %143 = vector.load %arg6[%c0_56, %c0_57] : memref<32x32xf32, #tpu.memory_space<vmem>>, vector<32x32xf32>
    %cst_58 = arith.constant dense<0.000000e+00> : vector<16x32xf32>
    %144 = tpu.matmul %142, %143, %cst_58 {dimension_numbers = #tpu.dot_dimension_numbers<[1], [0], [0], [1], [0, 0, 1, 1], [], []>} : vector<16x32xf32>, vector<32x32xf32>, vector<16x32xf32> -> vector<16x32xf32>
    %c0_59 = arith.constant 0 : index
    %c0_60 = arith.constant 0 : index
    %145 = vector.load %arg7[%c0_59, %c0_60] : memref<32x64xf32, #tpu.memory_space<vmem>>, vector<32x64xf32>
    %cst_61 = arith.constant dense<0.000000e+00> : vector<16x64xf32>
    %146 = tpu.matmul %1, %145, %cst_61 {dimension_numbers = #tpu.dot_dimension_numbers<[1], [0], [0], [1], [0, 0, 1, 1], [], []>} : vector<16x32xf32>, vector<32x64xf32>, vector<16x64xf32> -> vector<16x64xf32>
    %147 = vector.extract_strided_slice %146 {offsets = [0, 0], sizes = [16, 32], strides = [1, 1]} : vector<16x64xf32> to vector<16x32xf32>
    %148 = vector.extract_strided_slice %146 {offsets = [0, 32], sizes = [16, 32], strides = [1, 1]} : vector<16x64xf32> to vector<16x32xf32>
    %c0_62 = arith.constant 0 : index
    %c0_63 = arith.constant 0 : index
    %149 = vector.load %arg8[%c0_62, %c0_63] : memref<32x32xf32, #tpu.memory_space<vmem>>, vector<32x32xf32>
    %c0_64 = arith.constant 0 : index
    %c0_65 = arith.constant 0 : index
    %c0_66 = arith.constant 0 : index
    %150 = vector.load %arg3[%c0_64, %c0_65, %c0_66] : memref<2x8x8xf32, #tpu.memory_space<vmem>>, vector<2x8x8xf32>
    %151 = vector.extract_strided_slice %144 {offsets = [0, 0], sizes = [16, 8], strides = [1, 1]} : vector<16x32xf32> to vector<16x8xf32>
    %cst_67 = arith.constant 0.353553385 : f32
    %152 = vector.broadcast %cst_67 : f32 to vector<16x8xf32>
    %153 = arith.mulf %151, %152 : vector<16x8xf32>
    %154 = vector.shape_cast %153 : vector<16x8xf32> to vector<2x8x8xf32>
    %155 = vector.extract_strided_slice %147 {offsets = [0, 0], sizes = [16, 8], strides = [1, 1]} : vector<16x32xf32> to vector<16x8xf32>
    %156 = vector.shape_cast %155 : vector<16x8xf32> to vector<2x8x8xf32>
    %157 = vector.extract_strided_slice %148 {offsets = [0, 0], sizes = [16, 8], strides = [1, 1]} : vector<16x32xf32> to vector<16x8xf32>
    %158 = vector.shape_cast %157 : vector<16x8xf32> to vector<2x8x8xf32>
    "tpu.trace_start"() <{level = 10 : i32, message = "bqd,bkd->bqk"}> : () -> ()
    %cst_68 = arith.constant dense<0.000000e+00> : vector<2x8x8xf32>
    %159 = tpu.matmul %154, %156, %cst_68 {dimension_numbers = #tpu.dot_dimension_numbers<[2], [2], [1], [1], [0, 0, 0, 1, 1, 1], [0], [0]>} : vector<2x8x8xf32>, vector<2x8x8xf32>, vector<2x8x8xf32> -> vector<2x8x8xf32>
    "tpu.trace_stop"() : () -> ()
    %160 = arith.addf %159, %150 : vector<2x8x8xf32>
    %cst_69 = arith.constant dense<0xFF800000> : vector<2x8xf32>
    %161 = vector.multi_reduction <maximumf>, %160, %cst_69 [2] : vector<2x8x8xf32> to vector<2x8xf32>
    %162 = vector.shape_cast %161 : vector<2x8xf32> to vector<2x8x1xf32>
    %163 = vector.broadcast %162 : vector<2x8x1xf32> to vector<2x8x8xf32>
    %164 = arith.subf %160, %163 : vector<2x8x8xf32>
    %165 = math.exp %164 : vector<2x8x8xf32>
    %cst_70 = arith.constant dense<0.000000e+00> : vector<2x8xf32>
    %166 = vector.multi_reduction <add>, %165, %cst_70 [2] : vector<2x8x8xf32> to vector<2x8xf32>
    %167 = vector.shape_cast %166 : vector<2x8xf32> to vector<2x8x1xf32>
    %168 = tpu.reciprocal %167 {approx = true} : vector<2x8x1xf32> -> vector<2x8x1xf32>
    %169 = vector.broadcast %168 : vector<2x8x1xf32> to vector<2x8x8xf32>
    %170 = arith.mulf %165, %169 : vector<2x8x8xf32>
    %c0_71 = arith.constant 0 : index
    %c0_72 = arith.constant 0 : index
    %c0_73 = arith.constant 0 : index
    %c0_74 = arith.constant 0 : index
    %171 = vector.load %arg19[%c0_71, %c0_72, %c0_73, %c0_74] : memref<4x2x8x8xf32, #tpu.memory_space<vmem>>, vector<1x2x8x8xf32>
    %172 = vector.shape_cast %171 : vector<1x2x8x8xf32> to vector<2x8x8xf32>
    %173 = vector.shape_cast %170 : vector<2x8x8xf32> to vector<1x2x8x8xf32>
    tpu.vector_store %arg19[%c0_71, %c0_72, %c0_73, %c0_74], %173 {strides = array<i32>} : memref<4x2x8x8xf32, #tpu.memory_space<vmem>>, vector<1x2x8x8xf32>,
    "tpu.trace_start"() <{level = 10 : i32, message = "bqk,bkd->bqd"}> : () -> ()
    %cst_75 = arith.constant dense<0.000000e+00> : vector<2x8x8xf32>
    %174 = tpu.matmul %170, %158, %cst_75 {dimension_numbers = #tpu.dot_dimension_numbers<[2], [1], [1], [2], [0, 0, 0, 1, 1, 2], [0], [0]>} : vector<2x8x8xf32>, vector<2x8x8xf32>, vector<2x8x8xf32> -> vector<2x8x8xf32>
    "tpu.trace_stop"() : () -> ()
    %175 = vector.shape_cast %174 : vector<2x8x8xf32> to vector<16x8xf32>
    %176 = vector.extract_strided_slice %149 {offsets = [0, 0], sizes = [8, 32], strides = [1, 1]} : vector<32x32xf32> to vector<8x32xf32>
    %cst_76 = arith.constant dense<0.000000e+00> : vector<16x32xf32>
    %177 = tpu.matmul %175, %176, %cst_76 {dimension_numbers = #tpu.dot_dimension_numbers<[1], [0], [0], [1], [0, 0, 1, 1], [], []>} : vector<16x8xf32>, vector<8x32xf32>, vector<16x32xf32> -> vector<16x32xf32>
    %178 = vector.extract_strided_slice %144 {offsets = [0, 8], sizes = [16, 8], strides = [1, 1]} : vector<16x32xf32> to vector<16x8xf32>
    %cst_77 = arith.constant 0.353553385 : f32
    %179 = vector.broadcast %cst_77 : f32 to vector<16x8xf32>
    %180 = arith.mulf %178, %179 : vector<16x8xf32>
    %181 = vector.shape_cast %180 : vector<16x8xf32> to vector<2x8x8xf32>
    %182 = vector.extract_strided_slice %147 {offsets = [0, 8], sizes = [16, 8], strides = [1, 1]} : vector<16x32xf32> to vector<16x8xf32>
    %183 = vector.shape_cast %182 : vector<16x8xf32> to vector<2x8x8xf32>
    %184 = vector.extract_strided_slice %148 {offsets = [0, 8], sizes = [16, 8], strides = [1, 1]} : vector<16x32xf32> to vector<16x8xf32>
    %185 = vector.shape_cast %184 : vector<16x8xf32> to vector<2x8x8xf32>
    "tpu.trace_start"() <{level = 10 : i32, message = "bqd,bkd->bqk"}> : () -> ()
    %cst_78 = arith.constant dense<0.000000e+00> : vector<2x8x8xf32>
    %186 = tpu.matmul %181, %183, %cst_78 {dimension_numbers = #tpu.dot_dimension_numbers<[2], [2], [1], [1], [0, 0, 0, 1, 1, 1], [0], [0]>} : vector<2x8x8xf32>, vector<2x8x8xf32>, vector<2x8x8xf32> -> vector<2x8x8xf32>
    "tpu.trace_stop"() : () -> ()
    %187 = arith.addf %186, %150 : vector<2x8x8xf32>
    %cst_79 = arith.constant dense<0xFF800000> : vector<2x8xf32>
    %188 = vector.multi_reduction <maximumf>, %187, %cst_79 [2] : vector<2x8x8xf32> to vector<2x8xf32>
    %189 = vector.shape_cast %188 : vector<2x8xf32> to vector<2x8x1xf32>
    %190 = vector.broadcast %189 : vector<2x8x1xf32> to vector<2x8x8xf32>
    %191 = arith.subf %187, %190 : vector<2x8x8xf32>
    %192 = math.exp %191 : vector<2x8x8xf32>
    %cst_80 = arith.constant dense<0.000000e+00> : vector<2x8xf32>
    %193 = vector.multi_reduction <add>, %192, %cst_80 [2] : vector<2x8x8xf32> to vector<2x8xf32>
    %194 = vector.shape_cast %193 : vector<2x8xf32> to vector<2x8x1xf32>
    %195 = tpu.reciprocal %194 {approx = true} : vector<2x8x1xf32> -> vector<2x8x1xf32>
    %196 = vector.broadcast %195 : vector<2x8x1xf32> to vector<2x8x8xf32>
    %197 = arith.mulf %192, %196 : vector<2x8x8xf32>
    %c1_81 = arith.constant 1 : index
    %c0_82 = arith.constant 0 : index
    %c0_83 = arith.constant 0 : index
    %c0_84 = arith.constant 0 : index
    %198 = vector.load %arg19[%c1_81, %c0_82, %c0_83, %c0_84] : memref<4x2x8x8xf32, #tpu.memory_space<vmem>>, vector<1x2x8x8xf32>
    %199 = vector.shape_cast %198 : vector<1x2x8x8xf32> to vector<2x8x8xf32>
    %200 = vector.shape_cast %197 : vector<2x8x8xf32> to vector<1x2x8x8xf32>
    tpu.vector_store %arg19[%c1_81, %c0_82, %c0_83, %c0_84], %200 {strides = array<i32>} : memref<4x2x8x8xf32, #tpu.memory_space<vmem>>, vector<1x2x8x8xf32>,
    "tpu.trace_start"() <{level = 10 : i32, message = "bqk,bkd->bqd"}> : () -> ()
    %cst_85 = arith.constant dense<0.000000e+00> : vector<2x8x8xf32>
    %201 = tpu.matmul %197, %185, %cst_85 {dimension_numbers = #tpu.dot_dimension_numbers<[2], [1], [1], [2], [0, 0, 0, 1, 1, 2], [0], [0]>} : vector<2x8x8xf32>, vector<2x8x8xf32>, vector<2x8x8xf32> -> vector<2x8x8xf32>
    "tpu.trace_stop"() : () -> ()
    %202 = vector.shape_cast %201 : vector<2x8x8xf32> to vector<16x8xf32>
    %203 = vector.extract_strided_slice %149 {offsets = [8, 0], sizes = [8, 32], strides = [1, 1]} : vector<32x32xf32> to vector<8x32xf32>
    %cst_86 = arith.constant dense<0.000000e+00> : vector<16x32xf32>
    %204 = tpu.matmul %202, %203, %cst_86 {dimension_numbers = #tpu.dot_dimension_numbers<[1], [0], [0], [1], [0, 0, 1, 1], [], []>} : vector<16x8xf32>, vector<8x32xf32>, vector<16x32xf32> -> vector<16x32xf32>
    %205 = arith.addf %177, %204 : vector<16x32xf32>
    %206 = vector.extract_strided_slice %144 {offsets = [0, 16], sizes = [16, 8], strides = [1, 1]} : vector<16x32xf32> to vector<16x8xf32>
    %cst_87 = arith.constant 0.353553385 : f32
    %207 = vector.broadcast %cst_87 : f32 to vector<16x8xf32>
    %208 = arith.mulf %206, %207 : vector<16x8xf32>
    %209 = vector.shape_cast %208 : vector<16x8xf32> to vector<2x8x8xf32>
    %210 = vector.extract_strided_slice %147 {offsets = [0, 16], sizes = [16, 8], strides = [1, 1]} : vector<16x32xf32> to vector<16x8xf32>
    %211 = vector.shape_cast %210 : vector<16x8xf32> to vector<2x8x8xf32>
    %212 = vector.extract_strided_slice %148 {offsets = [0, 16], sizes = [16, 8], strides = [1, 1]} : vector<16x32xf32> to vector<16x8xf32>
    %213 = vector.shape_cast %212 : vector<16x8xf32> to vector<2x8x8xf32>
    "tpu.trace_start"() <{level = 10 : i32, message = "bqd,bkd->bqk"}> : () -> ()
    %cst_88 = arith.constant dense<0.000000e+00> : vector<2x8x8xf32>
    %214 = tpu.matmul %209, %211, %cst_88 {dimension_numbers = #tpu.dot_dimension_numbers<[2], [2], [1], [1], [0, 0, 0, 1, 1, 1], [0], [0]>} : vector<2x8x8xf32>, vector<2x8x8xf32>, vector<2x8x8xf32> -> vector<2x8x8xf32>
    "tpu.trace_stop"() : () -> ()
    %215 = arith.addf %214, %150 : vector<2x8x8xf32>
    %cst_89 = arith.constant dense<0xFF800000> : vector<2x8xf32>
    %216 = vector.multi_reduction <maximumf>, %215, %cst_89 [2] : vector<2x8x8xf32> to vector<2x8xf32>
    %217 = vector.shape_cast %216 : vector<2x8xf32> to vector<2x8x1xf32>
    %218 = vector.broadcast %217 : vector<2x8x1xf32> to vector<2x8x8xf32>
    %219 = arith.subf %215, %218 : vector<2x8x8xf32>
    %220 = math.exp %219 : vector<2x8x8xf32>
    %cst_90 = arith.constant dense<0.000000e+00> : vector<2x8xf32>
    %221 = vector.multi_reduction <add>, %220, %cst_90 [2] : vector<2x8x8xf32> to vector<2x8xf32>
    %222 = vector.shape_cast %221 : vector<2x8xf32> to vector<2x8x1xf32>
    %223 = tpu.reciprocal %222 {approx = true} : vector<2x8x1xf32> -> vector<2x8x1xf32>
    %224 = vector.broadcast %223 : vector<2x8x1xf32> to vector<2x8x8xf32>
    %225 = arith.mulf %220, %224 : vector<2x8x8xf32>
    %c2_91 = arith.constant 2 : index
    %c0_92 = arith.constant 0 : index
    %c0_93 = arith.constant 0 : index
    %c0_94 = arith.constant 0 : index
    %226 = vector.load %arg19[%c2_91, %c0_92, %c0_93, %c0_94] : memref<4x2x8x8xf32, #tpu.memory_space<vmem>>, vector<1x2x8x8xf32>
    %227 = vector.shape_cast %226 : vector<1x2x8x8xf32> to vector<2x8x8xf32>
    %228 = vector.shape_cast %225 : vector<2x8x8xf32> to vector<1x2x8x8xf32>
    tpu.vector_store %arg19[%c2_91, %c0_92, %c0_93, %c0_94], %228 {strides = array<i32>} : memref<4x2x8x8xf32, #tpu.memory_space<vmem>>, vector<1x2x8x8xf32>,
    "tpu.trace_start"() <{level = 10 : i32, message = "bqk,bkd->bqd"}> : () -> ()
    %cst_95 = arith.constant dense<0.000000e+00> : vector<2x8x8xf32>
    %229 = tpu.matmul %225, %213, %cst_95 {dimension_numbers = #tpu.dot_dimension_numbers<[2], [1], [1], [2], [0, 0, 0, 1, 1, 2], [0], [0]>} : vector<2x8x8xf32>, vector<2x8x8xf32>, vector<2x8x8xf32> -> vector<2x8x8xf32>
    "tpu.trace_stop"() : () -> ()
    %230 = vector.shape_cast %229 : vector<2x8x8xf32> to vector<16x8xf32>
    %231 = vector.extract_strided_slice %149 {offsets = [16, 0], sizes = [8, 32], strides = [1, 1]} : vector<32x32xf32> to vector<8x32xf32>
    %cst_96 = arith.constant dense<0.000000e+00> : vector<16x32xf32>
    %232 = tpu.matmul %230, %231, %cst_96 {dimension_numbers = #tpu.dot_dimension_numbers<[1], [0], [0], [1], [0, 0, 1, 1], [], []>} : vector<16x8xf32>, vector<8x32xf32>, vector<16x32xf32> -> vector<16x32xf32>
    %233 = arith.addf %205, %232 : vector<16x32xf32>
    %234 = vector.extract_strided_slice %144 {offsets = [0, 24], sizes = [16, 8], strides = [1, 1]} : vector<16x32xf32> to vector<16x8xf32>
    %cst_97 = arith.constant 0.353553385 : f32
    %235 = vector.broadcast %cst_97 : f32 to vector<16x8xf32>
    %236 = arith.mulf %234, %235 : vector<16x8xf32>
    %237 = vector.shape_cast %236 : vector<16x8xf32> to vector<2x8x8xf32>
    %238 = vector.extract_strided_slice %147 {offsets = [0, 24], sizes = [16, 8], strides = [1, 1]} : vector<16x32xf32> to vector<16x8xf32>
    %239 = vector.shape_cast %238 : vector<16x8xf32> to vector<2x8x8xf32>
    %240 = vector.extract_strided_slice %148 {offsets = [0, 24], sizes = [16, 8], strides = [1, 1]} : vector<16x32xf32> to vector<16x8xf32>
    %241 = vector.shape_cast %240 : vector<16x8xf32> to vector<2x8x8xf32>
    "tpu.trace_start"() <{level = 10 : i32, message = "bqd,bkd->bqk"}> : () -> ()
    %cst_98 = arith.constant dense<0.000000e+00> : vector<2x8x8xf32>
    %242 = tpu.matmul %237, %239, %cst_98 {dimension_numbers = #tpu.dot_dimension_numbers<[2], [2], [1], [1], [0, 0, 0, 1, 1, 1], [0], [0]>} : vector<2x8x8xf32>, vector<2x8x8xf32>, vector<2x8x8xf32> -> vector<2x8x8xf32>
    "tpu.trace_stop"() : () -> ()
    %243 = arith.addf %242, %150 : vector<2x8x8xf32>
    %cst_99 = arith.constant dense<0xFF800000> : vector<2x8xf32>
    %244 = vector.multi_reduction <maximumf>, %243, %cst_99 [2] : vector<2x8x8xf32> to vector<2x8xf32>
    %245 = vector.shape_cast %244 : vector<2x8xf32> to vector<2x8x1xf32>
    %246 = vector.broadcast %245 : vector<2x8x1xf32> to vector<2x8x8xf32>
    %247 = arith.subf %243, %246 : vector<2x8x8xf32>
    %248 = math.exp %247 : vector<2x8x8xf32>
    %cst_100 = arith.constant dense<0.000000e+00> : vector<2x8xf32>
    %249 = vector.multi_reduction <add>, %248, %cst_100 [2] : vector<2x8x8xf32> to vector<2x8xf32>
    %250 = vector.shape_cast %249 : vector<2x8xf32> to vector<2x8x1xf32>
    %251 = tpu.reciprocal %250 {approx = true} : vector<2x8x1xf32> -> vector<2x8x1xf32>
    %252 = vector.broadcast %251 : vector<2x8x1xf32> to vector<2x8x8xf32>
    %253 = arith.mulf %248, %252 : vector<2x8x8xf32>
    %c3_101 = arith.constant 3 : index
    %c0_102 = arith.constant 0 : index
    %c0_103 = arith.constant 0 : index
    %c0_104 = arith.constant 0 : index
    %254 = vector.load %arg19[%c3_101, %c0_102, %c0_103, %c0_104] : memref<4x2x8x8xf32, #tpu.memory_space<vmem>>, vector<1x2x8x8xf32>
    %255 = vector.shape_cast %254 : vector<1x2x8x8xf32> to vector<2x8x8xf32>
    %256 = vector.shape_cast %253 : vector<2x8x8xf32> to vector<1x2x8x8xf32>
    tpu.vector_store %arg19[%c3_101, %c0_102, %c0_103, %c0_104], %256 {strides = array<i32>} : memref<4x2x8x8xf32, #tpu.memory_space<vmem>>, vector<1x2x8x8xf32>,
    "tpu.trace_start"() <{level = 10 : i32, message = "bqk,bkd->bqd"}> : () -> ()
    %cst_105 = arith.constant dense<0.000000e+00> : vector<2x8x8xf32>
    %257 = tpu.matmul %253, %241, %cst_105 {dimension_numbers = #tpu.dot_dimension_numbers<[2], [1], [1], [2], [0, 0, 0, 1, 1, 2], [0], [0]>} : vector<2x8x8xf32>, vector<2x8x8xf32>, vector<2x8x8xf32> -> vector<2x8x8xf32>
    "tpu.trace_stop"() : () -> ()
    %258 = vector.shape_cast %257 : vector<2x8x8xf32> to vector<16x8xf32>
    %259 = vector.extract_strided_slice %149 {offsets = [24, 0], sizes = [8, 32], strides = [1, 1]} : vector<32x32xf32> to vector<8x32xf32>
    %cst_106 = arith.constant dense<0.000000e+00> : vector<16x32xf32>
    %260 = tpu.matmul %258, %259, %cst_106 {dimension_numbers = #tpu.dot_dimension_numbers<[1], [0], [0], [1], [0, 0, 1, 1], [], []>} : vector<16x8xf32>, vector<8x32xf32>, vector<16x32xf32> -> vector<16x32xf32>
    %261 = arith.addf %233, %260 : vector<16x32xf32>
    %262 = arith.addf %142, %261 : vector<16x32xf32>
    %c0_107 = arith.constant 0 : index
    %c0_108 = arith.constant 0 : index
    %263 = vector.load %arg15[%c0_107, %c0_108] : memref<1x32xf32, #tpu.memory_space<vmem>>, vector<1x32xf32>
    %c0_109 = arith.constant 0 : index
    %c0_110 = arith.constant 0 : index
    %264 = vector.load %arg16[%c0_109, %c0_110] : memref<1x32xf32, #tpu.memory_space<vmem>>, vector<1x32xf32>
    %cst_111 = arith.constant dense<0.000000e+00> : vector<16xf32>
    %265 = vector.multi_reduction <add>, %262, %cst_111 [1] : vector<16x32xf32> to vector<16xf32>
    %266 = vector.shape_cast %265 : vector<16xf32> to vector<16x1xf32>
    %cst_112 = arith.constant 3.200000e+01 : f32
    %267 = vector.broadcast %cst_112 : f32 to vector<16x1xf32>
    %268 = arith.divf %266, %267 : vector<16x1xf32>
    %269 = vector.broadcast %268 : vector<16x1xf32> to vector<16x32xf32>
    %270 = arith.subf %262, %269 : vector<16x32xf32>
    %271 = arith.mulf %270, %270 : vector<16x32xf32>
    %cst_113 = arith.constant dense<0.000000e+00> : vector<16xf32>
    %272 = vector.multi_reduction <add>, %271, %cst_113 [1] : vector<16x32xf32> to vector<16xf32>
    %273 = vector.shape_cast %272 : vector<16xf32> to vector<16x1xf32>
    %cst_114 = arith.constant 3.200000e+01 : f32
    %274 = vector.broadcast %cst_114 : f32 to vector<16x1xf32>
    %275 = arith.divf %273, %274 : vector<16x1xf32>
    %cst_115 = arith.constant 9.99999974E-6 : f32
    %276 = vector.broadcast %cst_115 : f32 to vector<16x1xf32>
    %277 = arith.addf %275, %276 : vector<16x1xf32>
    %278 = math.rsqrt %277 : vector<16x1xf32>
    %279 = vector.broadcast %278 : vector<16x1xf32> to vector<16x32xf32>
    %280 = arith.mulf %270, %279 : vector<16x32xf32>
    %281 = vector.broadcast %263 : vector<1x32xf32> to vector<16x32xf32>
    %282 = arith.mulf %280, %281 : vector<16x32xf32>
    %283 = vector.broadcast %264 : vector<1x32xf32> to vector<16x32xf32>
    %284 = arith.addf %282, %283 : vector<16x32xf32>
    %c0_116 = arith.constant 0 : index
    %c0_117 = arith.constant 0 : index
    %285 = vector.load %arg9[%c0_116, %c0_117] : memref<32x32xf32, #tpu.memory_space<vmem>>, vector<32x32xf32>
    %cst_118 = arith.constant dense<0.000000e+00> : vector<16x32xf32>
    %286 = tpu.matmul %284, %285, %cst_118 {dimension_numbers = #tpu.dot_dimension_numbers<[1], [0], [0], [1], [0, 0, 1, 1], [], []>} : vector<16x32xf32>, vector<32x32xf32>, vector<16x32xf32> -> vector<16x32xf32>
    %c0_119 = arith.constant 0 : index
    %c0_120 = arith.constant 0 : index
    %287 = vector.load %arg10[%c0_119, %c0_120] : memref<1x32xf32, #tpu.memory_space<vmem>>, vector<1x32xf32>
    %288 = vector.broadcast %287 : vector<1x32xf32> to vector<16x32xf32>
    %289 = arith.addf %286, %288 : vector<16x32xf32>
    %cst_121 = arith.constant 0.000000e+00 : f32
    %290 = vector.broadcast %cst_121 : f32 to vector<16x32xf32>
    %291 = arith.maximumf %289, %290 : vector<16x32xf32>
    %c0_122 = arith.constant 0 : index
    %c0_123 = arith.constant 0 : index
    %292 = vector.load %arg11[%c0_122, %c0_123] : memref<32x32xf32, #tpu.memory_space<vmem>>, vector<32x32xf32>
    %cst_124 = arith.constant dense<0.000000e+00> : vector<16x32xf32>
    %293 = tpu.matmul %291, %292, %cst_124 {dimension_numbers = #tpu.dot_dimension_numbers<[1], [0], [0], [1], [0, 0, 1, 1], [], []>} : vector<16x32xf32>, vector<32x32xf32>, vector<16x32xf32> -> vector<16x32xf32>
    %c0_125 = arith.constant 0 : index
    %c0_126 = arith.constant 0 : index
    %294 = vector.load %arg12[%c0_125, %c0_126] : memref<1x32xf32, #tpu.memory_space<vmem>>, vector<1x32xf32>
    %295 = vector.broadcast %294 : vector<1x32xf32> to vector<16x32xf32>
    %296 = arith.addf %293, %295 : vector<16x32xf32>
    %297 = arith.addf %296, %284 : vector<16x32xf32>
    %c0_127 = arith.constant 0 : index
    %c0_128 = arith.constant 0 : index
    %298 = vector.load %arg15[%c0_127, %c0_128] : memref<1x32xf32, #tpu.memory_space<vmem>>, vector<1x32xf32>
    %c0_129 = arith.constant 0 : index
    %c0_130 = arith.constant 0 : index
    %299 = vector.load %arg16[%c0_129, %c0_130] : memref<1x32xf32, #tpu.memory_space<vmem>>, vector<1x32xf32>
    %cst_131 = arith.constant dense<0.000000e+00> : vector<16xf32>
    %300 = vector.multi_reduction <add>, %297, %cst_131 [1] : vector<16x32xf32> to vector<16xf32>
    %301 = vector.shape_cast %300 : vector<16xf32> to vector<16x1xf32>
    %cst_132 = arith.constant 3.200000e+01 : f32
    %302 = vector.broadcast %cst_132 : f32 to vector<16x1xf32>
    %303 = arith.divf %301, %302 : vector<16x1xf32>
    %304 = vector.broadcast %303 : vector<16x1xf32> to vector<16x32xf32>
    %305 = arith.subf %297, %304 : vector<16x32xf32>
    %306 = arith.mulf %305, %305 : vector<16x32xf32>
    %cst_133 = arith.constant dense<0.000000e+00> : vector<16xf32>
    %307 = vector.multi_reduction <add>, %306, %cst_133 [1] : vector<16x32xf32> to vector<16xf32>
    %308 = vector.shape_cast %307 : vector<16xf32> to vector<16x1xf32>
    %cst_134 = arith.constant 3.200000e+01 : f32
    %309 = vector.broadcast %cst_134 : f32 to vector<16x1xf32>
    %310 = arith.divf %308, %309 : vector<16x1xf32>
    %cst_135 = arith.constant 9.99999974E-6 : f32
    %311 = vector.broadcast %cst_135 : f32 to vector<16x1xf32>
    %312 = arith.addf %310, %311 : vector<16x1xf32>
    %313 = math.rsqrt %312 : vector<16x1xf32>
    %314 = vector.broadcast %313 : vector<16x1xf32> to vector<16x32xf32>
    %315 = arith.mulf %305, %314 : vector<16x32xf32>
    %316 = vector.broadcast %298 : vector<1x32xf32> to vector<16x32xf32>
    %317 = arith.mulf %315, %316 : vector<16x32xf32>
    %318 = vector.broadcast %299 : vector<1x32xf32> to vector<16x32xf32>
    %319 = arith.addf %317, %318 : vector<16x32xf32>
    %c0_136 = arith.constant 0 : index
    %c0_137 = arith.constant 0 : index
    %320 = vector.load %arg17[%c0_136, %c0_137] : memref<16x32xf32, #tpu.memory_space<vmem>>, vector<16x32xf32>
    tpu.vector_store %arg17[%c0_136, %c0_137], %319 {strides = array<i32>} : memref<16x32xf32, #tpu.memory_space<vmem>>, vector<16x32xf32>,
    return
  }
}

module attributes {stable_mosaic.version = 11 : i64} {
  func.func @_final_proj_kernel(%arg0: memref<16x32xf32, #tpu.memory_space<vmem>>, %arg1: memref<32x40xf32, #tpu.memory_space<vmem>>, %arg2: memref<16x40xf32, #tpu.memory_space<vmem>>) attributes {dimension_semantics = [], scalar_prefetch = 0 : i64, scratch_operands = 0 : i64, tpu.core_type = #tpu.core_type<tc>} {
    %c0 = arith.constant 0 : index
    %c0_0 = arith.constant 0 : index
    %0 = vector.load %arg0[%c0, %c0_0] : memref<16x32xf32, #tpu.memory_space<vmem>>, vector<16x32xf32>
    %c0_1 = arith.constant 0 : index
    %c0_2 = arith.constant 0 : index
    %1 = vector.load %arg1[%c0_1, %c0_2] : memref<32x40xf32, #tpu.memory_space<vmem>>, vector<32x40xf32>
    %cst = arith.constant dense<0.000000e+00> : vector<16x40xf32>
    %2 = tpu.matmul %0, %1, %cst {dimension_numbers = #tpu.dot_dimension_numbers<[1], [0], [0], [1], [0, 0, 1, 1], [], []>} : vector<16x32xf32>, vector<32x40xf32>, vector<16x40xf32> -> vector<16x40xf32>
    %c0_3 = arith.constant 0 : index
    %c0_4 = arith.constant 0 : index
    %3 = vector.load %arg2[%c0_3, %c0_4] : memref<16x40xf32, #tpu.memory_space<vmem>>, vector<16x40xf32>
    tpu.vector_store %arg2[%c0_3, %c0_4], %2 {strides = array<i32>} : memref<16x40xf32, #tpu.memory_space<vmem>>, vector<16x40xf32>,
    return
  }
}

module attributes {stable_mosaic.version = 11 : i64} {
  func.func @_decoder_layer_kernel(%arg0: memref<16x32xf32, #tpu.memory_space<vmem>>, %arg1: memref<16x32xf32, #tpu.memory_space<vmem>>, %arg2: memref<2x8x8xf32, #tpu.memory_space<vmem>>, %arg3: memref<2x8x8xf32, #tpu.memory_space<vmem>>, %arg4: memref<32x96xf32, #tpu.memory_space<vmem>>, %arg5: memref<32x32xf32, #tpu.memory_space<vmem>>, %arg6: memref<32x32xf32, #tpu.memory_space<vmem>>, %arg7: memref<32x64xf32, #tpu.memory_space<vmem>>, %arg8: memref<32x32xf32, #tpu.memory_space<vmem>>, %arg9: memref<32x32xf32, #tpu.memory_space<vmem>>, %arg10: memref<1x32xf32, #tpu.memory_space<vmem>>, %arg11: memref<32x32xf32, #tpu.memory_space<vmem>>, %arg12: memref<1x32xf32, #tpu.memory_space<vmem>>, %arg13: memref<1x32xf32, #tpu.memory_space<vmem>>, %arg14: memref<1x32xf32, #tpu.memory_space<vmem>>, %arg15: memref<1x32xf32, #tpu.memory_space<vmem>>, %arg16: memref<1x32xf32, #tpu.memory_space<vmem>>, %arg17: memref<16x32xf32, #tpu.memory_space<vmem>>, %arg18: memref<4x2x8x8xf32, #tpu.memory_space<vmem>>, %arg19: memref<4x2x8x8xf32, #tpu.memory_space<vmem>>) attributes {dimension_semantics = [], scalar_prefetch = 0 : i64, scratch_operands = 0 : i64, tpu.core_type = #tpu.core_type<tc>} {
    %c0 = arith.constant 0 : index
    %c0_0 = arith.constant 0 : index
    %0 = vector.load %arg0[%c0, %c0_0] : memref<16x32xf32, #tpu.memory_space<vmem>>, vector<16x32xf32>
    %c0_1 = arith.constant 0 : index
    %c0_2 = arith.constant 0 : index
    %1 = vector.load %arg1[%c0_1, %c0_2] : memref<16x32xf32, #tpu.memory_space<vmem>>, vector<16x32xf32>
    %c0_3 = arith.constant 0 : index
    %c0_4 = arith.constant 0 : index
    %2 = vector.load %arg4[%c0_3, %c0_4] : memref<32x96xf32, #tpu.memory_space<vmem>>, vector<32x96xf32>
    %cst = arith.constant dense<0.000000e+00> : vector<16x96xf32>
    %3 = tpu.matmul %0, %2, %cst {dimension_numbers = #tpu.dot_dimension_numbers<[1], [0], [0], [1], [0, 0, 1, 1], [], []>} : vector<16x32xf32>, vector<32x96xf32>, vector<16x96xf32> -> vector<16x96xf32>
    %4 = vector.extract_strided_slice %3 {offsets = [0, 0], sizes = [16, 32], strides = [1, 1]} : vector<16x96xf32> to vector<16x32xf32>
    %5 = vector.extract_strided_slice %3 {offsets = [0, 32], sizes = [16, 32], strides = [1, 1]} : vector<16x96xf32> to vector<16x32xf32>
    %6 = vector.extract_strided_slice %3 {offsets = [0, 64], sizes = [16, 32], strides = [1, 1]} : vector<16x96xf32> to vector<16x32xf32>
    %c0_5 = arith.constant 0 : index
    %c0_6 = arith.constant 0 : index
    %7 = vector.load %arg5[%c0_5, %c0_6] : memref<32x32xf32, #tpu.memory_space<vmem>>, vector<32x32xf32>
    %c0_7 = arith.constant 0 : index
    %c0_8 = arith.constant 0 : index
    %c0_9 = arith.constant 0 : index
    %8 = vector.load %arg2[%c0_7, %c0_8, %c0_9] : memref<2x8x8xf32, #tpu.memory_space<vmem>>, vector<2x8x8xf32>
    %9 = vector.extract_strided_slice %4 {offsets = [0, 0], sizes = [16, 8], strides = [1, 1]} : vector<16x32xf32> to vector<16x8xf32>
    %cst_10 = arith.constant 0.353553385 : f32
    %10 = vector.broadcast %cst_10 : f32 to vector<16x8xf32>
    %11 = arith.mulf %9, %10 : vector<16x8xf32>
    %12 = vector.shape_cast %11 : vector<16x8xf32> to vector<2x8x8xf32>
    %13 = vector.extract_strided_slice %5 {offsets = [0, 0], sizes = [16, 8], strides = [1, 1]} : vector<16x32xf32> to vector<16x8xf32>
    %14 = vector.shape_cast %13 : vector<16x8xf32> to vector<2x8x8xf32>
    %15 = vector.extract_strided_slice %6 {offsets = [0, 0], sizes = [16, 8], strides = [1, 1]} : vector<16x32xf32> to vector<16x8xf32>
    %16 = vector.shape_cast %15 : vector<16x8xf32> to vector<2x8x8xf32>
    "tpu.trace_start"() <{level = 10 : i32, message = "bqd,bkd->bqk"}> : () -> ()
    %cst_11 = arith.constant dense<0.000000e+00> : vector<2x8x8xf32>
    %17 = tpu.matmul %12, %14, %cst_11 {dimension_numbers = #tpu.dot_dimension_numbers<[2], [2], [1], [1], [0, 0, 0, 1, 1, 1], [0], [0]>} : vector<2x8x8xf32>, vector<2x8x8xf32>, vector<2x8x8xf32> -> vector<2x8x8xf32>
    "tpu.trace_stop"() : () -> ()
    %18 = arith.addf %17, %8 : vector<2x8x8xf32>
    %cst_12 = arith.constant dense<0xFF800000> : vector<2x8xf32>
    %19 = vector.multi_reduction <maximumf>, %18, %cst_12 [2] : vector<2x8x8xf32> to vector<2x8xf32>
    %20 = vector.shape_cast %19 : vector<2x8xf32> to vector<2x8x1xf32>
    %21 = vector.broadcast %20 : vector<2x8x1xf32> to vector<2x8x8xf32>
    %22 = arith.subf %18, %21 : vector<2x8x8xf32>
    %23 = math.exp %22 : vector<2x8x8xf32>
    %cst_13 = arith.constant dense<0.000000e+00> : vector<2x8xf32>
    %24 = vector.multi_reduction <add>, %23, %cst_13 [2] : vector<2x8x8xf32> to vector<2x8xf32>
    %25 = vector.shape_cast %24 : vector<2x8xf32> to vector<2x8x1xf32>
    %26 = tpu.reciprocal %25 {approx = true} : vector<2x8x1xf32> -> vector<2x8x1xf32>
    %27 = vector.broadcast %26 : vector<2x8x1xf32> to vector<2x8x8xf32>
    %28 = arith.mulf %23, %27 : vector<2x8x8xf32>
    %c0_14 = arith.constant 0 : index
    %c0_15 = arith.constant 0 : index
    %c0_16 = arith.constant 0 : index
    %c0_17 = arith.constant 0 : index
    %29 = vector.load %arg18[%c0_14, %c0_15, %c0_16, %c0_17] : memref<4x2x8x8xf32, #tpu.memory_space<vmem>>, vector<1x2x8x8xf32>
    %30 = vector.shape_cast %29 : vector<1x2x8x8xf32> to vector<2x8x8xf32>
    %31 = vector.shape_cast %28 : vector<2x8x8xf32> to vector<1x2x8x8xf32>
    tpu.vector_store %arg18[%c0_14, %c0_15, %c0_16, %c0_17], %31 {strides = array<i32>} : memref<4x2x8x8xf32, #tpu.memory_space<vmem>>, vector<1x2x8x8xf32>,
    "tpu.trace_start"() <{level = 10 : i32, message = "bqk,bkd->bqd"}> : () -> ()
    %cst_18 = arith.constant dense<0.000000e+00> : vector<2x8x8xf32>
    %32 = tpu.matmul %28, %16, %cst_18 {dimension_numbers = #tpu.dot_dimension_numbers<[2], [1], [1], [2], [0, 0, 0, 1, 1, 2], [0], [0]>} : vector<2x8x8xf32>, vector<2x8x8xf32>, vector<2x8x8xf32> -> vector<2x8x8xf32>
    "tpu.trace_stop"() : () -> ()
    %33 = vector.shape_cast %32 : vector<2x8x8xf32> to vector<16x8xf32>
    %34 = vector.extract_strided_slice %7 {offsets = [0, 0], sizes = [8, 32], strides = [1, 1]} : vector<32x32xf32> to vector<8x32xf32>
    %cst_19 = arith.constant dense<0.000000e+00> : vector<16x32xf32>
    %35 = tpu.matmul %33, %34, %cst_19 {dimension_numbers = #tpu.dot_dimension_numbers<[1], [0], [0], [1], [0, 0, 1, 1], [], []>} : vector<16x8xf32>, vector<8x32xf32>, vector<16x32xf32> -> vector<16x32xf32>
    %36 = vector.extract_strided_slice %4 {offsets = [0, 8], sizes = [16, 8], strides = [1, 1]} : vector<16x32xf32> to vector<16x8xf32>
    %cst_20 = arith.constant 0.353553385 : f32
    %37 = vector.broadcast %cst_20 : f32 to vector<16x8xf32>
    %38 = arith.mulf %36, %37 : vector<16x8xf32>
    %39 = vector.shape_cast %38 : vector<16x8xf32> to vector<2x8x8xf32>
    %40 = vector.extract_strided_slice %5 {offsets = [0, 8], sizes = [16, 8], strides = [1, 1]} : vector<16x32xf32> to vector<16x8xf32>
    %41 = vector.shape_cast %40 : vector<16x8xf32> to vector<2x8x8xf32>
    %42 = vector.extract_strided_slice %6 {offsets = [0, 8], sizes = [16, 8], strides = [1, 1]} : vector<16x32xf32> to vector<16x8xf32>
    %43 = vector.shape_cast %42 : vector<16x8xf32> to vector<2x8x8xf32>
    "tpu.trace_start"() <{level = 10 : i32, message = "bqd,bkd->bqk"}> : () -> ()
    %cst_21 = arith.constant dense<0.000000e+00> : vector<2x8x8xf32>
    %44 = tpu.matmul %39, %41, %cst_21 {dimension_numbers = #tpu.dot_dimension_numbers<[2], [2], [1], [1], [0, 0, 0, 1, 1, 1], [0], [0]>} : vector<2x8x8xf32>, vector<2x8x8xf32>, vector<2x8x8xf32> -> vector<2x8x8xf32>
    "tpu.trace_stop"() : () -> ()
    %45 = arith.addf %44, %8 : vector<2x8x8xf32>
    %cst_22 = arith.constant dense<0xFF800000> : vector<2x8xf32>
    %46 = vector.multi_reduction <maximumf>, %45, %cst_22 [2] : vector<2x8x8xf32> to vector<2x8xf32>
    %47 = vector.shape_cast %46 : vector<2x8xf32> to vector<2x8x1xf32>
    %48 = vector.broadcast %47 : vector<2x8x1xf32> to vector<2x8x8xf32>
    %49 = arith.subf %45, %48 : vector<2x8x8xf32>
    %50 = math.exp %49 : vector<2x8x8xf32>
    %cst_23 = arith.constant dense<0.000000e+00> : vector<2x8xf32>
    %51 = vector.multi_reduction <add>, %50, %cst_23 [2] : vector<2x8x8xf32> to vector<2x8xf32>
    %52 = vector.shape_cast %51 : vector<2x8xf32> to vector<2x8x1xf32>
    %53 = tpu.reciprocal %52 {approx = true} : vector<2x8x1xf32> -> vector<2x8x1xf32>
    %54 = vector.broadcast %53 : vector<2x8x1xf32> to vector<2x8x8xf32>
    %55 = arith.mulf %50, %54 : vector<2x8x8xf32>
    %c1 = arith.constant 1 : index
    %c0_24 = arith.constant 0 : index
    %c0_25 = arith.constant 0 : index
    %c0_26 = arith.constant 0 : index
    %56 = vector.load %arg18[%c1, %c0_24, %c0_25, %c0_26] : memref<4x2x8x8xf32, #tpu.memory_space<vmem>>, vector<1x2x8x8xf32>
    %57 = vector.shape_cast %56 : vector<1x2x8x8xf32> to vector<2x8x8xf32>
    %58 = vector.shape_cast %55 : vector<2x8x8xf32> to vector<1x2x8x8xf32>
    tpu.vector_store %arg18[%c1, %c0_24, %c0_25, %c0_26], %58 {strides = array<i32>} : memref<4x2x8x8xf32, #tpu.memory_space<vmem>>, vector<1x2x8x8xf32>,
    "tpu.trace_start"() <{level = 10 : i32, message = "bqk,bkd->bqd"}> : () -> ()
    %cst_27 = arith.constant dense<0.000000e+00> : vector<2x8x8xf32>
    %59 = tpu.matmul %55, %43, %cst_27 {dimension_numbers = #tpu.dot_dimension_numbers<[2], [1], [1], [2], [0, 0, 0, 1, 1, 2], [0], [0]>} : vector<2x8x8xf32>, vector<2x8x8xf32>, vector<2x8x8xf32> -> vector<2x8x8xf32>
    "tpu.trace_stop"() : () -> ()
    %60 = vector.shape_cast %59 : vector<2x8x8xf32> to vector<16x8xf32>
    %61 = vector.extract_strided_slice %7 {offsets = [8, 0], sizes = [8, 32], strides = [1, 1]} : vector<32x32xf32> to vector<8x32xf32>
    %cst_28 = arith.constant dense<0.000000e+00> : vector<16x32xf32>
    %62 = tpu.matmul %60, %61, %cst_28 {dimension_numbers = #tpu.dot_dimension_numbers<[1], [0], [0], [1], [0, 0, 1, 1], [], []>} : vector<16x8xf32>, vector<8x32xf32>, vector<16x32xf32> -> vector<16x32xf32>
    %63 = arith.addf %35, %62 : vector<16x32xf32>
    %64 = vector.extract_strided_slice %4 {offsets = [0, 16], sizes = [16, 8], strides = [1, 1]} : vector<16x32xf32> to vector<16x8xf32>
    %cst_29 = arith.constant 0.353553385 : f32
    %65 = vector.broadcast %cst_29 : f32 to vector<16x8xf32>
    %66 = arith.mulf %64, %65 : vector<16x8xf32>
    %67 = vector.shape_cast %66 : vector<16x8xf32> to vector<2x8x8xf32>
    %68 = vector.extract_strided_slice %5 {offsets = [0, 16], sizes = [16, 8], strides = [1, 1]} : vector<16x32xf32> to vector<16x8xf32>
    %69 = vector.shape_cast %68 : vector<16x8xf32> to vector<2x8x8xf32>
    %70 = vector.extract_strided_slice %6 {offsets = [0, 16], sizes = [16, 8], strides = [1, 1]} : vector<16x32xf32> to vector<16x8xf32>
    %71 = vector.shape_cast %70 : vector<16x8xf32> to vector<2x8x8xf32>
    "tpu.trace_start"() <{level = 10 : i32, message = "bqd,bkd->bqk"}> : () -> ()
    %cst_30 = arith.constant dense<0.000000e+00> : vector<2x8x8xf32>
    %72 = tpu.matmul %67, %69, %cst_30 {dimension_numbers = #tpu.dot_dimension_numbers<[2], [2], [1], [1], [0, 0, 0, 1, 1, 1], [0], [0]>} : vector<2x8x8xf32>, vector<2x8x8xf32>, vector<2x8x8xf32> -> vector<2x8x8xf32>
    "tpu.trace_stop"() : () -> ()
    %73 = arith.addf %72, %8 : vector<2x8x8xf32>
    %cst_31 = arith.constant dense<0xFF800000> : vector<2x8xf32>
    %74 = vector.multi_reduction <maximumf>, %73, %cst_31 [2] : vector<2x8x8xf32> to vector<2x8xf32>
    %75 = vector.shape_cast %74 : vector<2x8xf32> to vector<2x8x1xf32>
    %76 = vector.broadcast %75 : vector<2x8x1xf32> to vector<2x8x8xf32>
    %77 = arith.subf %73, %76 : vector<2x8x8xf32>
    %78 = math.exp %77 : vector<2x8x8xf32>
    %cst_32 = arith.constant dense<0.000000e+00> : vector<2x8xf32>
    %79 = vector.multi_reduction <add>, %78, %cst_32 [2] : vector<2x8x8xf32> to vector<2x8xf32>
    %80 = vector.shape_cast %79 : vector<2x8xf32> to vector<2x8x1xf32>
    %81 = tpu.reciprocal %80 {approx = true} : vector<2x8x1xf32> -> vector<2x8x1xf32>
    %82 = vector.broadcast %81 : vector<2x8x1xf32> to vector<2x8x8xf32>
    %83 = arith.mulf %78, %82 : vector<2x8x8xf32>
    %c2 = arith.constant 2 : index
    %c0_33 = arith.constant 0 : index
    %c0_34 = arith.constant 0 : index
    %c0_35 = arith.constant 0 : index
    %84 = vector.load %arg18[%c2, %c0_33, %c0_34, %c0_35] : memref<4x2x8x8xf32, #tpu.memory_space<vmem>>, vector<1x2x8x8xf32>
    %85 = vector.shape_cast %84 : vector<1x2x8x8xf32> to vector<2x8x8xf32>
    %86 = vector.shape_cast %83 : vector<2x8x8xf32> to vector<1x2x8x8xf32>
    tpu.vector_store %arg18[%c2, %c0_33, %c0_34, %c0_35], %86 {strides = array<i32>} : memref<4x2x8x8xf32, #tpu.memory_space<vmem>>, vector<1x2x8x8xf32>,
    "tpu.trace_start"() <{level = 10 : i32, message = "bqk,bkd->bqd"}> : () -> ()
    %cst_36 = arith.constant dense<0.000000e+00> : vector<2x8x8xf32>
    %87 = tpu.matmul %83, %71, %cst_36 {dimension_numbers = #tpu.dot_dimension_numbers<[2], [1], [1], [2], [0, 0, 0, 1, 1, 2], [0], [0]>} : vector<2x8x8xf32>, vector<2x8x8xf32>, vector<2x8x8xf32> -> vector<2x8x8xf32>
    "tpu.trace_stop"() : () -> ()
    %88 = vector.shape_cast %87 : vector<2x8x8xf32> to vector<16x8xf32>
    %89 = vector.extract_strided_slice %7 {offsets = [16, 0], sizes = [8, 32], strides = [1, 1]} : vector<32x32xf32> to vector<8x32xf32>
    %cst_37 = arith.constant dense<0.000000e+00> : vector<16x32xf32>
    %90 = tpu.matmul %88, %89, %cst_37 {dimension_numbers = #tpu.dot_dimension_numbers<[1], [0], [0], [1], [0, 0, 1, 1], [], []>} : vector<16x8xf32>, vector<8x32xf32>, vector<16x32xf32> -> vector<16x32xf32>
    %91 = arith.addf %63, %90 : vector<16x32xf32>
    %92 = vector.extract_strided_slice %4 {offsets = [0, 24], sizes = [16, 8], strides = [1, 1]} : vector<16x32xf32> to vector<16x8xf32>
    %cst_38 = arith.constant 0.353553385 : f32
    %93 = vector.broadcast %cst_38 : f32 to vector<16x8xf32>
    %94 = arith.mulf %92, %93 : vector<16x8xf32>
    %95 = vector.shape_cast %94 : vector<16x8xf32> to vector<2x8x8xf32>
    %96 = vector.extract_strided_slice %5 {offsets = [0, 24], sizes = [16, 8], strides = [1, 1]} : vector<16x32xf32> to vector<16x8xf32>
    %97 = vector.shape_cast %96 : vector<16x8xf32> to vector<2x8x8xf32>
    %98 = vector.extract_strided_slice %6 {offsets = [0, 24], sizes = [16, 8], strides = [1, 1]} : vector<16x32xf32> to vector<16x8xf32>
    %99 = vector.shape_cast %98 : vector<16x8xf32> to vector<2x8x8xf32>
    "tpu.trace_start"() <{level = 10 : i32, message = "bqd,bkd->bqk"}> : () -> ()
    %cst_39 = arith.constant dense<0.000000e+00> : vector<2x8x8xf32>
    %100 = tpu.matmul %95, %97, %cst_39 {dimension_numbers = #tpu.dot_dimension_numbers<[2], [2], [1], [1], [0, 0, 0, 1, 1, 1], [0], [0]>} : vector<2x8x8xf32>, vector<2x8x8xf32>, vector<2x8x8xf32> -> vector<2x8x8xf32>
    "tpu.trace_stop"() : () -> ()
    %101 = arith.addf %100, %8 : vector<2x8x8xf32>
    %cst_40 = arith.constant dense<0xFF800000> : vector<2x8xf32>
    %102 = vector.multi_reduction <maximumf>, %101, %cst_40 [2] : vector<2x8x8xf32> to vector<2x8xf32>
    %103 = vector.shape_cast %102 : vector<2x8xf32> to vector<2x8x1xf32>
    %104 = vector.broadcast %103 : vector<2x8x1xf32> to vector<2x8x8xf32>
    %105 = arith.subf %101, %104 : vector<2x8x8xf32>
    %106 = math.exp %105 : vector<2x8x8xf32>
    %cst_41 = arith.constant dense<0.000000e+00> : vector<2x8xf32>
    %107 = vector.multi_reduction <add>, %106, %cst_41 [2] : vector<2x8x8xf32> to vector<2x8xf32>
    %108 = vector.shape_cast %107 : vector<2x8xf32> to vector<2x8x1xf32>
    %109 = tpu.reciprocal %108 {approx = true} : vector<2x8x1xf32> -> vector<2x8x1xf32>
    %110 = vector.broadcast %109 : vector<2x8x1xf32> to vector<2x8x8xf32>
    %111 = arith.mulf %106, %110 : vector<2x8x8xf32>
    %c3 = arith.constant 3 : index
    %c0_42 = arith.constant 0 : index
    %c0_43 = arith.constant 0 : index
    %c0_44 = arith.constant 0 : index
    %112 = vector.load %arg18[%c3, %c0_42, %c0_43, %c0_44] : memref<4x2x8x8xf32, #tpu.memory_space<vmem>>, vector<1x2x8x8xf32>
    %113 = vector.shape_cast %112 : vector<1x2x8x8xf32> to vector<2x8x8xf32>
    %114 = vector.shape_cast %111 : vector<2x8x8xf32> to vector<1x2x8x8xf32>
    tpu.vector_store %arg18[%c3, %c0_42, %c0_43, %c0_44], %114 {strides = array<i32>} : memref<4x2x8x8xf32, #tpu.memory_space<vmem>>, vector<1x2x8x8xf32>,
    "tpu.trace_start"() <{level = 10 : i32, message = "bqk,bkd->bqd"}> : () -> ()
    %cst_45 = arith.constant dense<0.000000e+00> : vector<2x8x8xf32>
    %115 = tpu.matmul %111, %99, %cst_45 {dimension_numbers = #tpu.dot_dimension_numbers<[2], [1], [1], [2], [0, 0, 0, 1, 1, 2], [0], [0]>} : vector<2x8x8xf32>, vector<2x8x8xf32>, vector<2x8x8xf32> -> vector<2x8x8xf32>
    "tpu.trace_stop"() : () -> ()
    %116 = vector.shape_cast %115 : vector<2x8x8xf32> to vector<16x8xf32>
    %117 = vector.extract_strided_slice %7 {offsets = [24, 0], sizes = [8, 32], strides = [1, 1]} : vector<32x32xf32> to vector<8x32xf32>
    %cst_46 = arith.constant dense<0.000000e+00> : vector<16x32xf32>
    %118 = tpu.matmul %116, %117, %cst_46 {dimension_numbers = #tpu.dot_dimension_numbers<[1], [0], [0], [1], [0, 0, 1, 1], [], []>} : vector<16x8xf32>, vector<8x32xf32>, vector<16x32xf32> -> vector<16x32xf32>
    %119 = arith.addf %91, %118 : vector<16x32xf32>
    %120 = arith.addf %0, %119 : vector<16x32xf32>
    %c0_47 = arith.constant 0 : index
    %c0_48 = arith.constant 0 : index
    %121 = vector.load %arg13[%c0_47, %c0_48] : memref<1x32xf32, #tpu.memory_space<vmem>>, vector<1x32xf32>
    %c0_49 = arith.constant 0 : index
    %c0_50 = arith.constant 0 : index
    %122 = vector.load %arg14[%c0_49, %c0_50] : memref<1x32xf32, #tpu.memory_space<vmem>>, vector<1x32xf32>
    %cst_51 = arith.constant dense<0.000000e+00> : vector<16xf32>
    %123 = vector.multi_reduction <add>, %120, %cst_51 [1] : vector<16x32xf32> to vector<16xf32>
    %124 = vector.shape_cast %123 : vector<16xf32> to vector<16x1xf32>
    %cst_52 = arith.constant 3.200000e+01 : f32
    %125 = vector.broadcast %cst_52 : f32 to vector<16x1xf32>
    %126 = arith.divf %124, %125 : vector<16x1xf32>
    %127 = vector.broadcast %126 : vector<16x1xf32> to vector<16x32xf32>
    %128 = arith.subf %120, %127 : vector<16x32xf32>
    %129 = arith.mulf %128, %128 : vector<16x32xf32>
    %cst_53 = arith.constant dense<0.000000e+00> : vector<16xf32>
    %130 = vector.multi_reduction <add>, %129, %cst_53 [1] : vector<16x32xf32> to vector<16xf32>
    %131 = vector.shape_cast %130 : vector<16xf32> to vector<16x1xf32>
    %cst_54 = arith.constant 3.200000e+01 : f32
    %132 = vector.broadcast %cst_54 : f32 to vector<16x1xf32>
    %133 = arith.divf %131, %132 : vector<16x1xf32>
    %cst_55 = arith.constant 9.99999974E-6 : f32
    %134 = vector.broadcast %cst_55 : f32 to vector<16x1xf32>
    %135 = arith.addf %133, %134 : vector<16x1xf32>
    %136 = math.rsqrt %135 : vector<16x1xf32>
    %137 = vector.broadcast %136 : vector<16x1xf32> to vector<16x32xf32>
    %138 = arith.mulf %128, %137 : vector<16x32xf32>
    %139 = vector.broadcast %121 : vector<1x32xf32> to vector<16x32xf32>
    %140 = arith.mulf %138, %139 : vector<16x32xf32>
    %141 = vector.broadcast %122 : vector<1x32xf32> to vector<16x32xf32>
    %142 = arith.addf %140, %141 : vector<16x32xf32>
    %c0_56 = arith.constant 0 : index
    %c0_57 = arith.constant 0 : index
    %143 = vector.load %arg6[%c0_56, %c0_57] : memref<32x32xf32, #tpu.memory_space<vmem>>, vector<32x32xf32>
    %cst_58 = arith.constant dense<0.000000e+00> : vector<16x32xf32>
    %144 = tpu.matmul %142, %143, %cst_58 {dimension_numbers = #tpu.dot_dimension_numbers<[1], [0], [0], [1], [0, 0, 1, 1], [], []>} : vector<16x32xf32>, vector<32x32xf32>, vector<16x32xf32> -> vector<16x32xf32>
    %c0_59 = arith.constant 0 : index
    %c0_60 = arith.constant 0 : index
    %145 = vector.load %arg7[%c0_59, %c0_60] : memref<32x64xf32, #tpu.memory_space<vmem>>, vector<32x64xf32>
    %cst_61 = arith.constant dense<0.000000e+00> : vector<16x64xf32>
    %146 = tpu.matmul %1, %145, %cst_61 {dimension_numbers = #tpu.dot_dimension_numbers<[1], [0], [0], [1], [0, 0, 1, 1], [], []>} : vector<16x32xf32>, vector<32x64xf32>, vector<16x64xf32> -> vector<16x64xf32>
    %147 = vector.extract_strided_slice %146 {offsets = [0, 0], sizes = [16, 32], strides = [1, 1]} : vector<16x64xf32> to vector<16x32xf32>
    %148 = vector.extract_strided_slice %146 {offsets = [0, 32], sizes = [16, 32], strides = [1, 1]} : vector<16x64xf32> to vector<16x32xf32>
    %c0_62 = arith.constant 0 : index
    %c0_63 = arith.constant 0 : index
    %149 = vector.load %arg8[%c0_62, %c0_63] : memref<32x32xf32, #tpu.memory_space<vmem>>, vector<32x32xf32>
    %c0_64 = arith.constant 0 : index
    %c0_65 = arith.constant 0 : index
    %c0_66 = arith.constant 0 : index
    %150 = vector.load %arg3[%c0_64, %c0_65, %c0_66] : memref<2x8x8xf32, #tpu.memory_space<vmem>>, vector<2x8x8xf32>
    %151 = vector.extract_strided_slice %144 {offsets = [0, 0], sizes = [16, 8], strides = [1, 1]} : vector<16x32xf32> to vector<16x8xf32>
    %cst_67 = arith.constant 0.353553385 : f32
    %152 = vector.broadcast %cst_67 : f32 to vector<16x8xf32>
    %153 = arith.mulf %151, %152 : vector<16x8xf32>
    %154 = vector.shape_cast %153 : vector<16x8xf32> to vector<2x8x8xf32>
    %155 = vector.extract_strided_slice %147 {offsets = [0, 0], sizes = [16, 8], strides = [1, 1]} : vector<16x32xf32> to vector<16x8xf32>
    %156 = vector.shape_cast %155 : vector<16x8xf32> to vector<2x8x8xf32>
    %157 = vector.extract_strided_slice %148 {offsets = [0, 0], sizes = [16, 8], strides = [1, 1]} : vector<16x32xf32> to vector<16x8xf32>
    %158 = vector.shape_cast %157 : vector<16x8xf32> to vector<2x8x8xf32>
    "tpu.trace_start"() <{level = 10 : i32, message = "bqd,bkd->bqk"}> : () -> ()
    %cst_68 = arith.constant dense<0.000000e+00> : vector<2x8x8xf32>
    %159 = tpu.matmul %154, %156, %cst_68 {dimension_numbers = #tpu.dot_dimension_numbers<[2], [2], [1], [1], [0, 0, 0, 1, 1, 1], [0], [0]>} : vector<2x8x8xf32>, vector<2x8x8xf32>, vector<2x8x8xf32> -> vector<2x8x8xf32>
    "tpu.trace_stop"() : () -> ()
    %160 = arith.addf %159, %150 : vector<2x8x8xf32>
    %cst_69 = arith.constant dense<0xFF800000> : vector<2x8xf32>
    %161 = vector.multi_reduction <maximumf>, %160, %cst_69 [2] : vector<2x8x8xf32> to vector<2x8xf32>
    %162 = vector.shape_cast %161 : vector<2x8xf32> to vector<2x8x1xf32>
    %163 = vector.broadcast %162 : vector<2x8x1xf32> to vector<2x8x8xf32>
    %164 = arith.subf %160, %163 : vector<2x8x8xf32>
    %165 = math.exp %164 : vector<2x8x8xf32>
    %cst_70 = arith.constant dense<0.000000e+00> : vector<2x8xf32>
    %166 = vector.multi_reduction <add>, %165, %cst_70 [2] : vector<2x8x8xf32> to vector<2x8xf32>
    %167 = vector.shape_cast %166 : vector<2x8xf32> to vector<2x8x1xf32>
    %168 = tpu.reciprocal %167 {approx = true} : vector<2x8x1xf32> -> vector<2x8x1xf32>
    %169 = vector.broadcast %168 : vector<2x8x1xf32> to vector<2x8x8xf32>
    %170 = arith.mulf %165, %169 : vector<2x8x8xf32>
    %c0_71 = arith.constant 0 : index
    %c0_72 = arith.constant 0 : index
    %c0_73 = arith.constant 0 : index
    %c0_74 = arith.constant 0 : index
    %171 = vector.load %arg19[%c0_71, %c0_72, %c0_73, %c0_74] : memref<4x2x8x8xf32, #tpu.memory_space<vmem>>, vector<1x2x8x8xf32>
    %172 = vector.shape_cast %171 : vector<1x2x8x8xf32> to vector<2x8x8xf32>
    %173 = vector.shape_cast %170 : vector<2x8x8xf32> to vector<1x2x8x8xf32>
    tpu.vector_store %arg19[%c0_71, %c0_72, %c0_73, %c0_74], %173 {strides = array<i32>} : memref<4x2x8x8xf32, #tpu.memory_space<vmem>>, vector<1x2x8x8xf32>,
    "tpu.trace_start"() <{level = 10 : i32, message = "bqk,bkd->bqd"}> : () -> ()
    %cst_75 = arith.constant dense<0.000000e+00> : vector<2x8x8xf32>
    %174 = tpu.matmul %170, %158, %cst_75 {dimension_numbers = #tpu.dot_dimension_numbers<[2], [1], [1], [2], [0, 0, 0, 1, 1, 2], [0], [0]>} : vector<2x8x8xf32>, vector<2x8x8xf32>, vector<2x8x8xf32> -> vector<2x8x8xf32>
    "tpu.trace_stop"() : () -> ()
    %175 = vector.shape_cast %174 : vector<2x8x8xf32> to vector<16x8xf32>
    %176 = vector.extract_strided_slice %149 {offsets = [0, 0], sizes = [8, 32], strides = [1, 1]} : vector<32x32xf32> to vector<8x32xf32>
    %cst_76 = arith.constant dense<0.000000e+00> : vector<16x32xf32>
    %177 = tpu.matmul %175, %176, %cst_76 {dimension_numbers = #tpu.dot_dimension_numbers<[1], [0], [0], [1], [0, 0, 1, 1], [], []>} : vector<16x8xf32>, vector<8x32xf32>, vector<16x32xf32> -> vector<16x32xf32>
    %178 = vector.extract_strided_slice %144 {offsets = [0, 8], sizes = [16, 8], strides = [1, 1]} : vector<16x32xf32> to vector<16x8xf32>
    %cst_77 = arith.constant 0.353553385 : f32
    %179 = vector.broadcast %cst_77 : f32 to vector<16x8xf32>
    %180 = arith.mulf %178, %179 : vector<16x8xf32>
    %181 = vector.shape_cast %180 : vector<16x8xf32> to vector<2x8x8xf32>
    %182 = vector.extract_strided_slice %147 {offsets = [0, 8], sizes = [16, 8], strides = [1, 1]} : vector<16x32xf32> to vector<16x8xf32>
    %183 = vector.shape_cast %182 : vector<16x8xf32> to vector<2x8x8xf32>
    %184 = vector.extract_strided_slice %148 {offsets = [0, 8], sizes = [16, 8], strides = [1, 1]} : vector<16x32xf32> to vector<16x8xf32>
    %185 = vector.shape_cast %184 : vector<16x8xf32> to vector<2x8x8xf32>
    "tpu.trace_start"() <{level = 10 : i32, message = "bqd,bkd->bqk"}> : () -> ()
    %cst_78 = arith.constant dense<0.000000e+00> : vector<2x8x8xf32>
    %186 = tpu.matmul %181, %183, %cst_78 {dimension_numbers = #tpu.dot_dimension_numbers<[2], [2], [1], [1], [0, 0, 0, 1, 1, 1], [0], [0]>} : vector<2x8x8xf32>, vector<2x8x8xf32>, vector<2x8x8xf32> -> vector<2x8x8xf32>
    "tpu.trace_stop"() : () -> ()
    %187 = arith.addf %186, %150 : vector<2x8x8xf32>
    %cst_79 = arith.constant dense<0xFF800000> : vector<2x8xf32>
    %188 = vector.multi_reduction <maximumf>, %187, %cst_79 [2] : vector<2x8x8xf32> to vector<2x8xf32>
    %189 = vector.shape_cast %188 : vector<2x8xf32> to vector<2x8x1xf32>
    %190 = vector.broadcast %189 : vector<2x8x1xf32> to vector<2x8x8xf32>
    %191 = arith.subf %187, %190 : vector<2x8x8xf32>
    %192 = math.exp %191 : vector<2x8x8xf32>
    %cst_80 = arith.constant dense<0.000000e+00> : vector<2x8xf32>
    %193 = vector.multi_reduction <add>, %192, %cst_80 [2] : vector<2x8x8xf32> to vector<2x8xf32>
    %194 = vector.shape_cast %193 : vector<2x8xf32> to vector<2x8x1xf32>
    %195 = tpu.reciprocal %194 {approx = true} : vector<2x8x1xf32> -> vector<2x8x1xf32>
    %196 = vector.broadcast %195 : vector<2x8x1xf32> to vector<2x8x8xf32>
    %197 = arith.mulf %192, %196 : vector<2x8x8xf32>
    %c1_81 = arith.constant 1 : index
    %c0_82 = arith.constant 0 : index
    %c0_83 = arith.constant 0 : index
    %c0_84 = arith.constant 0 : index
    %198 = vector.load %arg19[%c1_81, %c0_82, %c0_83, %c0_84] : memref<4x2x8x8xf32, #tpu.memory_space<vmem>>, vector<1x2x8x8xf32>
    %199 = vector.shape_cast %198 : vector<1x2x8x8xf32> to vector<2x8x8xf32>
    %200 = vector.shape_cast %197 : vector<2x8x8xf32> to vector<1x2x8x8xf32>
    tpu.vector_store %arg19[%c1_81, %c0_82, %c0_83, %c0_84], %200 {strides = array<i32>} : memref<4x2x8x8xf32, #tpu.memory_space<vmem>>, vector<1x2x8x8xf32>,
    "tpu.trace_start"() <{level = 10 : i32, message = "bqk,bkd->bqd"}> : () -> ()
    %cst_85 = arith.constant dense<0.000000e+00> : vector<2x8x8xf32>
    %201 = tpu.matmul %197, %185, %cst_85 {dimension_numbers = #tpu.dot_dimension_numbers<[2], [1], [1], [2], [0, 0, 0, 1, 1, 2], [0], [0]>} : vector<2x8x8xf32>, vector<2x8x8xf32>, vector<2x8x8xf32> -> vector<2x8x8xf32>
    "tpu.trace_stop"() : () -> ()
    %202 = vector.shape_cast %201 : vector<2x8x8xf32> to vector<16x8xf32>
    %203 = vector.extract_strided_slice %149 {offsets = [8, 0], sizes = [8, 32], strides = [1, 1]} : vector<32x32xf32> to vector<8x32xf32>
    %cst_86 = arith.constant dense<0.000000e+00> : vector<16x32xf32>
    %204 = tpu.matmul %202, %203, %cst_86 {dimension_numbers = #tpu.dot_dimension_numbers<[1], [0], [0], [1], [0, 0, 1, 1], [], []>} : vector<16x8xf32>, vector<8x32xf32>, vector<16x32xf32> -> vector<16x32xf32>
    %205 = arith.addf %177, %204 : vector<16x32xf32>
    %206 = vector.extract_strided_slice %144 {offsets = [0, 16], sizes = [16, 8], strides = [1, 1]} : vector<16x32xf32> to vector<16x8xf32>
    %cst_87 = arith.constant 0.353553385 : f32
    %207 = vector.broadcast %cst_87 : f32 to vector<16x8xf32>
    %208 = arith.mulf %206, %207 : vector<16x8xf32>
    %209 = vector.shape_cast %208 : vector<16x8xf32> to vector<2x8x8xf32>
    %210 = vector.extract_strided_slice %147 {offsets = [0, 16], sizes = [16, 8], strides = [1, 1]} : vector<16x32xf32> to vector<16x8xf32>
    %211 = vector.shape_cast %210 : vector<16x8xf32> to vector<2x8x8xf32>
    %212 = vector.extract_strided_slice %148 {offsets = [0, 16], sizes = [16, 8], strides = [1, 1]} : vector<16x32xf32> to vector<16x8xf32>
    %213 = vector.shape_cast %212 : vector<16x8xf32> to vector<2x8x8xf32>
    "tpu.trace_start"() <{level = 10 : i32, message = "bqd,bkd->bqk"}> : () -> ()
    %cst_88 = arith.constant dense<0.000000e+00> : vector<2x8x8xf32>
    %214 = tpu.matmul %209, %211, %cst_88 {dimension_numbers = #tpu.dot_dimension_numbers<[2], [2], [1], [1], [0, 0, 0, 1, 1, 1], [0], [0]>} : vector<2x8x8xf32>, vector<2x8x8xf32>, vector<2x8x8xf32> -> vector<2x8x8xf32>
    "tpu.trace_stop"() : () -> ()
    %215 = arith.addf %214, %150 : vector<2x8x8xf32>
    %cst_89 = arith.constant dense<0xFF800000> : vector<2x8xf32>
    %216 = vector.multi_reduction <maximumf>, %215, %cst_89 [2] : vector<2x8x8xf32> to vector<2x8xf32>
    %217 = vector.shape_cast %216 : vector<2x8xf32> to vector<2x8x1xf32>
    %218 = vector.broadcast %217 : vector<2x8x1xf32> to vector<2x8x8xf32>
    %219 = arith.subf %215, %218 : vector<2x8x8xf32>
    %220 = math.exp %219 : vector<2x8x8xf32>
    %cst_90 = arith.constant dense<0.000000e+00> : vector<2x8xf32>
    %221 = vector.multi_reduction <add>, %220, %cst_90 [2] : vector<2x8x8xf32> to vector<2x8xf32>
    %222 = vector.shape_cast %221 : vector<2x8xf32> to vector<2x8x1xf32>
    %223 = tpu.reciprocal %222 {approx = true} : vector<2x8x1xf32> -> vector<2x8x1xf32>
    %224 = vector.broadcast %223 : vector<2x8x1xf32> to vector<2x8x8xf32>
    %225 = arith.mulf %220, %224 : vector<2x8x8xf32>
    %c2_91 = arith.constant 2 : index
    %c0_92 = arith.constant 0 : index
    %c0_93 = arith.constant 0 : index
    %c0_94 = arith.constant 0 : index
    %226 = vector.load %arg19[%c2_91, %c0_92, %c0_93, %c0_94] : memref<4x2x8x8xf32, #tpu.memory_space<vmem>>, vector<1x2x8x8xf32>
    %227 = vector.shape_cast %226 : vector<1x2x8x8xf32> to vector<2x8x8xf32>
    %228 = vector.shape_cast %225 : vector<2x8x8xf32> to vector<1x2x8x8xf32>
    tpu.vector_store %arg19[%c2_91, %c0_92, %c0_93, %c0_94], %228 {strides = array<i32>} : memref<4x2x8x8xf32, #tpu.memory_space<vmem>>, vector<1x2x8x8xf32>,
    "tpu.trace_start"() <{level = 10 : i32, message = "bqk,bkd->bqd"}> : () -> ()
    %cst_95 = arith.constant dense<0.000000e+00> : vector<2x8x8xf32>
    %229 = tpu.matmul %225, %213, %cst_95 {dimension_numbers = #tpu.dot_dimension_numbers<[2], [1], [1], [2], [0, 0, 0, 1, 1, 2], [0], [0]>} : vector<2x8x8xf32>, vector<2x8x8xf32>, vector<2x8x8xf32> -> vector<2x8x8xf32>
    "tpu.trace_stop"() : () -> ()
    %230 = vector.shape_cast %229 : vector<2x8x8xf32> to vector<16x8xf32>
    %231 = vector.extract_strided_slice %149 {offsets = [16, 0], sizes = [8, 32], strides = [1, 1]} : vector<32x32xf32> to vector<8x32xf32>
    %cst_96 = arith.constant dense<0.000000e+00> : vector<16x32xf32>
    %232 = tpu.matmul %230, %231, %cst_96 {dimension_numbers = #tpu.dot_dimension_numbers<[1], [0], [0], [1], [0, 0, 1, 1], [], []>} : vector<16x8xf32>, vector<8x32xf32>, vector<16x32xf32> -> vector<16x32xf32>
    %233 = arith.addf %205, %232 : vector<16x32xf32>
    %234 = vector.extract_strided_slice %144 {offsets = [0, 24], sizes = [16, 8], strides = [1, 1]} : vector<16x32xf32> to vector<16x8xf32>
    %cst_97 = arith.constant 0.353553385 : f32
    %235 = vector.broadcast %cst_97 : f32 to vector<16x8xf32>
    %236 = arith.mulf %234, %235 : vector<16x8xf32>
    %237 = vector.shape_cast %236 : vector<16x8xf32> to vector<2x8x8xf32>
    %238 = vector.extract_strided_slice %147 {offsets = [0, 24], sizes = [16, 8], strides = [1, 1]} : vector<16x32xf32> to vector<16x8xf32>
    %239 = vector.shape_cast %238 : vector<16x8xf32> to vector<2x8x8xf32>
    %240 = vector.extract_strided_slice %148 {offsets = [0, 24], sizes = [16, 8], strides = [1, 1]} : vector<16x32xf32> to vector<16x8xf32>
    %241 = vector.shape_cast %240 : vector<16x8xf32> to vector<2x8x8xf32>
    "tpu.trace_start"() <{level = 10 : i32, message = "bqd,bkd->bqk"}> : () -> ()
    %cst_98 = arith.constant dense<0.000000e+00> : vector<2x8x8xf32>
    %242 = tpu.matmul %237, %239, %cst_98 {dimension_numbers = #tpu.dot_dimension_numbers<[2], [2], [1], [1], [0, 0, 0, 1, 1, 1], [0], [0]>} : vector<2x8x8xf32>, vector<2x8x8xf32>, vector<2x8x8xf32> -> vector<2x8x8xf32>
    "tpu.trace_stop"() : () -> ()
    %243 = arith.addf %242, %150 : vector<2x8x8xf32>
    %cst_99 = arith.constant dense<0xFF800000> : vector<2x8xf32>
    %244 = vector.multi_reduction <maximumf>, %243, %cst_99 [2] : vector<2x8x8xf32> to vector<2x8xf32>
    %245 = vector.shape_cast %244 : vector<2x8xf32> to vector<2x8x1xf32>
    %246 = vector.broadcast %245 : vector<2x8x1xf32> to vector<2x8x8xf32>
    %247 = arith.subf %243, %246 : vector<2x8x8xf32>
    %248 = math.exp %247 : vector<2x8x8xf32>
    %cst_100 = arith.constant dense<0.000000e+00> : vector<2x8xf32>
    %249 = vector.multi_reduction <add>, %248, %cst_100 [2] : vector<2x8x8xf32> to vector<2x8xf32>
    %250 = vector.shape_cast %249 : vector<2x8xf32> to vector<2x8x1xf32>
    %251 = tpu.reciprocal %250 {approx = true} : vector<2x8x1xf32> -> vector<2x8x1xf32>
    %252 = vector.broadcast %251 : vector<2x8x1xf32> to vector<2x8x8xf32>
    %253 = arith.mulf %248, %252 : vector<2x8x8xf32>
    %c3_101 = arith.constant 3 : index
    %c0_102 = arith.constant 0 : index
    %c0_103 = arith.constant 0 : index
    %c0_104 = arith.constant 0 : index
    %254 = vector.load %arg19[%c3_101, %c0_102, %c0_103, %c0_104] : memref<4x2x8x8xf32, #tpu.memory_space<vmem>>, vector<1x2x8x8xf32>
    %255 = vector.shape_cast %254 : vector<1x2x8x8xf32> to vector<2x8x8xf32>
    %256 = vector.shape_cast %253 : vector<2x8x8xf32> to vector<1x2x8x8xf32>
    tpu.vector_store %arg19[%c3_101, %c0_102, %c0_103, %c0_104], %256 {strides = array<i32>} : memref<4x2x8x8xf32, #tpu.memory_space<vmem>>, vector<1x2x8x8xf32>,
    "tpu.trace_start"() <{level = 10 : i32, message = "bqk,bkd->bqd"}> : () -> ()
    %cst_105 = arith.constant dense<0.000000e+00> : vector<2x8x8xf32>
    %257 = tpu.matmul %253, %241, %cst_105 {dimension_numbers = #tpu.dot_dimension_numbers<[2], [1], [1], [2], [0, 0, 0, 1, 1, 2], [0], [0]>} : vector<2x8x8xf32>, vector<2x8x8xf32>, vector<2x8x8xf32> -> vector<2x8x8xf32>
    "tpu.trace_stop"() : () -> ()
    %258 = vector.shape_cast %257 : vector<2x8x8xf32> to vector<16x8xf32>
    %259 = vector.extract_strided_slice %149 {offsets = [24, 0], sizes = [8, 32], strides = [1, 1]} : vector<32x32xf32> to vector<8x32xf32>
    %cst_106 = arith.constant dense<0.000000e+00> : vector<16x32xf32>
    %260 = tpu.matmul %258, %259, %cst_106 {dimension_numbers = #tpu.dot_dimension_numbers<[1], [0], [0], [1], [0, 0, 1, 1], [], []>} : vector<16x8xf32>, vector<8x32xf32>, vector<16x32xf32> -> vector<16x32xf32>
    %261 = arith.addf %233, %260 : vector<16x32xf32>
    %262 = arith.addf %142, %261 : vector<16x32xf32>
    %c0_107 = arith.constant 0 : index
    %c0_108 = arith.constant 0 : index
    %263 = vector.load %arg15[%c0_107, %c0_108] : memref<1x32xf32, #tpu.memory_space<vmem>>, vector<1x32xf32>
    %c0_109 = arith.constant 0 : index
    %c0_110 = arith.constant 0 : index
    %264 = vector.load %arg16[%c0_109, %c0_110] : memref<1x32xf32, #tpu.memory_space<vmem>>, vector<1x32xf32>
    %cst_111 = arith.constant dense<0.000000e+00> : vector<16xf32>
    %265 = vector.multi_reduction <add>, %262, %cst_111 [1] : vector<16x32xf32> to vector<16xf32>
    %266 = vector.shape_cast %265 : vector<16xf32> to vector<16x1xf32>
    %cst_112 = arith.constant 3.200000e+01 : f32
    %267 = vector.broadcast %cst_112 : f32 to vector<16x1xf32>
    %268 = arith.divf %266, %267 : vector<16x1xf32>
    %269 = vector.broadcast %268 : vector<16x1xf32> to vector<16x32xf32>
    %270 = arith.subf %262, %269 : vector<16x32xf32>
    %271 = arith.mulf %270, %270 : vector<16x32xf32>
    %cst_113 = arith.constant dense<0.000000e+00> : vector<16xf32>
    %272 = vector.multi_reduction <add>, %271, %cst_113 [1] : vector<16x32xf32> to vector<16xf32>
    %273 = vector.shape_cast %272 : vector<16xf32> to vector<16x1xf32>
    %cst_114 = arith.constant 3.200000e+01 : f32
    %274 = vector.broadcast %cst_114 : f32 to vector<16x1xf32>
    %275 = arith.divf %273, %274 : vector<16x1xf32>
    %cst_115 = arith.constant 9.99999974E-6 : f32
    %276 = vector.broadcast %cst_115 : f32 to vector<16x1xf32>
    %277 = arith.addf %275, %276 : vector<16x1xf32>
    %278 = math.rsqrt %277 : vector<16x1xf32>
    %279 = vector.broadcast %278 : vector<16x1xf32> to vector<16x32xf32>
    %280 = arith.mulf %270, %279 : vector<16x32xf32>
    %281 = vector.broadcast %263 : vector<1x32xf32> to vector<16x32xf32>
    %282 = arith.mulf %280, %281 : vector<16x32xf32>
    %283 = vector.broadcast %264 : vector<1x32xf32> to vector<16x32xf32>
    %284 = arith.addf %282, %283 : vector<16x32xf32>
    %c0_116 = arith.constant 0 : index
    %c0_117 = arith.constant 0 : index
    %285 = vector.load %arg9[%c0_116, %c0_117] : memref<32x32xf32, #tpu.memory_space<vmem>>, vector<32x32xf32>
    %cst_118 = arith.constant dense<0.000000e+00> : vector<16x32xf32>
    %286 = tpu.matmul %284, %285, %cst_118 {dimension_numbers = #tpu.dot_dimension_numbers<[1], [0], [0], [1], [0, 0, 1, 1], [], []>} : vector<16x32xf32>, vector<32x32xf32>, vector<16x32xf32> -> vector<16x32xf32>
    %c0_119 = arith.constant 0 : index
    %c0_120 = arith.constant 0 : index
    %287 = vector.load %arg10[%c0_119, %c0_120] : memref<1x32xf32, #tpu.memory_space<vmem>>, vector<1x32xf32>
    %288 = vector.broadcast %287 : vector<1x32xf32> to vector<16x32xf32>
    %289 = arith.addf %286, %288 : vector<16x32xf32>
    %cst_121 = arith.constant 0.000000e+00 : f32
    %290 = vector.broadcast %cst_121 : f32 to vector<16x32xf32>
    %291 = arith.maximumf %289, %290 : vector<16x32xf32>
    %c0_122 = arith.constant 0 : index
    %c0_123 = arith.constant 0 : index
    %292 = vector.load %arg11[%c0_122, %c0_123] : memref<32x32xf32, #tpu.memory_space<vmem>>, vector<32x32xf32>
    %cst_124 = arith.constant dense<0.000000e+00> : vector<16x32xf32>
    %293 = tpu.matmul %291, %292, %cst_124 {dimension_numbers = #tpu.dot_dimension_numbers<[1], [0], [0], [1], [0, 0, 1, 1], [], []>} : vector<16x32xf32>, vector<32x32xf32>, vector<16x32xf32> -> vector<16x32xf32>
    %c0_125 = arith.constant 0 : index
    %c0_126 = arith.constant 0 : index
    %294 = vector.load %arg12[%c0_125, %c0_126] : memref<1x32xf32, #tpu.memory_space<vmem>>, vector<1x32xf32>
    %295 = vector.broadcast %294 : vector<1x32xf32> to vector<16x32xf32>
    %296 = arith.addf %293, %295 : vector<16x32xf32>
    %297 = arith.addf %296, %284 : vector<16x32xf32>
    %c0_127 = arith.constant 0 : index
    %c0_128 = arith.constant 0 : index
    %298 = vector.load %arg15[%c0_127, %c0_128] : memref<1x32xf32, #tpu.memory_space<vmem>>, vector<1x32xf32>
    %c0_129 = arith.constant 0 : index
    %c0_130 = arith.constant 0 : index
    %299 = vector.load %arg16[%c0_129, %c0_130] : memref<1x32xf32, #tpu.memory_space<vmem>>, vector<1x32xf32>
    %cst_131 = arith.constant dense<0.000000e+00> : vector<16xf32>
    %300 = vector.multi_reduction <add>, %297, %cst_131 [1] : vector<16x32xf32> to vector<16xf32>
    %301 = vector.shape_cast %300 : vector<16xf32> to vector<16x1xf32>
    %cst_132 = arith.constant 3.200000e+01 : f32
    %302 = vector.broadcast %cst_132 : f32 to vector<16x1xf32>
    %303 = arith.divf %301, %302 : vector<16x1xf32>
    %304 = vector.broadcast %303 : vector<16x1xf32> to vector<16x32xf32>
    %305 = arith.subf %297, %304 : vector<16x32xf32>
    %306 = arith.mulf %305, %305 : vector<16x32xf32>
    %cst_133 = arith.constant dense<0.000000e+00> : vector<16xf32>
    %307 = vector.multi_reduction <add>, %306, %cst_133 [1] : vector<16x32xf32> to vector<16xf32>
    %308 = vector.shape_cast %307 : vector<16xf32> to vector<16x1xf32>
    %cst_134 = arith.constant 3.200000e+01 : f32
    %309 = vector.broadcast %cst_134 : f32 to vector<16x1xf32>
    %310 = arith.divf %308, %309 : vector<16x1xf32>
    %cst_135 = arith.constant 9.99999974E-6 : f32
    %311 = vector.broadcast %cst_135 : f32 to vector<16x1xf32>
    %312 = arith.addf %310, %311 : vector<16x1xf32>
    %313 = math.rsqrt %312 : vector<16x1xf32>
    %314 = vector.broadcast %313 : vector<16x1xf32> to vector<16x32xf32>
    %315 = arith.mulf %305, %314 : vector<16x32xf32>
    %316 = vector.broadcast %298 : vector<1x32xf32> to vector<16x32xf32>
    %317 = arith.mulf %315, %316 : vector<16x32xf32>
    %318 = vector.broadcast %299 : vector<1x32xf32> to vector<16x32xf32>
    %319 = arith.addf %317, %318 : vector<16x32xf32>
    %c0_136 = arith.constant 0 : index
    %c0_137 = arith.constant 0 : index
    %320 = vector.load %arg17[%c0_136, %c0_137] : memref<16x32xf32, #tpu.memory_space<vmem>>, vector<16x32xf32>
    tpu.vector_store %arg17[%c0_136, %c0_137], %319 {strides = array<i32>} : memref<16x32xf32, #tpu.memory_space<vmem>>, vector<16x32xf32>,
    return
  }
}

</mosaic_0001>

<bundles_post_ra>
// kernel: transformer_forward.9
= control target key start
LH: loop header
LB: loop body
LE: loop exit
PB: predicated region body
PF: predicated region fallthrough
CT: control target
= control target key end

     0   :  { %s143_s0 = inlined_call_operand.vmem [shape: f32[16,32], index: 0, kind: input, shape index: {}]   ;;  %s144_s1 = inlined_call_operand.vmem [shape: f32[32,40], index: 1, kind: input, shape index: {}]   ;;  %s145_s2 = inlined_call_operand.hbm [shape: f32[16,40], index: 2, kind: output, shape index: {}]  }
   0x1   :  { %v17_v0 = vld [vmem:[%s144_s1 + $0x18] sm:$0xff]  ;;  %v16_v1 = vld [vmem:[%s144_s1 + $0x10] sm:$0xff]  ;;  %v15_v2 = vld [vmem:[%s144_s1 + $0x8] sm:$0xff] }
   0x2   :  { %37 = vmatpush.msra.mxu0 %v17_v0  ;;  %71 = vmatpush.msra.mxu1 %v17_v0 }
   0x3   :  { %7 = vsyncpa [#allocation3], 0  ;;  %v14_v3 = vld [vmem:[%s144_s1] sm:$0xff]  ;;  %vm18_vm0 = vcmask 261120   ;;  %v13_v5 = vld [vmem:[%s143_s0 + $0x8] sm:$0xff]  ;;  %s104_s21 = smov [#allocation2]  }
   0x4   :  { %38 = vmatpush.msra.mxu0 %v16_v1  ;;  %72 = vmatpush.msra.mxu1 %v16_v1  ;;  %v12_v4 = vld [vmem:[%s143_s0] sm:$0xff]  ;;  %s55_s22 = sshll.u32 %s104_s21, 4  ;;  %s57_s1 = sshll.u32 %s145_s2, 4  ;;  %vm48_vm1 = vcmask 326656   ;;  %s56_s22 = int_to_ptr.vmem [resolvable:$true] %s55_s22  ;;  %s58_s1 = int_to_ptr.hbm [resolvable:$true] %s57_s1 }
   0x5   :  { %s105_s25 = smov 128   ;;  %s106_s26 = smov 8  }
   0x6   :  { %39 = vmatpush.msra.mxu0 %v15_v2  ;;  %73 = vmatpush.msra.mxu1 %v15_v2 }
   0x8   :  { %40 = vmatpush.msra.mxu0 %v14_v3  ;;  %74 = vmatpush.msra.mxu1 %v14_v3 }
   0x9   :  { %69 = vmatmul.msk.f32.vlgmr.msra.gmra.mxu0 %vm18_vm0, %v12_v4  ;;  %70 = vmatmul.msk.f32.vlgmr.msra.gmra.mxu1 %vm18_vm0, %v13_v5 }
  0x86   :  { %v42_v6 = vpop.f32.mrf.mxu0  ;;  %v45_v7 = vpop.f32.mrf.mxu1 }
  0x87   :  { %49 = vst.msk [vmem:[#allocation2] sm:$0xff] %vm48_vm1, %v42_v6 }
  0x88   :  { %50 = vst.msk [vmem:[#allocation2 + $0x8] sm:$0xff] %vm48_vm1, %v45_v7 }
  0x89   :  { %63 = dma.vmem_to_hbm [thread:$0]  %s56_s22, 256, %s58_s1, [#allocation3], %s105_s25, %s105_s25, %s106_s26  }
  0x8a   :  { %102 = dma.done.wait [#allocation3], 256  }
  0x8b   :  { %103 = vsyncadd [#allocation3], 4294967040 }
  0x8c   :  { %68 = vsyncpa [#allocation3], 1 }

// kernel: transformer_forward.5
= control target key start
LH: loop header
LB: loop body
LE: loop exit
PB: predicated region body
PF: predicated region fallthrough
CT: control target
= control target key end

     0   :  { %vm47_vm0 = vcmask 261120   ;;  %s1030_s15 = smov 96   ;;  %s1031_s16 = smov 120   ;;  %vm88_vm1 = vcmask 64512   ;;  %s1334_s2 = inlined_call_operand.vmem [shape: f32[32,96], index: 2, kind: input, shape index: {}]   ;;  %s1335_s0 = inlined_call_operand.vmem [shape: f32[16,32], index: 0, kind: input, shape index: {}]   ;;  %s1336_s1 = inlined_call_operand.vmem [shape: f32[2,8,8], index: 1, kind: input, shape index: {}]   ;;  %s1337_s3 = inlined_call_operand.vmem [shape: f32[32,32], index: 3, kind: input, shape index: {}]   ;;  %s1338_s8 = inlined_call_operand.vmem [shape: f32[1,32], index: 8, kind: input, shape index: {}]   ;;  %s1339_s9 = inlined_call_operand.vmem [shape: f32[1,32], index: 9, kind: input, shape index: {}]   ;;  %s1340_s5 = inlined_call_operand.vmem [shape: f32[1,32], index: 5, kind: input, shape index: {}]   ;;  %s1341_s4 = inlined_call_operand.vmem [shape: f32[32,32], index: 4, kind: input, shape index: {}]   ;;  %s1342_s6 = inlined_call_operand.vmem [shape: f32[32,32], index: 6, kind: input, shape index: {}]   ;;  %s1343_s7 = inlined_call_operand.vmem [shape: f32[1,32], index: 7, kind: input, shape index: {}]   ;;  %s1344_s10 = inlined_call_operand.vmem [shape: f32[1,32], index: 10, kind: input, shape index: {}]   ;;  %s1345_s11 = inlined_call_operand.vmem [shape: f32[1,32], index: 11, kind: input, shape index: {}]   ;;  %s1346_s12 = inlined_call_operand.vmem [shape: f32[16,32], index: 12, kind: output, shape index: {}]  }
   0x1   :  { %v46_v0 = vld [vmem:[%s1334_s2 + $0x18] sm:$0xff]  ;;  %v45_v1 = vld [vmem:[%s1334_s2 + $0x10] sm:$0xff]  ;;  %v44_v2 = vld [vmem:[%s1334_s2 + $0x8] sm:$0xff]  ;;  %s1032_s20 = smov 64   ;;  %s1033_s21 = smov 80  }
   0x2   :  { %66 = vmatpush.msra.mxu0 %v46_v0  ;;  %v43_v3 = vld [vmem:[%s1334_s2] sm:$0xff]  ;;  %v1128_v5 = vld [vmem:[%s1335_s0 + $0x8] sm:$0xff]  ;;  %s1029_s2 = smov 88   ;;  %s1035_s22 = smov 112  }
   0x3   :  { %v1121_v4 = vld [vmem:[%s1335_s0] sm:$0xff]  ;;  %v1169_v22 = vld [vmem:[%s1336_s1 + $0x8] sm:$0xff]  ;;  %s1036_s23 = smov 48   ;;  %s1037_s24 = smov 72  }
   0x4   :  { %67 = vmatpush.msra.mxu0 %v45_v1  ;;  %v1160_v15 = vld [vmem:[%s1336_s1] sm:$0xff]  ;;  %s1034_s1 = smov 56   ;;  %s1038_s25 = smov 104   ;;  %v78_v60 = vld [vmem:[%s1337_s3 + $0x8] sm:$0xff] }
   0x5   :  { %v77_v59 = vld [vmem:[%s1337_s3] sm:$0xff]  ;;  %s1039_s14 = smov 40  }
   0x6   :  { %68 = vmatpush.msra.mxu0 %v44_v2 }
   0x8   :  { %69 = vmatpush.msra.mxu0 %v43_v3 }
   0x9   :  { %931 = vmatmul.msk.f32.vlgmr.msra.gmra.mxu0 %vm47_vm0, %v1121_v4 }
  0x11   :  { %932 = vmatmul.msk.f32.gmra.mxu0 %vm47_vm0, %v1128_v5 }
  0x86   :  { %v1132_v6 = vpop.f32.mrf.mxu0 }
  0x87   :  { %218 = vrot.lane.b32.xlu1 %v1132_v6, %s1029_s2  ;;  %86 = vrot.lane.b32.xlu0 %v1132_v6, %s1030_s15  ;;  %v1137_v7 = vmul.f32 0.35355338, %v1132_v6 }
  0x8e   :  { %v1139_v8 = vpop.f32.mrf.mxu0 }
  0x8f   :  { %216 = vrot.lane.b32.xlu1 %v1137_v7, %s1031_s16  ;;  %115 = vrot.lane.b32.xlu0 %v1139_v8, %s1030_s15  ;;  %v1152_v13 = vmul.f32 0.35355338, %v1139_v8 }
  0x97   :  { %246 = vrot.lane.b32.xlu1 %v1139_v8, %s1029_s2 }
  0xf9   :  { %v219_v9 = vpop.permute.xlu1 %218  ;;  %v87_v10 = vpop.permute.xlu0 %86 }
  0xfa   :  { %933 = vmatpush.xpose.msk.msrb.mxu0 %vm88_vm1, %v87_v10  ;;  %939 = vmatpush.xpose.msk.msra.mxu1 %vm88_vm1, %v219_v9 }
  0xfd   :  { %934 = vmatmul.msk.f32.vlgmr.msrb.gmra.mxu0 %vm88_vm1, %v1137_v7 }
  0xfe   :  { %396 = vmatpush.msra.mxu0 %v77_v59 }
 0x101   :  { %v217_v11 = vpop.permute.xlu1 %216  ;;  %v116_v12 = vpop.permute.xlu0 %115 }
 0x102   :  { %935 = vmatpush.xpose.msk.msra.mxu2 %vm88_vm1, %v116_v12  ;;  %940 = vmatmul.msk.f32.vlgmr.msra.gmra.mxu1 %vm88_vm1, %v217_v11 }
 0x105   :  { %936 = vmatmul.msk.f32.vlgmr.msra.gmra.mxu2 %vm88_vm1, %v1152_v13 }
 0x109   :  { %v247_v14 = vpop.permute.xlu1 %246 }
 0x10a   :  { %941 = vmatpush.xpose.msk.msrb.mxu2 %vm88_vm1, %v247_v14 }
 0x10e   :  { %367 = vmatpush.msra.mxu2 %v78_v60 }
 0x17a   :  { %v111_v16 = vpop.f32.mrf.mxu0 }
 0x17b   :  { %v112_v17 = vadd.f32 %v111_v16, %v1160_v15 }
 0x17d   :  { %v142_v18 = vsel %vm88_vm1, %v112_v17, -inf }
 0x17e   :  { %143 = vmax.xlane.f32.xlu2 %v142_v18 }
 0x17f   :  { %v241_v19 = vpop.f32.mrf.mxu1 }
 0x180   :  { %v242_v20 = vadd.f32 %v241_v19, %v1160_v15 }
 0x182   :  { %v272_v21 = vsel %vm88_vm1, %v242_v20, -inf }
 0x183   :  { %273 = vmax.xlane.f32.xlu0 %v272_v21 }
 0x188   :  { %v139_v23 = vpop.f32.mrf.mxu2 }
 0x189   :  { %v140_v24 = vadd.f32 %v139_v23, %v1169_v22 }
 0x18b   :  { %v145_v25 = vsel %vm88_vm1, %v140_v24, -inf }
 0x18c   :  { %146 = vmax.xlane.f32.xlu2 %v145_v25 }
 0x197   :  { %190 = vrot.lane.b32.xlu0 %v1139_v8, %s1032_s20 }
 0x19f   :  { %244 = vrot.lane.b32.xlu0 %v1152_v13, %s1031_s16 }
 0x1a4   :  { %164 = vrot.lane.b32.xlu2 %v1132_v6, %s1032_s20 }
 0x1a7   :  { %406 = vrot.lane.b32.xlu0 %v1132_v6, %s1033_s21 }
 0x1af   :  { %434 = vrot.lane.b32.xlu0 %v1139_v8, %s1033_s21 }
 0x1f1   :  { %v144_v26 = vpop.xlane.xlu2 %143 }
 0x1f2   :  { %v148_v27 = vsub.f32 %v112_v17, %v144_v26 }
 0x1f4   :  { %v150_v28 = vmul.f32 1.442695, %v148_v27 }
 0x1f6   :  { %987 = vpow2.f32 %v150_v28  ;;  %v274_v29 = vpop.xlane.xlu0 %273 }
 0x1f7   :  { %v278_v30 = vsub.f32 %v242_v20, %v274_v29 }
 0x1f9   :  { %v280_v31 = vmul.f32 1.442695, %v278_v30 }
 0x1fb   :  { %989 = vpow2.f32 %v280_v31 }
 0x1fc   :  { %v988_v32 = vpop.eup %987 }
 0x1fd   :  { %v154_v33 = vsel %vm88_vm1, %v988_v32, 0.0 }
 0x1fe   :  { %155 = vadd.xlane.f32.xlu1 %v154_v33 }
 0x1ff   :  { %v147_v34 = vpop.xlane.xlu2 %146 }
 0x200   :  { %v149_v35 = vsub.f32 %v140_v24, %v147_v34 }
 0x201   :  { %v990_v36 = vpop.eup %989 }
 0x202   :  { %v152_v37 = vmul.f32 1.442695, %v149_v35  ;;  %v284_v38 = vsel %vm88_vm1, %v990_v36, 0.0 }
 0x203   :  { %285 = vadd.xlane.f32.xlu2 %v284_v38 }
 0x204   :  { %991 = vpow2.f32 %v152_v37 }
 0x207   :  { %v165_v39 = vpop.permute.xlu2 %164 }
 0x208   :  { %185 = vmatpush.msra.mxu3 %v165_v39 }
 0x209   :  { %v191_v40 = vpop.permute.xlu0 %190 }
 0x20a   :  { %v992_v41 = vpop.eup %991  ;;  %211 = vmatpush.msrb.mxu3 %v191_v40 }
 0x20b   :  { %v157_v42 = vsel %vm88_vm1, %v992_v41, 0.0 }
 0x20c   :  { %158 = vadd.xlane.f32.xlu2 %v157_v42 }
 0x211   :  { %v245_v43 = vpop.permute.xlu0 %244 }
 0x212   :  { %942 = vmatmul.msk.f32.vlgmr.msrb.gmra.mxu2 %vm88_vm1, %v245_v43 }
 0x217   :  { %294 = vrot.lane.b32.xlu1 %v1132_v6, %s1034_s1 }
 0x219   :  { %v407_v52 = vpop.permute.xlu0 %406 }
 0x221   :  { %v435_v16 = vpop.permute.xlu0 %434 }
 0x224   :  { %404 = vrot.lane.b32.xlu2 %v1137_v7, %s1035_s22 }
 0x271   :  { %v156_v44 = vpop.xlane.xlu1 %155 }
 0x272   :  { %993 = vrcp.f32 %v156_v44 }
 0x276   :  { %v286_v45 = vpop.xlane.xlu2 %285 }
 0x278   :  { %v994_v46 = vpop.eup %993 }
 0x279   :  { %v162_v47 = vmul.f32 %v994_v46, %v988_v32 }
 0x27b   :  { %937 = vmatmul.msk.f32.vlgmr.msra.gmra.mxu3 %vm88_vm1, %v162_v47 }
 0x27f   :  { %v159_v48 = vpop.xlane.xlu2 %158 }
 0x280   :  { %995 = vrcp.f32 %v159_v48 }
 0x281   :  { %997 = vrcp.f32 %v286_v45 }
 0x286   :  { %v996_v49 = vpop.eup %995 }
 0x287   :  { %v163_v50 = vmul.f32 %v996_v49, %v992_v41  ;;  %v998_v53 = vpop.eup %997  ;;  %v405_v57 = vpop.permute.xlu2 %404 }
 0x288   :  { %v292_v54 = vmul.f32 %v998_v53, %v990_v36 }
 0x289   :  { %v295_v51 = vpop.permute.xlu1 %294  ;;  %938 = vmatmul.msk.f32.vlgmr.msrb.gmra.mxu3 %vm88_vm1, %v163_v50 }
 0x28a   :  { %315 = vmatpush.msra.mxu3 %v295_v51 }
 0x28c   :  { %949 = vmatpush.xpose.msk.msrb.mxu3 %vm88_vm1, %v407_v52 }
 0x291   :  { %943 = vmatmul.msk.f32.vlgmr.msra.gmra.mxu3 %vm88_vm1, %v292_v54 }
 0x295   :  { %v269_v55 = vpop.f32.mrf.mxu2 }
 0x296   :  { %v270_v56 = vadd.f32 %v269_v55, %v1169_v22 }
 0x298   :  { %v275_v58 = vsel %vm88_vm1, %v270_v56, -inf }
 0x299   :  { %276 = vmax.xlane.f32.xlu1 %v275_v58  ;;  %950 = vmatmul.msk.f32.vlgmr.msrb.gmra.mxu3 %vm88_vm1, %v405_v57 }
 0x2b2   :  { %320 = vrot.lane.b32.xlu1 %v1139_v8, %s1034_s1 }
 0x2ba   :  { %482 = vrot.lane.b32.xlu1 %v1132_v6, %s1036_s23 }
 0x2c2   :  { %595 = vrot.lane.b32.xlu1 %v1139_v8, %s1037_s24 }
 0x2ca   :  { %593 = vrot.lane.b32.xlu1 %v1152_v13, %s1038_s25 }
 0x2fe   :  { %v187_v61 = vpop.f32.mrf.mxu3 }
 0x2ff   :  { %947 = vmatmul.msk.f32.vlgmr.msra.gmra.mxu0 %vm88_vm1, %v187_v61 }
 0x30c   :  { %v277_v62 = vpop.xlane.xlu1 %276  ;;  %v213_v63 = vpop.f32.mrf.mxu3 }
 0x30d   :  { %v279_v0 = vsub.f32 %v270_v56, %v277_v62  ;;  %948 = vmatmul.msk.f32.gmra.mxu0 %vm88_vm1, %v213_v63 }
 0x30f   :  { %v282_v1 = vmul.f32 1.442695, %v279_v0 }
 0x311   :  { %999 = vpow2.f32 %v282_v1 }
 0x314   :  { %v317_v2 = vpop.f32.mrf.mxu3 }
 0x315   :  { %945 = vmatmul.msk.f32.vlgmr.msra.gmra.mxu2 %vm88_vm1, %v317_v2 }
 0x317   :  { %v1000_v3 = vpop.eup %999 }
 0x318   :  { %v287_v9 = vsel %vm88_vm1, %v1000_v3, 0.0 }
 0x319   :  { %288 = vadd.xlane.f32.xlu2 %v287_v9 }
 0x31c   :  { %v429_v10 = vpop.f32.mrf.mxu3 }
 0x31d   :  { %v430_v11 = vadd.f32 %v429_v10, %v1160_v15 }
 0x31f   :  { %v460_v12 = vsel %vm88_vm1, %v430_v11, -inf }
 0x320   :  { %461 = vmax.xlane.f32.xlu0 %v460_v12 }
 0x324   :  { %v321_v14 = vpop.permute.xlu1 %320 }
 0x325   :  { %341 = vmatpush.msrb.mxu1 %v321_v14 }
 0x327   :  { %951 = vmatpush.xpose.msk.msra.mxu1 %vm88_vm1, %v435_v16 }
 0x32c   :  { %v483_v17 = vpop.permute.xlu1 %482 }
 0x32d   :  { %503 = vmatpush.msra.mxu3 %v483_v17 }
 0x331   :  { %432 = vrot.lane.b32.xlu2 %v1152_v13, %s1035_s22 }
 0x334   :  { %v596_v18 = vpop.permute.xlu1 %595  ;;  %567 = vrot.lane.b32.xlu0 %v1132_v6, %s1037_s24 }
 0x335   :  { %959 = vmatpush.xpose.msk.msrb.mxu3 %vm88_vm1, %v596_v18 }
 0x33c   :  { %v594_v36 = vpop.permute.xlu1 %593 }
 0x37c   :  { %v1233_v40 = vpop.f32.mrf.mxu0 }
 0x38a   :  { %v1235_v42 = vpop.f32.mrf.mxu0 }
 0x38c   :  { %v289_v19 = vpop.xlane.xlu2 %288 }
 0x38d   :  { %1001 = vrcp.f32 %v289_v19 }
 0x393   :  { %v1002_v20 = vpop.eup %1001  ;;  %v462_v21 = vpop.xlane.xlu0 %461 }
 0x394   :  { %v466_v23 = vsub.f32 %v430_v11, %v462_v21  ;;  %v293_v24 = vmul.f32 %v1002_v20, %v1000_v3  ;;  %v433_v26 = vpop.permute.xlu2 %432 }
 0x396   :  { %v468_v25 = vmul.f32 1.442695, %v466_v23  ;;  %944 = vmatmul.msk.f32.vlgmr.msrb.gmra.mxu1 %vm88_vm1, %v293_v24 }
 0x398   :  { %1003 = vpow2.f32 %v468_v25  ;;  %v369_v17 = vpop.f32.mrf.mxu2 }
 0x399   :  { %v399_v20 = vadd.f32 %v1233_v40, %v369_v17 }
 0x39e   :  { %v1004_v27 = vpop.eup %1003  ;;  %952 = vmatmul.msk.f32.vlgmr.msra.gmra.mxu1 %vm88_vm1, %v433_v26 }
 0x39f   :  { %v472_v13 = vsel %vm88_vm1, %v1004_v27, 0.0 }
 0x3a0   :  { %473 = vadd.xlane.f32.xlu0 %v472_v13 }
 0x3a6   :  { %v568_v28 = vpop.permute.xlu0 %567 }
 0x3a7   :  { %957 = vmatpush.xpose.msk.msrb.mxu0 %vm88_vm1, %v568_v28 }
 0x3b4   :  { %565 = vrot.lane.b32.xlu0 %v1137_v7, %s1038_s25  ;;  %v79_v7 = vld [vmem:[%s1337_s3 + $0x10] sm:$0xff] }
 0x3b5   :  { %555 = vmatpush.msrb.mxu2 %v79_v7 }
 0x413   :  { %v474_v29 = vpop.xlane.xlu0 %473  ;;  %v343_v30 = vpop.f32.mrf.mxu1 }
 0x414   :  { %1005 = vrcp.f32 %v474_v29  ;;  %946 = vmatmul.msk.f32.gmra.mxu2 %vm88_vm1, %v343_v30 }
 0x41a   :  { %v1006_v31 = vpop.eup %1005 }
 0x41b   :  { %v480_v32 = vmul.f32 %v1006_v31, %v1004_v27  ;;  %v457_v33 = vpop.f32.mrf.mxu1 }
 0x41c   :  { %v458_v34 = vadd.f32 %v457_v33, %v1169_v22  ;;  %v1040_v33 = vmov 32.0  }
 0x41d   :  { %953 = vmatmul.msk.f32.vlgmr.msra.gmra.mxu3 %vm88_vm1, %v480_v32 }
 0x41e   :  { %v463_v35 = vsel %vm88_vm1, %v458_v34, -inf }
 0x41f   :  { %464 = vmax.xlane.f32.xlu2 %v463_v35 }
 0x425   :  { %960 = vmatmul.msk.f32.vlgmr.msrb.gmra.mxu3 %vm88_vm1, %v594_v36 }
 0x426   :  { %v566_v37 = vpop.permute.xlu0 %565 }
 0x427   :  { %958 = vmatmul.msk.f32.vlgmr.msrb.gmra.mxu0 %vm88_vm1, %v566_v37 }
 0x492   :  { %v465_v38 = vpop.xlane.xlu2 %464 }
 0x493   :  { %v467_v39 = vsub.f32 %v458_v34, %v465_v38 }
 0x495   :  { %v470_v41 = vmul.f32 1.442695, %v467_v39 }
 0x497   :  { %1007 = vpow2.f32 %v470_v41  ;;  %v372_v18 = vpop.f32.mrf.mxu2 }
 0x498   :  { %v402_v27 = vadd.f32 %v1235_v42, %v372_v18 }
 0x49d   :  { %v1008_v43 = vpop.eup %1007 }
 0x49e   :  { %v475_v44 = vsel %vm88_vm1, %v1008_v43, 0.0 }
 0x49f   :  { %476 = vadd.xlane.f32.xlu2 %v475_v44 }
 0x4a0   :  { %v505_v45 = vpop.f32.mrf.mxu3 }
 0x4a1   :  { %955 = vmatmul.msk.f32.vlgmr.msrb.gmra.mxu2 %vm88_vm1, %v505_v45 }
 0x4a4   :  { %v590_v46 = vpop.f32.mrf.mxu0 }
 0x4a5   :  { %v591_v47 = vadd.f32 %v590_v46, %v1160_v15 }
 0x4a7   :  { %v621_v48 = vsel %vm88_vm1, %v591_v47, -inf }
 0x4a8   :  { %v618_v49 = vpop.f32.mrf.mxu3  ;;  %622 = vmax.xlane.f32.xlu0 %v621_v48  ;;  %v793_v48 = vld [vmem:[%s1341_s4 + $0x10] sm:$0xff] }
 0x4a9   :  { %v619_v50 = vadd.f32 %v618_v49, %v1169_v22  ;;  %v792_v49 = vld [vmem:[%s1341_s4 + $0x8] sm:$0xff] }
 0x4ab   :  { %v624_v51 = vsel %vm88_vm1, %v619_v50, -inf }
 0x4ac   :  { %625 = vmax.xlane.f32.xlu1 %v624_v51 }
 0x4c5   :  { %508 = vrot.lane.b32.xlu1 %v1139_v8, %s1036_s23 }
 0x512   :  { %v477_v22 = vpop.xlane.xlu2 %476 }
 0x51b   :  { %v623_v52 = vpop.xlane.xlu0 %622 }
 0x51c   :  { %v627_v53 = vsub.f32 %v591_v47, %v623_v52  ;;  %v794_v47 = vld [vmem:[%s1341_s4 + $0x18] sm:$0xff] }
 0x51e   :  { %v629_v54 = vmul.f32 1.442695, %v627_v53 }
 0x51f   :  { %v626_v55 = vpop.xlane.xlu1 %625 }
 0x520   :  { %1009 = vpow2.f32 %v629_v54  ;;  %v628_v56 = vsub.f32 %v619_v50, %v626_v55  ;;  %v791_v50 = vld [vmem:[%s1341_s4] sm:$0xff]  ;;  %v833_v54 = vld [vmem:[%s1342_s6 + $0x18] sm:$0xff] }
 0x521   :  { %856 = vmatpush.msra.mxu2 %v833_v54 }
 0x522   :  { %v631_v57 = vmul.f32 1.442695, %v628_v56 }
 0x524   :  { %1011 = vpow2.f32 %v631_v57  ;;  %v557_v19 = vpop.f32.mrf.mxu2 }
 0x525   :  { %1013 = vrcp.f32 %v477_v22  ;;  %v563_v21 = vadd.f32 %v557_v19, %v399_v20  ;;  %v832_v19 = vld [vmem:[%s1342_s6 + $0x10] sm:$0xff]  ;;  %v831_v20 = vld [vmem:[%s1342_s6 + $0x8] sm:$0xff] }
 0x526   :  { %v1010_v15 = vpop.eup %1009  ;;  %857 = vmatpush.msra.mxu2 %v832_v19 }
 0x527   :  { %v633_v58 = vsel %vm88_vm1, %v1010_v15, 0.0 }
 0x528   :  { %634 = vadd.xlane.f32.xlu0 %v633_v58  ;;  %858 = vmatpush.msra.mxu2 %v831_v20 }
 0x52a   :  { %v1012_v59 = vpop.eup %1011 }
 0x52b   :  { %v636_v60 = vsel %vm88_vm1, %v1012_v59, 0.0  ;;  %v1014_v61 = vpop.eup %1013 }
 0x52c   :  { %637 = vadd.xlane.f32.xlu2 %v636_v60  ;;  %v481_v62 = vmul.f32 %v1014_v61, %v1008_v43 }
 0x537   :  { %v509_v63 = vpop.permute.xlu1 %508 }
 0x538   :  { %529 = vmatpush.msrb.mxu1 %v509_v63 }
 0x539   :  { %954 = vmatmul.msk.f32.vlgmr.msrb.gmra.mxu1 %vm88_vm1, %v481_v62 }
 0x53c   :  { %643 = vrot.lane.b32.xlu0 %v1132_v6, %s1039_s14  ;;  %v80_v6 = vld [vmem:[%s1337_s3 + $0x18] sm:$0xff] }
 0x53d   :  { %716 = vmatpush.msra.mxu3 %v80_v6 }
 0x544   :  { %669 = vrot.lane.b32.xlu2 %v1139_v8, %s1039_s14 }
 0x59b   :  { %v635_v1 = vpop.xlane.xlu0 %634 }
 0x59f   :  { %v638_v0 = vpop.xlane.xlu2 %637 }
 0x5a0   :  { %1015 = vrcp.f32 %v638_v0  ;;  %v981_v0 = vld [vmem:[%s1338_s8] ss:$0 sm:$0xff] }
 0x5a1   :  { %1017 = vrcp.f32 %v635_v1 }
 0x5a2   :  { %1019 = vrcp.f32 %v1040_v33 }
 0x5a6   :  { %v1016_v2 = vpop.eup %1015 }
 0x5a7   :  { %v642_v3 = vmul.f32 %v1016_v2, %v1012_v59  ;;  %v670_v9 = vpop.permute.xlu2 %669  ;;  %v1018_v10 = vpop.eup %1017 }
 0x5a8   :  { %690 = vmatpush.msra.mxu0 %v670_v9  ;;  %v641_v11 = vmul.f32 %v1018_v10, %v1010_v15  ;;  %v1020_v34 = vpop.eup %1019  ;;  %v982_v9 = vld [vmem:[%s1339_s9] ss:$0 sm:$0xff] }
 0x5a9   :  { %962 = vmatmul.msk.f32.vlgmr.msra.gmra.mxu0 %vm88_vm1, %v642_v3  ;;  %v737_v35 = vmul.f32 32.0, %v1020_v34  ;;  %vm741_vm2 = vweird.f32 %v1020_v34 }
 0x5ab   :  { %v738_v36 = vsub.f32 1.0, %v737_v35 }
 0x5ae   :  { %v644_v12 = vpop.permute.xlu0 %643 }
 0x5af   :  { %664 = vmatpush.msra.mxu1 %v644_v12 }
 0x5b0   :  { %961 = vmatmul.msk.f32.vlgmr.msra.gmra.mxu1 %vm88_vm1, %v641_v11 }
 0x5b1   :  { %817 = vmatpush.msrb.mxu1 %v794_v47 }
 0x5b3   :  { %818 = vmatpush.msrb.mxu1 %v793_v48 }
 0x5b5   :  { %819 = vmatpush.msrb.mxu1 %v792_v49 }
 0x5b6   :  { %v531_v14 = vpop.f32.mrf.mxu1 }
 0x5b7   :  { %956 = vmatmul.msk.f32.gmra.mxu2 %vm88_vm1, %v531_v14  ;;  %820 = vmatpush.msrb.mxu1 %v791_v50 }
 0x626   :  { %v692_v16 = vpop.f32.mrf.mxu0 }
 0x62d   :  { %v666_v8 = vpop.f32.mrf.mxu1 }
 0x62e   :  { %963 = vmatmul.msk.f32.vlgmr.msra.gmra.mxu3 %vm88_vm1, %v666_v8 }
 0x636   :  { %964 = vmatmul.msk.f32.gmra.mxu3 %vm88_vm1, %v692_v16 }
 0x63a   :  { %v560_v26 = vpop.f32.mrf.mxu2 }
 0x63b   :  { %v564_v28 = vadd.f32 %v560_v26, %v402_v27 }
 0x6b1   :  { %v718_v23 = vpop.f32.mrf.mxu3 }
 0x6b2   :  { %v724_v24 = vadd.f32 %v718_v23, %v563_v21  ;;  %v830_v21 = vld [vmem:[%s1342_s6] sm:$0xff] }
 0x6b3   :  { %859 = vmatpush.msra.mxu2 %v830_v21  ;;  %v983_v23 = vld [vmem:[%s1340_s5] ss:$0 sm:$0xff] }
 0x6b4   :  { %v726_v25 = vadd.f32 %v724_v24, %v1121_v4  ;;  %v739_v4 = vmul.f32 %v1020_v34, %v738_v36 }
 0x6b6   :  { %v730_v13 = vsel %vm47_vm0, %v726_v25, 0.0  ;;  %v740_v37 = vadd.f32 %v1020_v34, %v739_v4 }
 0x6b7   :  { %731 = vadd.xlane.f32.xlu1 %v730_v13 }
 0x6b8   :  { %v1264_v7 = vsel %vm741_vm2, %v1020_v34, %v740_v37 }
 0x6b9   :  { %v721_v29 = vpop.f32.mrf.mxu3 }
 0x6ba   :  { %v725_v30 = vadd.f32 %v721_v29, %v564_v28  ;;  %v984_v29 = vld [vmem:[%s1343_s7] ss:$0 sm:$0xff] }
 0x6bc   :  { %v727_v31 = vadd.f32 %v725_v30, %v1128_v5 }
 0x6be   :  { %v733_v32 = vsel %vm47_vm0, %v727_v31, 0.0 }
 0x6bf   :  { %734 = vadd.xlane.f32.xlu0 %v733_v32 }
 0x72a   :  { %v732_v38 = vpop.xlane.xlu1 %731 }
 0x72b   :  { %v743_v39 = vmul.f32 %v1264_v7, %v732_v38 }
 0x72d   :  { %v745_v40 = vsub.f32 %v726_v25, %v743_v39 }
 0x72f   :  { %v747_v41 = vmul.f32 %v745_v40, %v745_v40 }
 0x731   :  { %v749_v5 = vsel %vm47_vm0, %v747_v41, 0.0 }
 0x732   :  { %750 = vadd.xlane.f32.xlu2 %v749_v5  ;;  %v735_v42 = vpop.xlane.xlu0 %734 }
 0x733   :  { %v744_v43 = vmul.f32 %v1264_v7, %v735_v42 }
 0x735   :  { %v746_v44 = vsub.f32 %v727_v31, %v744_v43 }
 0x737   :  { %v748_v45 = vmul.f32 %v746_v44, %v746_v44 }
 0x739   :  { %v752_v46 = vsel %vm47_vm0, %v748_v45, 0.0 }
 0x73a   :  { %753 = vadd.xlane.f32.xlu1 %v752_v46 }
 0x7a5   :  { %v751_v51 = vpop.xlane.xlu2 %750 }
 0x7a6   :  { %v755_v52 = vmul.f32 %v751_v51, %v1264_v7 }
 0x7a8   :  { %v757_v53 = vadd.f32 1e-05, %v755_v52 }
 0x7aa   :  { %1021 = vrsqrt.f32 %v757_v53  ;;  %vm765_vm4 = vweird.f32 %v757_v53 }
 0x7ad   :  { %v754_v55 = vpop.xlane.xlu1 %753 }
 0x7ae   :  { %v756_v56 = vmul.f32 %v754_v55, %v1264_v7 }
 0x7b0   :  { %v1022_v57 = vpop.eup %1021  ;;  %v758_v15 = vadd.f32 1e-05, %v756_v56 }
 0x7b1   :  { %v760_v58 = vmul.f32 %v1022_v57, %v757_v53  ;;  %vm766_vm3 = vweird.f32 %v1022_v57 }
 0x7b2   :  { %1023 = vrsqrt.f32 %v758_v15  ;;  %vm767_vm5 = vmor %vm765_vm4, %vm766_vm3  ;;  %vm775_vm7 = vweird.f32 %v758_v15 }
 0x7b3   :  { %v761_v59 = vmul.f32 %v1022_v57, %v760_v58 }
 0x7b5   :  { %v762_v22 = vmul.f32 0.5, %v761_v59  ;;  %v985_v59 = vld [vmem:[%s1344_s10] ss:$0 sm:$0xff] }
 0x7b7   :  { %v763_v60 = vsub.f32 1.5, %v762_v22 }
 0x7b8   :  { %v1024_v61 = vpop.eup %1023 }
 0x7b9   :  { %v764_v62 = vmul.f32 %v1022_v57, %v763_v60  ;;  %v770_v63 = vmul.f32 %v1024_v61, %v758_v15  ;;  %vm776_vm6 = vweird.f32 %v1024_v61 }
 0x7ba   :  { %vm777_vm8 = vmor %vm775_vm7, %vm776_vm6 }
 0x7bb   :  { %v768_v1 = vsel %vm767_vm5, %v1022_v57, %v764_v62  ;;  %v771_v2 = vmul.f32 %v1024_v61, %v770_v63 }
 0x7bc   :  { %v779_v3 = vmul.f32 %v768_v1, %v745_v40 }
 0x7bd   :  { %v772_v10 = vmul.f32 0.5, %v771_v2 }
 0x7be   :  { %v784_v11 = vmul.f32 %v981_v0, %v779_v3 }
 0x7bf   :  { %v773_v12 = vsub.f32 1.5, %v772_v10 }
 0x7c0   :  { %v789_v14 = vadd.f32 %v982_v9, %v784_v11 }
 0x7c1   :  { %v774_v6 = vmul.f32 %v1024_v61, %v773_v12 }
 0x7c2   :  { %965 = vmatmul.msk.f32.vlgmr.msrb.gmra.mxu1 %vm47_vm0, %v789_v14 }
 0x7c3   :  { %v778_v8 = vsel %vm777_vm8, %v1024_v61, %v774_v6 }
 0x7c4   :  { %v780_v16 = vmul.f32 %v778_v8, %v746_v44 }
 0x7c6   :  { %v785_v17 = vmul.f32 %v981_v0, %v780_v16 }
 0x7c8   :  { %v790_v18 = vadd.f32 %v982_v9, %v785_v17 }
 0x7ca   :  { %966 = vmatmul.msk.f32.gmra.mxu1 %vm47_vm0, %v790_v18 }
 0x83f   :  { %v822_v24 = vpop.f32.mrf.mxu1 }
 0x840   :  { %v823_v25 = vadd.f32 %v983_v23, %v822_v24 }
 0x842   :  { %v828_v26 = vmax.f32 %v823_v25, 0.0 }
 0x844   :  { %967 = vmatmul.msk.f32.vlgmr.msra.gmra.mxu2 %vm47_vm0, %v828_v26 }
 0x847   :  { %v825_v27 = vpop.f32.mrf.mxu1 }
 0x848   :  { %v826_v13 = vadd.f32 %v983_v23, %v825_v27 }
 0x84a   :  { %v829_v28 = vmax.f32 %v826_v13, 0.0 }
 0x84c   :  { %968 = vmatmul.msk.f32.gmra.mxu2 %vm47_vm0, %v829_v28 }
 0x8c7   :  { %v861_v30 = vpop.f32.mrf.mxu2 }
 0x8c8   :  { %v862_v31 = vadd.f32 %v984_v29, %v861_v30 }
 0x8ca   :  { %v867_v32 = vadd.f32 %v862_v31, %v789_v14 }
 0x8cc   :  { %v871_v33 = vsel %vm47_vm0, %v867_v32, 0.0 }
 0x8cd   :  { %872 = vadd.xlane.f32.xlu0 %v871_v33 }
 0x8cf   :  { %v864_v34 = vpop.f32.mrf.mxu2 }
 0x8d0   :  { %v865_v35 = vadd.f32 %v984_v29, %v864_v34 }
 0x8d2   :  { %v868_v36 = vadd.f32 %v865_v35, %v790_v18 }
 0x8d4   :  { %v874_v4 = vsel %vm47_vm0, %v868_v36, 0.0 }
 0x8d5   :  { %875 = vadd.xlane.f32.xlu1 %v874_v4 }
 0x940   :  { %v873_v37 = vpop.xlane.xlu0 %872 }
 0x941   :  { %v877_v38 = vmul.f32 %v873_v37, %v1264_v7 }
 0x943   :  { %v879_v39 = vsub.f32 %v867_v32, %v877_v38 }
 0x945   :  { %v881_v40 = vmul.f32 %v879_v39, %v879_v39 }
 0x947   :  { %v883_v41 = vsel %vm47_vm0, %v881_v40, 0.0 }
 0x948   :  { %v876_v5 = vpop.xlane.xlu1 %875  ;;  %884 = vadd.xlane.f32.xlu0 %v883_v41 }
 0x949   :  { %v878_v42 = vmul.f32 %v876_v5, %v1264_v7 }
 0x94b   :  { %v880_v43 = vsub.f32 %v868_v36, %v878_v42 }
 0x94d   :  { %v882_v44 = vmul.f32 %v880_v43, %v880_v43 }
 0x94f   :  { %v886_v45 = vsel %vm47_vm0, %v882_v44, 0.0 }
 0x950   :  { %887 = vadd.xlane.f32.xlu2 %v886_v45 }
 0x9bb   :  { %v885_v46 = vpop.xlane.xlu0 %884 }
 0x9bc   :  { %v889_v47 = vmul.f32 %v885_v46, %v1264_v7 }
 0x9be   :  { %v891_v48 = vadd.f32 1e-05, %v889_v47 }
 0x9c0   :  { %1025 = vrsqrt.f32 %v891_v48  ;;  %vm899_vm10 = vweird.f32 %v891_v48 }
 0x9c3   :  { %v888_v49 = vpop.xlane.xlu2 %887 }
 0x9c4   :  { %v890_v50 = vmul.f32 %v888_v49, %v1264_v7  ;;  %v986_v7 = vld [vmem:[%s1345_s11] ss:$0 sm:$0xff] }
 0x9c6   :  { %v1026_v51 = vpop.eup %1025  ;;  %v892_v52 = vadd.f32 1e-05, %v890_v50 }
 0x9c7   :  { %v894_v53 = vmul.f32 %v1026_v51, %v891_v48  ;;  %vm900_vm9 = vweird.f32 %v1026_v51 }
 0x9c8   :  { %1027 = vrsqrt.f32 %v892_v52  ;;  %vm901_vm11 = vmor %vm899_vm10, %vm900_vm9  ;;  %vm909_vm13 = vweird.f32 %v892_v52 }
 0x9c9   :  { %v895_v54 = vmul.f32 %v1026_v51, %v894_v53 }
 0x9cb   :  { %v896_v55 = vmul.f32 0.5, %v895_v54 }
 0x9cd   :  { %v897_v56 = vsub.f32 1.5, %v896_v55 }
 0x9ce   :  { %v1028_v57 = vpop.eup %1027 }
 0x9cf   :  { %v898_v15 = vmul.f32 %v1026_v51, %v897_v56  ;;  %v904_v58 = vmul.f32 %v1028_v57, %v892_v52  ;;  %vm910_vm12 = vweird.f32 %v1028_v57 }
 0x9d0   :  { %vm911_vm14 = vmor %vm909_vm13, %vm910_vm12 }
 0x9d1   :  { %v902_v22 = vsel %vm901_vm11, %v1026_v51, %v898_v15  ;;  %v905_v60 = vmul.f32 %v1028_v57, %v904_v58 }
 0x9d2   :  { %v913_v61 = vmul.f32 %v902_v22, %v879_v39 }
 0x9d3   :  { %v906_v62 = vmul.f32 0.5, %v905_v60 }
 0x9d4   :  { %v918_v63 = vmul.f32 %v985_v59, %v913_v61 }
 0x9d5   :  { %v907_v0 = vsub.f32 1.5, %v906_v62 }
 0x9d6   :  { %v923_v1 = vadd.f32 %v986_v7, %v918_v63 }
 0x9d7   :  { %v908_v2 = vmul.f32 %v1028_v57, %v907_v0 }
 0x9d8   :  { %925 = vst.msk [vmem:[%s1346_s12] sm:$0xff] %vm47_vm0, %v923_v1 }
 0x9d9   :  { %v912_v3 = vsel %vm911_vm14, %v1028_v57, %v908_v2 }
 0x9da   :  { %v914_v9 = vmul.f32 %v912_v3, %v880_v43 }
 0x9dc   :  { %v919_v10 = vmul.f32 %v985_v59, %v914_v9 }
 0x9de   :  { %v924_v11 = vadd.f32 %v986_v7, %v919_v10 }
 0x9e0   :  { %926 = vst.msk [vmem:[%s1346_s12 + $0x8] sm:$0xff] %vm47_vm0, %v924_v11 }

// kernel: transformer_forward.7
= control target key start
LH: loop header
LB: loop body
LE: loop exit
PB: predicated region body
PF: predicated region fallthrough
CT: control target
= control target key end

     0   :  { %vm67_vm0 = vcmask 261120   ;;  %s1923_s29 = smov 88   ;;  %s1925_s30 = smov 120   ;;  %vm108_vm1 = vcmask 64512   ;;  %s2531_s4 = inlined_call_operand.vmem [shape: f32[32,96], index: 4, kind: input, shape index: {}]   ;;  %s2532_s0 = inlined_call_operand.vmem [shape: f32[16,32], index: 0, kind: input, shape index: {}]   ;;  %s2533_s2 = inlined_call_operand.vmem [shape: f32[2,8,8], index: 2, kind: input, shape index: {}]   ;;  %s2534_s18 = inlined_call_operand.vmem [shape: f32[4,2,8,8], index: 18, kind: output, shape index: {1}]   ;;  %s2535_s5 = inlined_call_operand.vmem [shape: f32[32,32], index: 5, kind: input, shape index: {}]   ;;  %s2536_s13 = inlined_call_operand.vmem [shape: f32[1,32], index: 13, kind: input, shape index: {}]   ;;  %s2537_s7 = inlined_call_operand.vmem [shape: f32[32,64], index: 7, kind: input, shape index: {}]   ;;  %s2538_s1 = inlined_call_operand.vmem [shape: f32[16,32], index: 1, kind: input, shape index: {}]   ;;  %s2539_s14 = inlined_call_operand.vmem [shape: f32[1,32], index: 14, kind: input, shape index: {}]   ;;  %s2540_s6 = inlined_call_operand.vmem [shape: f32[32,32], index: 6, kind: input, shape index: {}]   ;;  %s2541_s3 = inlined_call_operand.vmem [shape: f32[2,8,8], index: 3, kind: input, shape index: {}]   ;;  %s2542_s19 = inlined_call_operand.vmem [shape: f32[4,2,8,8], index: 19, kind: output, shape index: {2}]   ;;  %s2543_s8 = inlined_call_operand.vmem [shape: f32[32,32], index: 8, kind: input, shape index: {}]   ;;  %s2544_s15 = inlined_call_operand.vmem [shape: f32[1,32], index: 15, kind: input, shape index: {}]   ;;  %s2545_s16 = inlined_call_operand.vmem [shape: f32[1,32], index: 16, kind: input, shape index: {}]   ;;  %s2546_s9 = inlined_call_operand.vmem [shape: f32[32,32], index: 9, kind: input, shape index: {}]   ;;  %s2547_s10 = inlined_call_operand.vmem [shape: f32[1,32], index: 10, kind: input, shape index: {}]   ;;  %s2548_s11 = inlined_call_operand.vmem [shape: f32[32,32], index: 11, kind: input, shape index: {}]   ;;  %s2549_s12 = inlined_call_operand.vmem [shape: f32[1,32], index: 12, kind: input, shape index: {}]   ;;  %s2550_s17 = inlined_call_operand.vmem [shape: f32[16,32], index: 17, kind: output, shape index: {0}]  }
   0x1   :  { %2557 = sst [smem:[#allocation2_spill]] %s2531_s4  ;;  %s1924_s4 = smov 96   ;;  %v97_v56 = vld [vmem:[%s2535_s5] sm:$0xff] }
   0x2   :  { %2558 = sst [smem:[#allocation3_spill]] %s2532_s0  ;;  %s1926_s23 = smov 64  }
   0x3   :  { %2559 = sst [smem:[#allocation4_spill]] %s2533_s2  ;;  %s1927_s24 = smov 80  }
   0x4   :  { %2560 = sst [smem:[#allocation5_spill]] %s2534_s18  ;;  %s1928_s25 = smov 112  }
   0x5   :  { %s2561_s20 = sld [smem:[#allocation2_spill]]  ;;  %s1929_s18 = smov 56  }
   0x6   :  { %s2562_s26 = sld [smem:[#allocation3_spill]]  ;;  %s1931_s27 = smov 104  }
   0x7   :  { %s2563_s0 = sld [smem:[#allocation4_spill]]  ;;  %s1932_s28 = smov 48  }
   0xb   :  { %v66_v0 = vld [vmem:[%s2561_s20 + $0x18] sm:$0xff]  ;;  %v65_v1 = vld [vmem:[%s2561_s20 + $0x10] sm:$0xff]  ;;  %v64_v2 = vld [vmem:[%s2561_s20 + $0x8] sm:$0xff] }
   0xc   :  { %86 = vmatpush.msra.mxu0 %v66_v0  ;;  %v63_v3 = vld [vmem:[%s2561_s20] sm:$0xff]  ;;  %v2057_v5 = vld [vmem:[%s2562_s26 + $0x8] sm:$0xff]  ;;  %s1933_s20 = smov 40  }
   0xd   :  { %v2050_v4 = vld [vmem:[%s2562_s26] sm:$0xff]  ;;  %v2105_v23 = vld [vmem:[%s2563_s0 + $0x8] sm:$0xff]  ;;  %s2555_s26 = smov 72  }
   0xe   :  { %87 = vmatpush.msra.mxu0 %v65_v1  ;;  %v2096_v16 = vld [vmem:[%s2563_s0] sm:$0xff]  ;;  %s2564_s0 = sld [smem:[#allocation5_spill]] }
  0x10   :  { %88 = vmatpush.msra.mxu0 %v64_v2 }
  0x12   :  { %89 = vmatpush.msra.mxu0 %v63_v3 }
  0x13   :  { %1741 = vmatmul.msk.f32.vlgmr.msra.gmra.mxu0 %vm67_vm0, %v2050_v4 }
  0x1b   :  { %1742 = vmatmul.msk.f32.gmra.mxu0 %vm67_vm0, %v2057_v5 }
  0x90   :  { %v2061_v6 = vpop.f32.mrf.mxu0 }
  0x91   :  { %240 = vrot.lane.b32.xlu1 %v2061_v6, %s1923_s29  ;;  %106 = vrot.lane.b32.xlu0 %v2061_v6, %s1924_s4  ;;  %v2068_v7 = vmul.f32 0.35355338, %v2061_v6 }
  0x98   :  { %v2070_v8 = vpop.f32.mrf.mxu0 }
  0x99   :  { %238 = vrot.lane.b32.xlu1 %v2068_v7, %s1925_s30  ;;  %268 = vrot.lane.b32.xlu2 %v2070_v8, %s1923_s29  ;;  %v2079_v9 = vmul.f32 0.35355338, %v2070_v8 }
  0x9a   :  { %135 = vrot.lane.b32.xlu0 %v2070_v8, %s1924_s4 }
  0xa1   :  { %266 = vrot.lane.b32.xlu2 %v2079_v9, %s1925_s30 }
  0xf3   :  { %v269_v14 = vpop.permute.xlu2 %268 }
  0xfb   :  { %v267_v15 = vpop.permute.xlu2 %266 }
 0x103   :  { %v241_v10 = vpop.permute.xlu1 %240  ;;  %v107_v11 = vpop.permute.xlu0 %106 }
 0x104   :  { %1743 = vmatpush.xpose.msk.msrb.mxu0 %vm108_vm1, %v107_v11  ;;  %1749 = vmatpush.xpose.msk.msra.mxu1 %vm108_vm1, %v241_v10 }
 0x107   :  { %1744 = vmatmul.msk.f32.vlgmr.msrb.gmra.mxu0 %vm108_vm1, %v2068_v7 }
 0x108   :  { %421 = vmatpush.msra.mxu0 %v97_v56 }
 0x10b   :  { %v239_v12 = vpop.permute.xlu1 %238 }
 0x10c   :  { %v136_v13 = vpop.permute.xlu0 %135  ;;  %1750 = vmatmul.msk.f32.vlgmr.msra.gmra.mxu1 %vm108_vm1, %v239_v12 }
 0x10d   :  { %1745 = vmatpush.xpose.msk.msra.mxu2 %vm108_vm1, %v136_v13 }
 0x110   :  { %1746 = vmatmul.msk.f32.vlgmr.msra.gmra.mxu2 %vm108_vm1, %v2079_v9 }
 0x111   :  { %1751 = vmatpush.xpose.msk.msrb.mxu2 %vm108_vm1, %v269_v14 }
 0x118   :  { %1752 = vmatmul.msk.f32.vlgmr.msrb.gmra.mxu2 %vm108_vm1, %v267_v15 }
 0x184   :  { %v131_v17 = vpop.f32.mrf.mxu0 }
 0x185   :  { %v132_v18 = vadd.f32 %v131_v17, %v2096_v16  ;;  %v98_v17 = vld [vmem:[%s2535_s5 + $0x8] sm:$0xff] }
 0x186   :  { %392 = vmatpush.msra.mxu2 %v98_v17 }
 0x187   :  { %v162_v19 = vsel %vm108_vm1, %v132_v18, -inf }
 0x188   :  { %163 = vmax.xlane.f32.xlu0 %v162_v19 }
 0x189   :  { %v263_v20 = vpop.f32.mrf.mxu1 }
 0x18a   :  { %v264_v21 = vadd.f32 %v263_v20, %v2096_v16 }
 0x18c   :  { %v294_v22 = vsel %vm108_vm1, %v264_v21, -inf }
 0x18d   :  { %295 = vmax.xlane.f32.xlu2 %v294_v22 }
 0x193   :  { %v159_v24 = vpop.f32.mrf.mxu2 }
 0x194   :  { %v160_v25 = vadd.f32 %v159_v24, %v2105_v23 }
 0x196   :  { %v165_v26 = vsel %vm108_vm1, %v160_v25, -inf }
 0x197   :  { %166 = vmax.xlane.f32.xlu1 %v165_v26 }
 0x19b   :  { %v291_v27 = vpop.f32.mrf.mxu2 }
 0x19c   :  { %v292_v28 = vadd.f32 %v291_v27, %v2105_v23 }
 0x19e   :  { %v297_v29 = vsel %vm108_vm1, %v292_v28, -inf }
 0x1b0   :  { %186 = vrot.lane.b32.xlu1 %v2061_v6, %s1926_s23 }
 0x1b8   :  { %431 = vrot.lane.b32.xlu1 %v2061_v6, %s1927_s24 }
 0x1e2   :  { %298 = vmax.xlane.f32.xlu1 %v297_v29 }
 0x1fb   :  { %v164_v30 = vpop.xlane.xlu0 %163 }
 0x1fc   :  { %v168_v31 = vsub.f32 %v132_v18, %v164_v30 }
 0x1fe   :  { %v170_v32 = vmul.f32 1.442695, %v168_v31 }
 0x200   :  { %1845 = vpow2.f32 %v170_v32  ;;  %v296_v35 = vpop.xlane.xlu2 %295 }
 0x201   :  { %v300_v38 = vsub.f32 %v264_v21, %v296_v35 }
 0x203   :  { %v302_v40 = vmul.f32 1.442695, %v300_v38 }
 0x206   :  { %v1846_v33 = vpop.eup %1845 }
 0x207   :  { %v174_v34 = vsel %vm108_vm1, %v1846_v33, 0.0 }
 0x208   :  { %175 = vadd.xlane.f32.xlu2 %v174_v34 }
 0x20a   :  { %v167_v36 = vpop.xlane.xlu1 %166 }
 0x20b   :  { %v169_v37 = vsub.f32 %v160_v25, %v167_v36 }
 0x20d   :  { %v172_v39 = vmul.f32 1.442695, %v169_v37 }
 0x20f   :  { %1847 = vpow2.f32 %v172_v39 }
 0x210   :  { %1849 = vpow2.f32 %v302_v40 }
 0x215   :  { %v1848_v41 = vpop.eup %1847 }
 0x216   :  { %v177_v42 = vsel %vm108_vm1, %v1848_v41, 0.0  ;;  %v1850_v43 = vpop.eup %1849 }
 0x217   :  { %178 = vadd.xlane.f32.xlu0 %v177_v42  ;;  %v306_v44 = vsel %vm108_vm1, %v1850_v43, 0.0 }
 0x21f   :  { %307 = vadd.xlane.f32.xlu0 %v306_v44 }
 0x220   :  { %212 = vrot.lane.b32.xlu2 %v2070_v8, %s1926_s23 }
 0x222   :  { %v187_v45 = vpop.permute.xlu1 %186 }
 0x223   :  { %207 = vmatpush.msra.mxu3 %v187_v45 }
 0x228   :  { %429 = vrot.lane.b32.xlu2 %v2068_v7, %s1928_s25 }
 0x22a   :  { %v432_v46 = vpop.permute.xlu1 %431 }
 0x230   :  { %345 = vrot.lane.b32.xlu2 %v2070_v8, %s1929_s18 }
 0x233   :  { %319 = vrot.lane.b32.xlu0 %v2061_v6, %s1929_s18 }
 0x238   :  { %459 = vrot.lane.b32.xlu2 %v2070_v8, %s1927_s24 }
 0x240   :  { %457 = vrot.lane.b32.xlu2 %v2079_v9, %s1928_s25 }
 0x248   :  { %595 = vrot.lane.b32.xlu2 %v2061_v6, %s2555_s26 }
 0x250   :  { %593 = vrot.lane.b32.xlu2 %v2068_v7, %s1931_s27 }
 0x255   :  { %v299_v47 = vpop.xlane.xlu1 %298 }
 0x256   :  { %v301_v48 = vsub.f32 %v292_v28, %v299_v47 }
 0x258   :  { %v304_v49 = vmul.f32 1.442695, %v301_v48  ;;  %510 = vrot.lane.b32.xlu2 %v2061_v6, %s1932_s28 }
 0x25a   :  { %1851 = vpow2.f32 %v304_v49 }
 0x260   :  { %v1852_v50 = vpop.eup %1851 }
 0x261   :  { %v309_v51 = vsel %vm108_vm1, %v1852_v50, 0.0 }
 0x262   :  { %310 = vadd.xlane.f32.xlu0 %v309_v51 }
 0x27b   :  { %v176_v52 = vpop.xlane.xlu2 %175 }
 0x27c   :  { %1853 = vrcp.f32 %v176_v52 }
 0x282   :  { %v1854_v53 = vpop.eup %1853 }
 0x283   :  { %v213_v54 = vpop.permute.xlu2 %212  ;;  %v182_v55 = vmul.f32 %v1854_v53, %v1846_v33  ;;  %v99_v53 = vld [vmem:[%s2535_s5 + $0x10] sm:$0xff] }
 0x284   :  { %233 = vmatpush.msrb.mxu3 %v213_v54  ;;  %583 = vmatpush.msrb.mxu2 %v99_v53 }
 0x285   :  { %184 = vst.msk [vmem:[%s2564_s0] sm:$0xff] %vm108_vm1, %v182_v55  ;;  %1747 = vmatmul.msk.f32.vlgmr.msra.gmra.mxu3 %vm108_vm1, %v182_v55 }
 0x28a   :  { %v179_v57 = vpop.xlane.xlu0 %178 }
 0x28b   :  { %1855 = vrcp.f32 %v179_v57  ;;  %v430_v58 = vpop.permute.xlu2 %429 }
 0x291   :  { %v1856_v59 = vpop.eup %1855 }
 0x292   :  { %v308_v60 = vpop.xlane.xlu0 %307  ;;  %v183_v61 = vmul.f32 %v1856_v59, %v1848_v41 }
 0x293   :  { %1857 = vrcp.f32 %v308_v60  ;;  %v346_v62 = vpop.permute.xlu2 %345 }
 0x294   :  { %185 = vst.msk [vmem:[%s2564_s0 + $0x8] sm:$0xff] %vm108_vm1, %v183_v61  ;;  %1748 = vmatmul.msk.f32.vlgmr.msrb.gmra.mxu3 %vm108_vm1, %v183_v61  ;;  %366 = vmatpush.msrb.mxu1 %v346_v62 }
 0x299   :  { %v1858_v63 = vpop.eup %1857 }
 0x29a   :  { %v314_v0 = vmul.f32 %v1858_v63, %v1850_v43 }
 0x29b   :  { %v460_v1 = vpop.permute.xlu2 %459 }
 0x29c   :  { %1753 = vst.msk [vmem:[%s2564_s0 + $0x10] sm:$0xff] %vm108_vm1, %v314_v0  ;;  %1763 = vmatpush.xpose.msk.msra.mxu1 %vm108_vm1, %v460_v1 }
 0x2a3   :  { %v458_v2 = vpop.permute.xlu2 %457 }
 0x2a5   :  { %v320_v3 = vpop.permute.xlu0 %319 }
 0x2a6   :  { %340 = vmatpush.msra.mxu3 %v320_v3  ;;  %v100_v3 = vld [vmem:[%s2535_s5 + $0x18] sm:$0xff] }
 0x2a7   :  { %1755 = vmatmul.msk.f32.vlgmr.msra.gmra.mxu3 %vm108_vm1, %v314_v0 }
 0x2a8   :  { %1761 = vmatpush.xpose.msk.msrb.mxu3 %vm108_vm1, %v432_v46 }
 0x2ab   :  { %v596_v7 = vpop.permute.xlu2 %595 }
 0x2ac   :  { %1771 = vmatpush.xpose.msk.msrb.mxu0 %vm108_vm1, %v596_v7 }
 0x2af   :  { %1762 = vmatmul.msk.f32.vlgmr.msrb.gmra.mxu3 %vm108_vm1, %v430_v58 }
 0x2b3   :  { %v594_v10 = vpop.permute.xlu2 %593 }
 0x2bb   :  { %v511_v11 = vpop.permute.xlu2 %510 }
 0x2bc   :  { %531 = vmatpush.msra.mxu3 %v511_v11 }
 0x2d5   :  { %v311_v12 = vpop.xlane.xlu0 %310 }
 0x2d6   :  { %1859 = vrcp.f32 %v311_v12 }
 0x2dc   :  { %v1860_v13 = vpop.eup %1859 }
 0x2dd   :  { %v315_v14 = vmul.f32 %v1860_v13, %v1852_v50 }
 0x2df   :  { %1754 = vst.msk [vmem:[%s2564_s0 + $0x18] sm:$0xff] %vm108_vm1, %v315_v14  ;;  %1756 = vmatmul.msk.f32.vlgmr.msrb.gmra.mxu1 %vm108_vm1, %v315_v14 }
 0x2e7   :  { %1764 = vmatmul.msk.f32.vlgmr.msra.gmra.mxu1 %vm108_vm1, %v458_v2 }
 0x308   :  { %v209_v15 = vpop.f32.mrf.mxu3 }
 0x309   :  { %1759 = vmatmul.msk.f32.vlgmr.msra.gmra.mxu0 %vm108_vm1, %v209_v15 }
 0x317   :  { %v235_v18 = vpop.f32.mrf.mxu3 }
 0x318   :  { %1760 = vmatmul.msk.f32.gmra.mxu0 %vm108_vm1, %v235_v18 }
 0x320   :  { %1772 = vmatmul.msk.f32.vlgmr.msrb.gmra.mxu0 %vm108_vm1, %v594_v10 }
 0x32a   :  { %v342_v19 = vpop.f32.mrf.mxu3 }
 0x32b   :  { %1757 = vmatmul.msk.f32.vlgmr.msra.gmra.mxu2 %vm108_vm1, %v342_v19 }
 0x332   :  { %v454_v20 = vpop.f32.mrf.mxu3 }
 0x333   :  { %v455_v21 = vadd.f32 %v454_v20, %v2096_v16 }
 0x335   :  { %v485_v22 = vsel %vm108_vm1, %v455_v21, -inf }
 0x336   :  { %486 = vmax.xlane.f32.xlu1 %v485_v22 }
 0x34f   :  { %623 = vrot.lane.b32.xlu1 %v2070_v8, %s2555_s26 }
 0x35c   :  { %v368_v24 = vpop.f32.mrf.mxu1 }
 0x35d   :  { %1758 = vmatmul.msk.f32.gmra.mxu2 %vm108_vm1, %v368_v24 }
 0x364   :  { %v482_v25 = vpop.f32.mrf.mxu1 }
 0x365   :  { %v483_v26 = vadd.f32 %v482_v25, %v2105_v23 }
 0x367   :  { %v488_v27 = vsel %vm108_vm1, %v483_v26, -inf }
 0x368   :  { %489 = vmax.xlane.f32.xlu2 %v488_v27  ;;  %v858_v27 = vld [vmem:[%s2537_s7 + $0x18] sm:$0xff] }
 0x369   :  { %877 = vmatpush.msra.mxu2 %v858_v27 }
 0x386   :  { %v2179_v34 = vpop.f32.mrf.mxu0 }
 0x395   :  { %v2181_v38 = vpop.f32.mrf.mxu0 }
 0x39d   :  { %v618_v41 = vpop.f32.mrf.mxu0 }
 0x39e   :  { %v619_v42 = vadd.f32 %v618_v41, %v2096_v16 }
 0x3a0   :  { %v649_v43 = vsel %vm108_vm1, %v619_v42, -inf }
 0x3a9   :  { %v487_v28 = vpop.xlane.xlu1 %486 }
 0x3aa   :  { %v491_v29 = vsub.f32 %v455_v21, %v487_v28  ;;  %v857_v28 = vld [vmem:[%s2537_s7 + $0x10] sm:$0xff] }
 0x3ab   :  { %878 = vmatpush.msra.mxu2 %v857_v28 }
 0x3ac   :  { %v493_v30 = vmul.f32 1.442695, %v491_v29 }
 0x3ae   :  { %1861 = vpow2.f32 %v493_v30  ;;  %v394_v14 = vpop.f32.mrf.mxu2  ;;  %v855_v30 = vld [vmem:[%s2537_s7] sm:$0xff] }
 0x3af   :  { %v424_v18 = vadd.f32 %v2179_v34, %v394_v14 }
 0x3b4   :  { %v1862_v31 = vpop.eup %1861 }
 0x3b5   :  { %v497_v32 = vsel %vm108_vm1, %v1862_v31, 0.0 }
 0x3b6   :  { %498 = vadd.xlane.f32.xlu0 %v497_v32 }
 0x3c1   :  { %v624_v33 = vpop.permute.xlu1 %623 }
 0x3c2   :  { %1773 = vmatpush.xpose.msk.msrb.mxu3 %vm108_vm1, %v624_v33 }
 0x3ca   :  { %621 = vrot.lane.b32.xlu0 %v2079_v9, %s1931_s27 }
 0x3db   :  { %v490_v35 = vpop.xlane.xlu2 %489 }
 0x3dc   :  { %v492_v36 = vsub.f32 %v483_v26, %v490_v35  ;;  %v1934_v26 = vmov 32.0  }
 0x3de   :  { %v495_v37 = vmul.f32 1.442695, %v492_v36 }
 0x3e0   :  { %1863 = vpow2.f32 %v495_v37  ;;  %v397_v15 = vpop.f32.mrf.mxu2 }
 0x3e6   :  { %v1864_v39 = vpop.eup %1863 }
 0x3e7   :  { %v500_v40 = vsel %vm108_vm1, %v1864_v39, 0.0 }
 0x3e8   :  { %501 = vadd.xlane.f32.xlu1 %v500_v40 }
 0x3f4   :  { %650 = vmax.xlane.f32.xlu0 %v649_v43 }
 0x408   :  { %674 = vrot.lane.b32.xlu0 %v2061_v6, %s1933_s20 }
 0x429   :  { %v499_v9 = vpop.xlane.xlu0 %498 }
 0x42a   :  { %1865 = vrcp.f32 %v499_v9  ;;  %v427_v9 = vadd.f32 %v2181_v38, %v397_v15  ;;  %v823_v38 = vld [vmem:[%s2540_s6 + $0x8] sm:$0xff] }
 0x430   :  { %v1866_v44 = vpop.eup %1865 }
 0x431   :  { %v505_v45 = vmul.f32 %v1866_v44, %v1862_v31  ;;  %v61_v31 = vld [vmem:[%s2538_s1] sm:$0xff] }
 0x433   :  { %1765 = vst.msk [vmem:[%s2564_s0 + $0x20] sm:$0xff] %vm108_vm1, %v505_v45  ;;  %1767 = vmatmul.msk.f32.vlgmr.msra.gmra.mxu3 %vm108_vm1, %v505_v45 }
 0x434   :  { %747 = vmatpush.msra.mxu3 %v100_v3 }
 0x43c   :  { %v622_v46 = vpop.permute.xlu0 %621 }
 0x43d   :  { %1774 = vmatmul.msk.f32.vlgmr.msrb.gmra.mxu3 %vm108_vm1, %v622_v46 }
 0x45b   :  { %v502_v16 = vpop.xlane.xlu1 %501 }
 0x45c   :  { %1867 = vrcp.f32 %v502_v16 }
 0x462   :  { %v1868_v47 = vpop.eup %1867 }
 0x463   :  { %v506_v48 = vmul.f32 %v1868_v47, %v1864_v39 }
 0x465   :  { %1766 = vst.msk [vmem:[%s2564_s0 + $0x28] sm:$0xff] %vm108_vm1, %v506_v48 }
 0x467   :  { %v651_v6 = vpop.xlane.xlu0 %650 }
 0x468   :  { %v655_v49 = vsub.f32 %v619_v42, %v651_v6  ;;  %v824_v6 = vld [vmem:[%s2540_s6 + $0x10] sm:$0xff] }
 0x46a   :  { %v657_v50 = vmul.f32 1.442695, %v655_v49 }
 0x46c   :  { %1869 = vpow2.f32 %v657_v50 }
 0x472   :  { %v1870_v51 = vpop.eup %1869 }
 0x473   :  { %v661_v52 = vsel %vm108_vm1, %v1870_v51, 0.0 }
 0x474   :  { %662 = vadd.xlane.f32.xlu2 %v661_v52 }
 0x48c   :  { %536 = vrot.lane.b32.xlu2 %v2070_v8, %s1932_s28 }
 0x494   :  { %700 = vrot.lane.b32.xlu2 %v2070_v8, %s1933_s20  ;;  %v675_v8 = vpop.permute.xlu0 %674 }
 0x4b6   :  { %v533_v54 = vpop.f32.mrf.mxu3 }
 0x4b7   :  { %1769 = vmatmul.msk.f32.vlgmr.msrb.gmra.mxu2 %vm108_vm1, %v533_v54 }
 0x4c0   :  { %v646_v55 = vpop.f32.mrf.mxu3 }
 0x4c1   :  { %v647_v56 = vadd.f32 %v646_v55, %v2105_v23 }
 0x4c3   :  { %v652_v57 = vsel %vm108_vm1, %v647_v56, -inf }
 0x4c4   :  { %653 = vmax.xlane.f32.xlu1 %v652_v57 }
 0x4e7   :  { %v663_v58 = vpop.xlane.xlu2 %662 }
 0x4e8   :  { %1871 = vrcp.f32 %v663_v58 }
 0x4ee   :  { %v1872_v59 = vpop.eup %1871 }
 0x4ef   :  { %v669_v60 = vmul.f32 %v1872_v59, %v1870_v51  ;;  %v537_v61 = vpop.permute.xlu2 %536  ;;  %v1839_v59 = vld [vmem:[%s2536_s13] ss:$0 sm:$0xff] }
 0x4f0   :  { %557 = vmatpush.msrb.mxu1 %v537_v61 }
 0x4f1   :  { %1775 = vst.msk [vmem:[%s2564_s0 + $0x30] sm:$0xff] %vm108_vm1, %v669_v60  ;;  %1768 = vmatmul.msk.f32.vlgmr.msrb.gmra.mxu1 %vm108_vm1, %v506_v48  ;;  %v825_v48 = vld [vmem:[%s2540_s6 + $0x18] sm:$0xff] }
 0x4f2   :  { %695 = vmatpush.msra.mxu1 %v675_v8  ;;  %v1840_v8 = vld [vmem:[%s2539_s14] ss:$0 sm:$0xff] }
 0x4f4   :  { %844 = vmatpush.msrb.mxu1 %v825_v48 }
 0x4f6   :  { %845 = vmatpush.msrb.mxu1 %v824_v6 }
 0x4f7   :  { %v701_v62 = vpop.permute.xlu2 %700 }
 0x4f8   :  { %721 = vmatpush.msra.mxu0 %v701_v62  ;;  %846 = vmatpush.msrb.mxu1 %v823_v38 }
 0x4f9   :  { %1777 = vmatmul.msk.f32.vlgmr.msra.gmra.mxu1 %vm108_vm1, %v669_v60 }
 0x537   :  { %v654_v23 = vpop.xlane.xlu1 %653 }
 0x538   :  { %v656_v63 = vsub.f32 %v647_v56, %v654_v23 }
 0x53a   :  { %v659_v0 = vmul.f32 1.442695, %v656_v63  ;;  %v585_v17 = vpop.f32.mrf.mxu2 }
 0x53b   :  { %v591_v19 = vadd.f32 %v585_v17, %v424_v18 }
 0x53c   :  { %1873 = vpow2.f32 %v659_v0 }
 0x542   :  { %v1874_v1 = vpop.eup %1873 }
 0x543   :  { %v664_v2 = vsel %vm108_vm1, %v1874_v1, 0.0 }
 0x544   :  { %665 = vadd.xlane.f32.xlu1 %v664_v2 }
 0x56e   :  { %v559_v7 = vpop.f32.mrf.mxu1 }
 0x56f   :  { %1770 = vmatmul.msk.f32.gmra.mxu2 %vm108_vm1, %v559_v7 }
 0x576   :  { %v697_v10 = vpop.f32.mrf.mxu1 }
 0x577   :  { %1779 = vmatmul.msk.f32.vlgmr.msra.gmra.mxu3 %vm108_vm1, %v697_v10 }
 0x5b7   :  { %v666_v11 = vpop.xlane.xlu1 %665 }
 0x5b8   :  { %1875 = vrcp.f32 %v666_v11 }
 0x5b9   :  { %1877 = vrcp.f32 %v1934_v26 }
 0x5be   :  { %v1876_v12 = vpop.eup %1875 }
 0x5bf   :  { %v670_v13 = vmul.f32 %v1876_v12, %v1874_v1  ;;  %v1878_v29 = vpop.eup %1877  ;;  %v62_v12 = vld [vmem:[%s2538_s1 + $0x8] sm:$0xff] }
 0x5c0   :  { %v768_v32 = vmul.f32 32.0, %v1878_v29  ;;  %vm772_vm2 = vweird.f32 %v1878_v29 }
 0x5c1   :  { %1776 = vst.msk [vmem:[%s2564_s0 + $0x38] sm:$0xff] %vm108_vm1, %v670_v13  ;;  %1778 = vmatmul.msk.f32.vlgmr.msra.gmra.mxu0 %vm108_vm1, %v670_v13 }
 0x5c2   :  { %v769_v33 = vsub.f32 1.0, %v768_v32 }
 0x5c4   :  { %v770_v34 = vmul.f32 %v1878_v29, %v769_v33 }
 0x5c6   :  { %v771_v35 = vadd.f32 %v1878_v29, %v770_v34 }
 0x5c8   :  { %v2244_v36 = vsel %vm772_vm2, %v1878_v29, %v771_v35 }
 0x5f2   :  { %v588_v43 = vpop.f32.mrf.mxu2 }
 0x5f3   :  { %v592_v44 = vadd.f32 %v588_v43, %v427_v9 }
 0x5fa   :  { %v749_v20 = vpop.f32.mrf.mxu3 }
 0x5fb   :  { %v755_v21 = vadd.f32 %v749_v20, %v591_v19 }
 0x5fd   :  { %v757_v22 = vadd.f32 %v755_v21, %v2050_v4  ;;  %v856_v4 = vld [vmem:[%s2537_s7 + $0x8] sm:$0xff] }
 0x5fe   :  { %879 = vmatpush.msra.mxu2 %v856_v4  ;;  %v2302_v4 = vld [vmem:[%s2541_s3] sm:$0xff] }
 0x5ff   :  { %v761_v24 = vsel %vm67_vm0, %v757_v22, 0.0 }
 0x600   :  { %762 = vadd.xlane.f32.xlu1 %v761_v24  ;;  %880 = vmatpush.msra.mxu2 %v855_v30 }
 0x601   :  { %1783 = vmatmul.msk.f32.vlgmr.msra.gmra.mxu2 %vm67_vm0, %v61_v31 }
 0x609   :  { %1784 = vmatmul.msk.f32.gmra.mxu2 %vm67_vm0, %v62_v12 }
 0x63e   :  { %v723_v25 = vpop.f32.mrf.mxu0 }
 0x63f   :  { %1780 = vmatmul.msk.f32.gmra.mxu3 %vm108_vm1, %v723_v25 }
 0x673   :  { %v763_v37 = vpop.xlane.xlu1 %762 }
 0x674   :  { %v774_v39 = vmul.f32 %v2244_v36, %v763_v37 }
 0x676   :  { %v776_v40 = vsub.f32 %v757_v22, %v774_v39 }
 0x678   :  { %v778_v41 = vmul.f32 %v776_v40, %v776_v40 }
 0x67a   :  { %v780_v42 = vsel %vm67_vm0, %v778_v41, 0.0 }
 0x67b   :  { %781 = vadd.xlane.f32.xlu0 %v780_v42 }
 0x684   :  { %v2263_v49 = vpop.f32.mrf.mxu2 }
 0x685   :  { %1026 = vrot.lane.b32.xlu1 %v2263_v49, %s1925_s30  ;;  %1785 = vmatpush.xpose.msk.msrb.mxu0 %vm108_vm1, %v2263_v49 }
 0x68c   :  { %v2308_v32 = vpop.f32.mrf.mxu2 }
 0x68d   :  { %1787 = vmatpush.xpose.msk.msra.mxu0 %vm108_vm1, %v2308_v32 }
 0x6c2   :  { %v752_v45 = vpop.f32.mrf.mxu3 }
 0x6c3   :  { %v756_v46 = vadd.f32 %v752_v45, %v592_v44  ;;  %v2332_v44 = vld [vmem:[%s2541_s3 + $0x8] sm:$0xff] }
 0x6c5   :  { %v758_v16 = vadd.f32 %v756_v46, %v2057_v5  ;;  %v822_v5 = vld [vmem:[%s2540_s6] sm:$0xff] }
 0x6c6   :  { %847 = vmatpush.msrb.mxu1 %v822_v5 }
 0x6c7   :  { %v764_v47 = vsel %vm67_vm0, %v758_v16, 0.0 }
 0x6c8   :  { %765 = vadd.xlane.f32.xlu2 %v764_v47 }
 0x6ee   :  { %v782_v50 = vpop.xlane.xlu0 %781 }
 0x6ef   :  { %v786_v51 = vmul.f32 %v782_v50, %v2244_v36 }
 0x6f1   :  { %v788_v52 = vadd.f32 1e-05, %v786_v51 }
 0x6f3   :  { %1879 = vrsqrt.f32 %v788_v52  ;;  %vm796_vm4 = vweird.f32 %v788_v52 }
 0x6f7   :  { %v1027_v7 = vpop.permute.xlu1 %1026 }
 0x6f8   :  { %1791 = vmatpush.xpose.msk.msrb.mxu2 %vm108_vm1, %v1027_v7 }
 0x6f9   :  { %v1880_v53 = vpop.eup %1879 }
 0x6fa   :  { %v791_v54 = vmul.f32 %v1880_v53, %v788_v52  ;;  %vm797_vm3 = vweird.f32 %v1880_v53 }
 0x6fb   :  { %vm798_vm5 = vmor %vm796_vm4, %vm797_vm3 }
 0x6fc   :  { %v792_v55 = vmul.f32 %v1880_v53, %v791_v54 }
 0x6fe   :  { %v793_v56 = vmul.f32 0.5, %v792_v55 }
 0x700   :  { %v794_v57 = vsub.f32 1.5, %v793_v56 }
 0x702   :  { %v795_v58 = vmul.f32 %v1880_v53, %v794_v57 }
 0x704   :  { %v799_v60 = vsel %vm798_vm5, %v1880_v53, %v795_v58 }
 0x705   :  { %v810_v61 = vmul.f32 %v799_v60, %v776_v40 }
 0x707   :  { %v815_v62 = vmul.f32 %v1839_v59, %v810_v61 }
 0x709   :  { %v2276_v23 = vadd.f32 %v1840_v8, %v815_v62 }
 0x70b   :  { %1781 = vmatmul.msk.f32.vlgmr.msrb.gmra.mxu1 %vm67_vm0, %v2276_v23 }
 0x73b   :  { %v766_v63 = vpop.xlane.xlu2 %765 }
 0x73c   :  { %v775_v0 = vmul.f32 %v2244_v36, %v766_v63  ;;  %v888_v63 = vld [vmem:[%s2543_s8] sm:$0xff] }
 0x73e   :  { %v777_v1 = vsub.f32 %v758_v16, %v775_v0 }
 0x740   :  { %v779_v2 = vmul.f32 %v777_v1, %v777_v1 }
 0x742   :  { %v783_v3 = vsel %vm67_vm0, %v779_v2, 0.0 }
 0x743   :  { %784 = vadd.xlane.f32.xlu1 %v783_v3 }
 0x788   :  { %v849_v10 = vpop.f32.mrf.mxu1 }
 0x789   :  { %v2283_v11 = vmul.f32 0.35355338, %v849_v10 }
 0x78b   :  { %1024 = vrot.lane.b32.xlu1 %v2283_v11, %s1925_s30  ;;  %1786 = vmatmul.msk.f32.vlgmr.msrb.gmra.mxu0 %vm108_vm1, %v2283_v11 }
 0x7b6   :  { %v785_v13 = vpop.xlane.xlu1 %784 }
 0x7b7   :  { %v787_v14 = vmul.f32 %v785_v13, %v2244_v36 }
 0x7b9   :  { %v789_v15 = vadd.f32 1e-05, %v787_v14 }
 0x7bb   :  { %1881 = vrsqrt.f32 %v789_v15  ;;  %vm806_vm7 = vweird.f32 %v789_v15 }
 0x7c1   :  { %v1882_v17 = vpop.eup %1881 }
 0x7c2   :  { %v801_v18 = vmul.f32 %v1882_v17, %v789_v15  ;;  %vm807_vm6 = vweird.f32 %v1882_v17 }
 0x7c3   :  { %vm808_vm8 = vmor %vm806_vm7, %vm807_vm6 }
 0x7c4   :  { %v802_v19 = vmul.f32 %v1882_v17, %v801_v18  ;;  %v889_v18 = vld [vmem:[%s2543_s8 + $0x8] sm:$0xff] }
 0x7c5   :  { %1178 = vmatpush.msra.mxu2 %v889_v18 }
 0x7c6   :  { %v803_v20 = vmul.f32 0.5, %v802_v19 }
 0x7c8   :  { %v804_v21 = vsub.f32 1.5, %v803_v20 }
 0x7ca   :  { %v805_v22 = vmul.f32 %v1882_v17, %v804_v21 }
 0x7cc   :  { %v809_v24 = vsel %vm808_vm8, %v1882_v17, %v805_v22 }
 0x7cd   :  { %v811_v25 = vmul.f32 %v809_v24, %v777_v1 }
 0x7cf   :  { %v816_v26 = vmul.f32 %v1839_v59, %v811_v25 }
 0x7d1   :  { %v2294_v27 = vadd.f32 %v1840_v8, %v816_v26 }
 0x7d3   :  { %1782 = vmatmul.msk.f32.gmra.mxu1 %vm67_vm0, %v2294_v27 }
 0x7fd   :  { %v1025_v28 = vpop.permute.xlu1 %1024 }
 0x7fe   :  { %1792 = vmatmul.msk.f32.vlgmr.msrb.gmra.mxu2 %vm108_vm1, %v1025_v28 }
 0x808   :  { %v919_v29 = vpop.f32.mrf.mxu0 }
 0x809   :  { %v920_v30 = vadd.f32 %v919_v29, %v2302_v4 }
 0x80b   :  { %v948_v31 = vsel %vm108_vm1, %v920_v30, -inf }
 0x80c   :  { %949 = vmax.xlane.f32.xlu2 %v948_v31 }
 0x824   :  { %1105 = vrot.lane.b32.xlu2 %v2263_v49, %s1923_s29 }
 0x850   :  { %v852_v33 = vpop.f32.mrf.mxu1 }
 0x851   :  { %v2312_v34 = vmul.f32 0.35355338, %v852_v33 }
 0x853   :  { %1788 = vmatmul.msk.f32.vlgmr.msra.gmra.mxu0 %vm108_vm1, %v2312_v34 }
 0x87f   :  { %v950_v35 = vpop.xlane.xlu2 %949 }
 0x880   :  { %v954_v37 = vsub.f32 %v920_v30, %v950_v35 }
 0x881   :  { %v1049_v39 = vpop.f32.mrf.mxu2 }
 0x882   :  { %v956_v40 = vmul.f32 1.442695, %v954_v37  ;;  %v1050_v41 = vadd.f32 %v1049_v39, %v2302_v4 }
 0x884   :  { %1883 = vpow2.f32 %v956_v40  ;;  %v1080_v42 = vsel %vm108_vm1, %v1050_v41, -inf }
 0x885   :  { %1081 = vmax.xlane.f32.xlu0 %v1080_v42 }
 0x887   :  { %v1106_v54 = vpop.permute.xlu2 %1105 }
 0x88a   :  { %v1884_v43 = vpop.eup %1883 }
 0x88b   :  { %v960_v9 = vsel %vm108_vm1, %v1884_v43, 0.0 }
 0x88c   :  { %961 = vadd.xlane.f32.xlu1 %v960_v9 }
 0x899   :  { %972 = vrot.lane.b32.xlu0 %v2263_v49, %s1924_s4 }
 0x8a1   :  { %1054 = vrot.lane.b32.xlu0 %v2308_v32, %s1925_s30 }
 0x8a9   :  { %1052 = vrot.lane.b32.xlu0 %v2312_v34, %s1925_s30 }
 0x8b1   :  { %1215 = vrot.lane.b32.xlu0 %v2283_v11, %s1928_s25 }
 0x8b9   :  { %998 = vrot.lane.b32.xlu0 %v2308_v32, %s1924_s4 }
 0x8d0   :  { %v945_v45 = vpop.f32.mrf.mxu0 }
 0x8d1   :  { %v946_v46 = vadd.f32 %v945_v45, %v2332_v44 }
 0x8d3   :  { %v951_v16 = vsel %vm108_vm1, %v946_v46, -inf }
 0x8d4   :  { %952 = vmax.xlane.f32.xlu1 %v951_v16 }
 0x8f8   :  { %v1082_v47 = vpop.xlane.xlu0 %1081 }
 0x8f9   :  { %v1086_v48 = vsub.f32 %v1050_v41, %v1082_v47 }
 0x8fb   :  { %v1088_v6 = vmul.f32 1.442695, %v1086_v48 }
 0x8fd   :  { %1885 = vpow2.f32 %v1088_v6 }
 0x8ff   :  { %v962_v38 = vpop.xlane.xlu1 %961 }
 0x900   :  { %1887 = vrcp.f32 %v962_v38 }
 0x903   :  { %v1886_v5 = vpop.eup %1885 }
 0x904   :  { %v1092_v50 = vsel %vm108_vm1, %v1886_v5, 0.0 }
 0x905   :  { %1093 = vadd.xlane.f32.xlu2 %v1092_v50 }
 0x906   :  { %v1888_v51 = vpop.eup %1887 }
 0x907   :  { %v968_v52 = vmul.f32 %v1888_v51, %v1884_v43 }
 0x909   :  { %970 = vst.msk [vmem:[%s2542_s19] sm:$0xff] %vm108_vm1, %v968_v52 }
 0x90b   :  { %v973_v53 = vpop.permute.xlu0 %972 }
 0x90c   :  { %993 = vmatpush.msrb.mxu3 %v973_v53 }
 0x90d   :  { %1789 = vmatmul.msk.f32.vlgmr.msrb.gmra.mxu3 %vm108_vm1, %v968_v52 }
 0x90e   :  { %1126 = vmatpush.msra.mxu3 %v1106_v54 }
 0x913   :  { %v1055_v55 = vpop.permute.xlu0 %1054 }
 0x914   :  { %1793 = vmatpush.xpose.msk.msrb.mxu0 %vm108_vm1, %v1055_v55 }
 0x918   :  { %1207 = vmatpush.msra.mxu0 %v888_v63 }
 0x91b   :  { %v1053_v56 = vpop.permute.xlu0 %1052 }
 0x91c   :  { %1794 = vmatmul.msk.f32.vlgmr.msrb.gmra.mxu0 %vm108_vm1, %v1053_v56 }
 0x91d   :  { %1217 = vrot.lane.b32.xlu2 %v2263_v49, %s1928_s25 }
 0x923   :  { %v1216_v57 = vpop.permute.xlu0 %1215 }
 0x92b   :  { %v999_v58 = vpop.permute.xlu0 %998 }
 0x92c   :  { %1019 = vmatpush.msra.mxu1 %v999_v58  ;;  %v890_v58 = vld [vmem:[%s2543_s8 + $0x10] sm:$0xff] }
 0x92d   :  { %1369 = vmatpush.msrb.mxu2 %v890_v58 }
 0x947   :  { %v953_v59 = vpop.xlane.xlu1 %952 }
 0x948   :  { %v955_v60 = vsub.f32 %v946_v46, %v953_v59 }
 0x94a   :  { %v958_v61 = vmul.f32 1.442695, %v955_v60 }
 0x94c   :  { %1889 = vpow2.f32 %v958_v61 }
 0x952   :  { %v1890_v8 = vpop.eup %1889 }
 0x953   :  { %v963_v62 = vsel %vm108_vm1, %v1890_v8, 0.0 }
 0x954   :  { %964 = vadd.xlane.f32.xlu2 %v963_v62 }
 0x96c   :  { %1243 = vrot.lane.b32.xlu2 %v2312_v34, %s1928_s25 }
 0x978   :  { %v1094_v0 = vpop.xlane.xlu2 %1093 }
 0x979   :  { %1891 = vrcp.f32 %v1094_v0 }
 0x97f   :  { %v1892_v1 = vpop.eup %1891 }
 0x980   :  { %v1100_v2 = vmul.f32 %v1892_v1, %v1886_v5  ;;  %v1218_v3 = vpop.permute.xlu2 %1217 }
 0x981   :  { %1803 = vmatpush.xpose.msk.msrb.mxu3 %vm108_vm1, %v1218_v3 }
 0x982   :  { %1795 = vst.msk [vmem:[%s2542_s19 + $0x10] sm:$0xff] %vm108_vm1, %v1100_v2  ;;  %1797 = vmatmul.msk.f32.vlgmr.msra.gmra.mxu3 %vm108_vm1, %v1100_v2 }
 0x98a   :  { %1804 = vmatmul.msk.f32.vlgmr.msrb.gmra.mxu3 %vm108_vm1, %v1216_v57 }
 0x990   :  { %v995_v7 = vpop.f32.mrf.mxu3 }
 0x991   :  { %1801 = vmatmul.msk.f32.vlgmr.msra.gmra.mxu0 %vm108_vm1, %v995_v7 }
 0x999   :  { %v1077_v10 = vpop.f32.mrf.mxu0 }
 0x99a   :  { %v1078_v12 = vadd.f32 %v1077_v10, %v2332_v44 }
 0x99c   :  { %v1083_v13 = vsel %vm108_vm1, %v1078_v12, -inf }
 0x99d   :  { %1084 = vmax.xlane.f32.xlu1 %v1083_v13 }
 0x9b6   :  { %1131 = vrot.lane.b32.xlu1 %v2308_v32, %s1923_s29 }
 0x9be   :  { %1245 = vrot.lane.b32.xlu1 %v2308_v32, %s1928_s25 }
 0x9c6   :  { %1381 = vrot.lane.b32.xlu1 %v2263_v49, %s1931_s27 }
 0x9c7   :  { %v965_v14 = vpop.xlane.xlu2 %964 }
 0x9c8   :  { %1893 = vrcp.f32 %v965_v14 }
 0x9ce   :  { %v1894_v15 = vpop.eup %1893  ;;  %1409 = vrot.lane.b32.xlu1 %v2308_v32, %s1931_s27 }
 0x9cf   :  { %v969_v17 = vmul.f32 %v1894_v15, %v1890_v8  ;;  %v1244_v16 = vpop.permute.xlu2 %1243 }
 0x9d1   :  { %971 = vst.msk [vmem:[%s2542_s19 + $0x8] sm:$0xff] %vm108_vm1, %v969_v17  ;;  %1790 = vmatmul.msk.f32.vlgmr.msra.gmra.mxu1 %vm108_vm1, %v969_v17 }
 0xa05   :  { %v1128_v19 = vpop.f32.mrf.mxu3 }
 0xa06   :  { %1799 = vmatmul.msk.f32.vlgmr.msra.gmra.mxu2 %vm108_vm1, %v1128_v19 }
 0xa0d   :  { %v1240_v20 = vpop.f32.mrf.mxu3 }
 0xa0e   :  { %v1241_v21 = vadd.f32 %v1240_v20, %v2302_v4  ;;  %v2405_v50 = vpop.f32.mrf.mxu0 }
 0xa10   :  { %v1085_v22 = vpop.xlane.xlu1 %1084  ;;  %v1271_v24 = vsel %vm108_vm1, %v1241_v21, -inf }
 0xa11   :  { %v1087_v25 = vsub.f32 %v1078_v12, %v1085_v22  ;;  %1272 = vmax.xlane.f32.xlu0 %v1271_v24 }
 0xa13   :  { %v1090_v26 = vmul.f32 1.442695, %v1087_v25 }
 0xa15   :  { %1895 = vpow2.f32 %v1090_v26  ;;  %v891_v26 = vld [vmem:[%s2543_s8 + $0x18] sm:$0xff] }
 0xa1b   :  { %v1896_v28 = vpop.eup %1895 }
 0xa1c   :  { %v1095_v29 = vsel %vm108_vm1, %v1896_v28, 0.0 }
 0xa1d   :  { %1096 = vadd.xlane.f32.xlu1 %v1095_v29 }
 0xa25   :  { %1296 = vrot.lane.b32.xlu0 %v2263_v49, %s1927_s24 }
 0xa28   :  { %v1132_v30 = vpop.permute.xlu1 %1131 }
 0xa29   :  { %1152 = vmatpush.msrb.mxu1 %v1132_v30 }
 0xa30   :  { %v1246_v31 = vpop.permute.xlu1 %1245 }
 0xa31   :  { %1805 = vmatpush.xpose.msk.msra.mxu1 %vm108_vm1, %v1246_v31 }
 0xa36   :  { %1379 = vrot.lane.b32.xlu1 %v2283_v11, %s1931_s27 }
 0xa38   :  { %v1382_v33 = vpop.permute.xlu1 %1381 }
 0xa39   :  { %1813 = vmatpush.xpose.msk.msrb.mxu0 %vm108_vm1, %v1382_v33 }
 0xa40   :  { %v1410_v41 = vpop.permute.xlu1 %1409 }
 0xa4e   :  { %v1021_v35 = vpop.f32.mrf.mxu1 }
 0xa4f   :  { %1802 = vmatmul.msk.f32.gmra.mxu0 %vm108_vm1, %v1021_v35 }
 0xa84   :  { %v1273_v37 = vpop.xlane.xlu0 %1272 }
 0xa85   :  { %v1277_v39 = vsub.f32 %v1241_v21, %v1273_v37 }
 0xa87   :  { %v1279_v40 = vmul.f32 1.442695, %v1277_v39 }
 0xa89   :  { %1897 = vpow2.f32 %v1279_v40  ;;  %v1180_v35 = vpop.f32.mrf.mxu2 }
 0xa8f   :  { %v1898_v42 = vpop.eup %1897 }
 0xa90   :  { %v1097_v43 = vpop.xlane.xlu1 %1096  ;;  %v1283_v9 = vsel %vm108_vm1, %v1898_v42, 0.0 }
 0xa91   :  { %1899 = vrcp.f32 %v1097_v43  ;;  %1284 = vadd.xlane.f32.xlu2 %v1283_v9 }
 0xa97   :  { %v1900_v45 = vpop.eup %1899  ;;  %v1297_v46 = vpop.permute.xlu0 %1296 }
 0xa98   :  { %v1101_v11 = vmul.f32 %v1900_v45, %v1896_v28  ;;  %1317 = vmatpush.msra.mxu3 %v1297_v46 }
 0xa9a   :  { %1815 = vmatpush.xpose.msk.msrb.mxu3 %vm108_vm1, %v1410_v41  ;;  %1796 = vst.msk [vmem:[%s2542_s19 + $0x18] sm:$0xff] %vm108_vm1, %v1101_v11  ;;  %1798 = vmatmul.msk.f32.vlgmr.msrb.gmra.mxu1 %vm108_vm1, %v1101_v11  ;;  %v1210_v41 = vadd.f32 %v2405_v50, %v1180_v35 }
 0xaa2   :  { %1806 = vmatmul.msk.f32.vlgmr.msra.gmra.mxu1 %vm108_vm1, %v1244_v16 }
 0xaa8   :  { %v1380_v47 = vpop.permute.xlu1 %1379 }
 0xaa9   :  { %1407 = vrot.lane.b32.xlu2 %v2312_v34, %s1931_s27  ;;  %1814 = vmatmul.msk.f32.vlgmr.msrb.gmra.mxu0 %vm108_vm1, %v1380_v47 }
 0xacc   :  { %v2409_v34 = vpop.f32.mrf.mxu0 }
 0xb04   :  { %v1285_v48 = vpop.xlane.xlu2 %1284 }
 0xb05   :  { %1901 = vrcp.f32 %v1285_v48 }
 0xb0b   :  { %v1902_v6 = vpop.eup %1901 }
 0xb0c   :  { %v1291_v38 = vmul.f32 %v1902_v6, %v1898_v42  ;;  %v1408_v5 = vpop.permute.xlu2 %1407 }
 0xb0e   :  { %1807 = vst.msk [vmem:[%s2542_s19 + $0x20] sm:$0xff] %vm108_vm1, %v1291_v38  ;;  %1809 = vmatmul.msk.f32.vlgmr.msra.gmra.mxu3 %vm108_vm1, %v1291_v38 }
 0xb0f   :  { %1533 = vmatpush.msra.mxu3 %v891_v26 }
 0xb16   :  { %1816 = vmatmul.msk.f32.vlgmr.msrb.gmra.mxu3 %vm108_vm1, %v1408_v5 }
 0xb17   :  { %v1154_v51 = vpop.f32.mrf.mxu1 }
 0xb18   :  { %1800 = vmatmul.msk.f32.gmra.mxu2 %vm108_vm1, %v1154_v51 }
 0xb1f   :  { %v1268_v52 = vpop.f32.mrf.mxu1 }
 0xb20   :  { %v1269_v53 = vadd.f32 %v1268_v52, %v2332_v44 }
 0xb22   :  { %v1274_v54 = vsel %vm108_vm1, %v1269_v53, -inf }
 0xb23   :  { %1275 = vmax.xlane.f32.xlu0 %v1274_v54  ;;  %v1604_v54 = vld [vmem:[%s2546_s9 + $0x18] sm:$0xff] }
 0xb26   :  { %v1404_v55 = vpop.f32.mrf.mxu0 }
 0xb27   :  { %v1405_v56 = vadd.f32 %v1404_v55, %v2302_v4  ;;  %v1602_v55 = vld [vmem:[%s2546_s9 + $0x8] sm:$0xff] }
 0xb29   :  { %v1435_v57 = vsel %vm108_vm1, %v1405_v56, -inf }
 0xb2a   :  { %1436 = vmax.xlane.f32.xlu1 %v1435_v57 }
 0xb43   :  { %1322 = vrot.lane.b32.xlu1 %v2308_v32, %s1927_s24  ;;  %s2565_s24 = smov 72  }
 0xb91   :  { %v1319_v59 = vpop.f32.mrf.mxu3 }
 0xb92   :  { %1811 = vmatmul.msk.f32.vlgmr.msrb.gmra.mxu2 %vm108_vm1, %v1319_v59 }
 0xb96   :  { %v1276_v60 = vpop.xlane.xlu0 %1275 }
 0xb97   :  { %v1278_v61 = vsub.f32 %v1269_v53, %v1276_v60 }
 0xb99   :  { %v1281_v8 = vmul.f32 1.442695, %v1278_v61  ;;  %v1432_v62 = vpop.f32.mrf.mxu3 }
 0xb9a   :  { %v1433_v4 = vadd.f32 %v1432_v62, %v2332_v44 }
 0xb9b   :  { %1903 = vpow2.f32 %v1281_v8  ;;  %v1183_v37 = vpop.f32.mrf.mxu2 }
 0xb9c   :  { %v1438_v63 = vsel %vm108_vm1, %v1433_v4, -inf  ;;  %v1213_v47 = vadd.f32 %v2409_v34, %v1183_v37  ;;  %v1603_v34 = vld [vmem:[%s2546_s9 + $0x10] sm:$0xff] }
 0xb9d   :  { %1439 = vmax.xlane.f32.xlu2 %v1438_v63  ;;  %v1437_v0 = vpop.xlane.xlu1 %1436 }
 0xb9e   :  { %v1441_v1 = vsub.f32 %v1405_v56, %v1437_v0 }
 0xba0   :  { %v1443_v2 = vmul.f32 1.442695, %v1441_v1 }
 0xba1   :  { %v1904_v3 = vpop.eup %1903 }
 0xba2   :  { %1905 = vpow2.f32 %v1443_v2  ;;  %v1286_v7 = vsel %vm108_vm1, %v1904_v3, 0.0 }
 0xba3   :  { %1287 = vadd.xlane.f32.xlu0 %v1286_v7  ;;  %v2477_v7 = vld [vmem:[%s2544_s15] ss:$0 sm:$0xff] }
 0xba8   :  { %v1906_v10 = vpop.eup %1905 }
 0xba9   :  { %v1447_v12 = vsel %vm108_vm1, %v1906_v10, 0.0 }
 0xbaa   :  { %1448 = vadd.xlane.f32.xlu2 %v1447_v12 }
 0xbb5   :  { %v1323_v13 = vpop.permute.xlu1 %1322 }
 0xbb6   :  { %1343 = vmatpush.msrb.mxu1 %v1323_v13  ;;  %v2482_v13 = vld [vmem:[%s2545_s16] ss:$0 sm:$0xff] }
 0xbc2   :  { %1460 = vrot.lane.b32.xlu2 %v2263_v49, %s2565_s24 }
 0xc10   :  { %v1440_v44 = vpop.xlane.xlu2 %1439 }
 0xc11   :  { %v1442_v14 = vsub.f32 %v1433_v4, %v1440_v44 }
 0xc13   :  { %v1445_v15 = vmul.f32 1.442695, %v1442_v14 }
 0xc15   :  { %1907 = vpow2.f32 %v1445_v15  ;;  %v1371_v40 = vpop.f32.mrf.mxu2  ;;  %v1643_v15 = vld [vmem:[%s2548_s11 + $0x18] sm:$0xff] }
 0xc16   :  { %v1288_v17 = vpop.xlane.xlu0 %1287  ;;  %v1377_v42 = vadd.f32 %v1371_v40, %v1210_v41  ;;  %1666 = vmatpush.msra.mxu2 %v1643_v15 }
 0xc17   :  { %1909 = vrcp.f32 %v1288_v17  ;;  %v1642_v17 = vld [vmem:[%s2548_s11 + $0x10] sm:$0xff] }
 0xc18   :  { %1667 = vmatpush.msra.mxu2 %v1642_v17 }
 0xc1b   :  { %v1908_v18 = vpop.eup %1907 }
 0xc1c   :  { %v1450_v19 = vsel %vm108_vm1, %v1908_v18, 0.0 }
 0xc1d   :  { %v1910_v20 = vpop.eup %1909  ;;  %1451 = vadd.xlane.f32.xlu0 %v1450_v19  ;;  %v1449_v21 = vpop.xlane.xlu2 %1448 }
 0xc1e   :  { %v1292_v22 = vmul.f32 %v1910_v20, %v1904_v3  ;;  %1911 = vrcp.f32 %v1449_v21  ;;  %v1640_v20 = vld [vmem:[%s2548_s11] sm:$0xff] }
 0xc20   :  { %1808 = vst.msk [vmem:[%s2542_s19 + $0x28] sm:$0xff] %vm108_vm1, %v1292_v22  ;;  %1810 = vmatmul.msk.f32.vlgmr.msrb.gmra.mxu1 %vm108_vm1, %v1292_v22 }
 0xc24   :  { %v1912_v49 = vpop.eup %1911 }
 0xc25   :  { %v1455_v24 = vmul.f32 %v1912_v49, %v1906_v10  ;;  %v1461_v25 = vpop.permute.xlu2 %1460 }
 0xc26   :  { %1481 = vmatpush.msra.mxu1 %v1461_v25 }
 0xc27   :  { %1817 = vst.msk [vmem:[%s2542_s19 + $0x30] sm:$0xff] %vm108_vm1, %v1455_v24 }
 0xc28   :  { %1819 = vmatmul.msk.f32.vlgmr.msra.gmra.mxu1 %vm108_vm1, %v1455_v24 }
 0xc29   :  { %1627 = vmatpush.msrb.mxu1 %v1604_v54 }
 0xc2b   :  { %1628 = vmatpush.msrb.mxu1 %v1603_v34 }
 0xc2d   :  { %1629 = vmatpush.msrb.mxu1 %v1602_v55 }
 0xc31   :  { %1486 = vrot.lane.b32.xlu0 %v2308_v32, %s2565_s24 }
 0xc90   :  { %v1452_v28 = vpop.xlane.xlu0 %1451 }
 0xc91   :  { %1913 = vrcp.f32 %v1452_v28 }
 0xc97   :  { %v1914_v29 = vpop.eup %1913 }
 0xc98   :  { %v1456_v30 = vmul.f32 %v1914_v29, %v1908_v18  ;;  %v1641_v18 = vld [vmem:[%s2548_s11 + $0x8] sm:$0xff] }
 0xc99   :  { %1668 = vmatpush.msra.mxu2 %v1641_v18 }
 0xc9a   :  { %1818 = vst.msk [vmem:[%s2542_s19 + $0x38] sm:$0xff] %vm108_vm1, %v1456_v30 }
 0xc9b   :  { %1669 = vmatpush.msra.mxu2 %v1640_v20 }
 0xc9d   :  { %v1345_v31 = vpop.f32.mrf.mxu1 }
 0xc9e   :  { %1812 = vmatmul.msk.f32.gmra.mxu2 %vm108_vm1, %v1345_v31 }
 0xca3   :  { %v1487_v33 = vpop.permute.xlu0 %1486 }
 0xca4   :  { %1507 = vmatpush.msra.mxu0 %v1487_v33 }
 0xca5   :  { %v1483_v32 = vpop.f32.mrf.mxu1  ;;  %1820 = vmatmul.msk.f32.vlgmr.msra.gmra.mxu0 %vm108_vm1, %v1456_v30 }
 0xca6   :  { %1821 = vmatmul.msk.f32.vlgmr.msra.gmra.mxu3 %vm108_vm1, %v1483_v32  ;;  %v1843_v32 = vld [vmem:[%s2547_s10] ss:$0 sm:$0xff] }
 0xd21   :  { %v1374_v11 = vpop.f32.mrf.mxu2 }
 0xd22   :  { %v1509_v39 = vpop.f32.mrf.mxu0  ;;  %v1378_v6 = vadd.f32 %v1374_v11, %v1213_v47 }
 0xd23   :  { %1822 = vmatmul.msk.f32.gmra.mxu3 %vm108_vm1, %v1509_v39 }
 0xd29   :  { %v1535_v43 = vpop.f32.mrf.mxu3 }
 0xd2a   :  { %v1541_v9 = vadd.f32 %v1535_v43, %v1377_v42 }
 0xd2c   :  { %v1543_v45 = vadd.f32 %v1541_v9, %v2276_v23  ;;  %v1844_v9 = vld [vmem:[%s2549_s12] ss:$0 sm:$0xff] }
 0xd2e   :  { %v1547_v46 = vsel %vm67_vm0, %v1543_v45, 0.0 }
 0xd2f   :  { %1548 = vadd.xlane.f32.xlu1 %v1547_v46 }
 0xda2   :  { %v1549_v16 = vpop.xlane.xlu1 %1548 }
 0xda3   :  { %v1553_v48 = vmul.f32 %v1549_v16, %v2244_v36 }
 0xda5   :  { %v1555_v38 = vsub.f32 %v1543_v45, %v1553_v48 }
 0xda6   :  { %v1538_v5 = vpop.f32.mrf.mxu3 }
 0xda7   :  { %v1542_v51 = vadd.f32 %v1538_v5, %v1378_v6  ;;  %v1557_v52 = vmul.f32 %v1555_v38, %v1555_v38 }
 0xda9   :  { %v1559_v50 = vsel %vm67_vm0, %v1557_v52, 0.0  ;;  %v1544_v53 = vadd.f32 %v1542_v51, %v2294_v27  ;;  %v1601_v27 = vld [vmem:[%s2546_s9] sm:$0xff] }
 0xdaa   :  { %1560 = vadd.xlane.f32.xlu2 %v1559_v50  ;;  %1630 = vmatpush.msrb.mxu1 %v1601_v27 }
 0xdab   :  { %v1550_v23 = vsel %vm67_vm0, %v1544_v53, 0.0 }
 0xdac   :  { %1551 = vadd.xlane.f32.xlu0 %v1550_v23 }
 0xe1d   :  { %v1561_v56 = vpop.xlane.xlu2 %1560 }
 0xe1e   :  { %v1565_v57 = vmul.f32 %v1561_v56, %v2244_v36 }
 0xe1f   :  { %v1552_v58 = vpop.xlane.xlu0 %1551 }
 0xe20   :  { %v1567_v59 = vadd.f32 1e-05, %v1565_v57  ;;  %v1554_v60 = vmul.f32 %v1552_v58, %v2244_v36 }
 0xe22   :  { %1915 = vrsqrt.f32 %v1567_v59  ;;  %v1556_v61 = vsub.f32 %v1544_v53, %v1554_v60  ;;  %vm1575_vm10 = vweird.f32 %v1567_v59 }
 0xe24   :  { %v1558_v8 = vmul.f32 %v1556_v61, %v1556_v61 }
 0xe26   :  { %v1562_v62 = vsel %vm67_vm0, %v1558_v8, 0.0 }
 0xe27   :  { %1563 = vadd.xlane.f32.xlu1 %v1562_v62 }
 0xe28   :  { %v1916_v4 = vpop.eup %1915 }
 0xe29   :  { %v1570_v63 = vmul.f32 %v1916_v4, %v1567_v59  ;;  %vm1576_vm9 = vweird.f32 %v1916_v4 }
 0xe2a   :  { %vm1577_vm11 = vmor %vm1575_vm10, %vm1576_vm9 }
 0xe2b   :  { %v1571_v0 = vmul.f32 %v1916_v4, %v1570_v63 }
 0xe2d   :  { %v1572_v1 = vmul.f32 0.5, %v1571_v0 }
 0xe2f   :  { %v1573_v2 = vsub.f32 1.5, %v1572_v1 }
 0xe31   :  { %v1574_v3 = vmul.f32 %v1916_v4, %v1573_v2 }
 0xe33   :  { %v1578_v10 = vsel %vm1577_vm11, %v1916_v4, %v1574_v3 }
 0xe34   :  { %v1589_v12 = vmul.f32 %v1578_v10, %v1555_v38 }
 0xe36   :  { %v1594_v44 = vmul.f32 %v2477_v7, %v1589_v12 }
 0xe38   :  { %v1599_v14 = vadd.f32 %v2482_v13, %v1594_v44 }
 0xe3a   :  { %1823 = vmatmul.msk.f32.vlgmr.msrb.gmra.mxu1 %vm67_vm0, %v1599_v14 }
 0xe9a   :  { %v1564_v19 = vpop.xlane.xlu1 %1563 }
 0xe9b   :  { %v1566_v21 = vmul.f32 %v1564_v19, %v2244_v36 }
 0xe9d   :  { %v1568_v22 = vadd.f32 1e-05, %v1566_v21 }
 0xe9f   :  { %1917 = vrsqrt.f32 %v1568_v22  ;;  %vm1585_vm13 = vweird.f32 %v1568_v22 }
 0xea5   :  { %v1918_v49 = vpop.eup %1917 }
 0xea6   :  { %v1580_v24 = vmul.f32 %v1918_v49, %v1568_v22  ;;  %vm1586_vm12 = vweird.f32 %v1918_v49 }
 0xea7   :  { %vm1587_vm14 = vmor %vm1585_vm13, %vm1586_vm12 }
 0xea8   :  { %v1581_v25 = vmul.f32 %v1918_v49, %v1580_v24 }
 0xeaa   :  { %v1582_v26 = vmul.f32 0.5, %v1581_v25 }
 0xeac   :  { %v1583_v28 = vsub.f32 1.5, %v1582_v26 }
 0xeae   :  { %v1584_v29 = vmul.f32 %v1918_v49, %v1583_v28 }
 0xeb0   :  { %v1588_v30 = vsel %vm1587_vm14, %v1918_v49, %v1584_v29 }
 0xeb1   :  { %v1590_v31 = vmul.f32 %v1588_v30, %v1556_v61 }
 0xeb3   :  { %v1595_v33 = vmul.f32 %v2477_v7, %v1590_v31 }
 0xeb5   :  { %v1600_v35 = vadd.f32 %v2482_v13, %v1595_v33 }
 0xeb7   :  { %v1632_v37 = vpop.f32.mrf.mxu1  ;;  %1824 = vmatmul.msk.f32.gmra.mxu1 %vm67_vm0, %v1600_v35 }
 0xeb8   :  { %v1633_v39 = vadd.f32 %v1843_v32, %v1632_v37 }
 0xeba   :  { %v1638_v40 = vmax.f32 %v1633_v39, 0.0 }
 0xebc   :  { %1825 = vmatmul.msk.f32.vlgmr.msra.gmra.mxu2 %vm67_vm0, %v1638_v40 }
 0xf34   :  { %v1635_v41 = vpop.f32.mrf.mxu1 }
 0xf35   :  { %v1636_v42 = vadd.f32 %v1843_v32, %v1635_v41 }
 0xf37   :  { %v1639_v43 = vmax.f32 %v1636_v42, 0.0 }
 0xf39   :  { %1826 = vmatmul.msk.f32.gmra.mxu2 %vm67_vm0, %v1639_v43 }
 0xf3f   :  { %v1671_v45 = vpop.f32.mrf.mxu2 }
 0xf40   :  { %v1672_v46 = vadd.f32 %v1844_v9, %v1671_v45 }
 0xf42   :  { %v1677_v11 = vadd.f32 %v1672_v46, %v1599_v14 }
 0xf44   :  { %v1679_v16 = vsel %vm67_vm0, %v1677_v11, 0.0 }
 0xf45   :  { %1680 = vadd.xlane.f32.xlu0 %v1679_v16 }
 0xfb8   :  { %v1681_v47 = vpop.xlane.xlu0 %1680 }
 0xfb9   :  { %v1685_v48 = vmul.f32 %v1681_v47, %v2244_v36 }
 0xfbb   :  { %v1687_v6 = vsub.f32 %v1677_v11, %v1685_v48 }
 0xfbc   :  { %v1674_v38 = vpop.f32.mrf.mxu2 }
 0xfbd   :  { %v1675_v5 = vadd.f32 %v1844_v9, %v1674_v38  ;;  %v1689_v51 = vmul.f32 %v1687_v6, %v1687_v6 }
 0xfbf   :  { %v1691_v52 = vsel %vm67_vm0, %v1689_v51, 0.0  ;;  %v1678_v50 = vadd.f32 %v1675_v5, %v1600_v35 }
 0xfc0   :  { %1692 = vadd.xlane.f32.xlu1 %v1691_v52 }
 0xfc1   :  { %v1682_v53 = vsel %vm67_vm0, %v1678_v50, 0.0 }
 0xfc2   :  { %1683 = vadd.xlane.f32.xlu2 %v1682_v53 }
0x1033   :  { %v1693_v23 = vpop.xlane.xlu1 %1692 }
0x1034   :  { %v1697_v54 = vmul.f32 %v1693_v23, %v2244_v36 }
0x1035   :  { %v1684_v34 = vpop.xlane.xlu2 %1683 }
0x1036   :  { %v1699_v55 = vadd.f32 1e-05, %v1697_v54  ;;  %v1686_v27 = vmul.f32 %v1684_v34, %v2244_v36 }
0x1038   :  { %1919 = vrsqrt.f32 %v1699_v55  ;;  %v1688_v56 = vsub.f32 %v1678_v50, %v1686_v27  ;;  %vm1707_vm1 = vweird.f32 %v1699_v55 }
0x103a   :  { %v1690_v57 = vmul.f32 %v1688_v56, %v1688_v56 }
0x103c   :  { %v1694_v58 = vsel %vm67_vm0, %v1690_v57, 0.0 }
0x103d   :  { %1695 = vadd.xlane.f32.xlu0 %v1694_v58 }
0x103e   :  { %v1920_v59 = vpop.eup %1919 }
0x103f   :  { %v1702_v60 = vmul.f32 %v1920_v59, %v1699_v55  ;;  %vm1708_vm15 = vweird.f32 %v1920_v59 }
0x1040   :  { %vm1709_vm2 = vmor %vm1707_vm1, %vm1708_vm15 }
0x1041   :  { %v1703_v61 = vmul.f32 %v1920_v59, %v1702_v60 }
0x1043   :  { %v1704_v8 = vmul.f32 0.5, %v1703_v61 }
0x1045   :  { %v1705_v62 = vsub.f32 1.5, %v1704_v8 }
0x1047   :  { %v1706_v4 = vmul.f32 %v1920_v59, %v1705_v62 }
0x1049   :  { %v1710_v63 = vsel %vm1709_vm2, %v1920_v59, %v1706_v4 }
0x104a   :  { %v1721_v0 = vmul.f32 %v1710_v63, %v1687_v6 }
0x104c   :  { %v1723_v1 = vmul.f32 %v2477_v7, %v1721_v0 }
0x104e   :  { %v1725_v2 = vadd.f32 %v2482_v13, %v1723_v1 }
0x1050   :  { %1727 = vst.msk [vmem:[%s2550_s17] sm:$0xff] %vm67_vm0, %v1725_v2 }
0x10b0   :  { %v1696_v3 = vpop.xlane.xlu0 %1695 }
0x10b1   :  { %v1698_v10 = vmul.f32 %v1696_v3, %v2244_v36 }
0x10b3   :  { %v1700_v12 = vadd.f32 1e-05, %v1698_v10 }
0x10b5   :  { %1921 = vrsqrt.f32 %v1700_v12  ;;  %vm1717_vm4 = vweird.f32 %v1700_v12 }
0x10bb   :  { %v1922_v44 = vpop.eup %1921 }
0x10bc   :  { %v1712_v14 = vmul.f32 %v1922_v44, %v1700_v12  ;;  %vm1718_vm3 = vweird.f32 %v1922_v44 }
0x10bd   :  { %vm1719_vm5 = vmor %vm1717_vm4, %vm1718_vm3 }
0x10be   :  { %v1713_v15 = vmul.f32 %v1922_v44, %v1712_v14 }
0x10c0   :  { %v1714_v17 = vmul.f32 0.5, %v1713_v15 }
0x10c2   :  { %v1715_v18 = vsub.f32 1.5, %v1714_v17 }
0x10c4   :  { %v1716_v19 = vmul.f32 %v1922_v44, %v1715_v18 }
0x10c6   :  { %v1720_v20 = vsel %vm1719_vm5, %v1922_v44, %v1716_v19 }
0x10c7   :  { %v1722_v21 = vmul.f32 %v1720_v20, %v1688_v56 }
0x10c9   :  { %v1724_v22 = vmul.f32 %v2477_v7, %v1722_v21 }
0x10cb   :  { %v1726_v49 = vadd.f32 %v2482_v13, %v1724_v22 }
0x10cd   :  { %1728 = vst.msk [vmem:[%s2550_s17 + $0x8] sm:$0xff] %vm67_vm0, %v1726_v49 }

// kernel: transformer_forward.8
= control target key start
LH: loop header
LB: loop body
LE: loop exit
PB: predicated region body
PF: predicated region fallthrough
CT: control target
= control target key end

     0   :  { %s2781_s0 = inlined_call_operand.vmem [shape: f32[16,32], index: 0, kind: input, shape index: {}]   ;;  %s2782_s1 = inlined_call_operand.vmem [shape: f32[16,32], index: 1, kind: input, shape index: {}]   ;;  %s2783_s2 = inlined_call_operand.vmem [shape: f32[2,8,8], index: 2, kind: input, shape index: {}]   ;;  %s2784_s3 = inlined_call_operand.vmem [shape: f32[2,8,8], index: 3, kind: input, shape index: {}]   ;;  %s2785_s4 = inlined_call_operand.vmem [shape: f32[32,96], index: 4, kind: input, shape index: {}]   ;;  %s2786_s5 = inlined_call_operand.vmem [shape: f32[32,32], index: 5, kind: input, shape index: {}]   ;;  %s2787_s6 = inlined_call_operand.vmem [shape: f32[32,32], index: 6, kind: input, shape index: {}]   ;;  %s2788_s7 = inlined_call_operand.vmem [shape: f32[32,64], index: 7, kind: input, shape index: {}]   ;;  %s2789_s8 = inlined_call_operand.vmem [shape: f32[32,32], index: 8, kind: input, shape index: {}]   ;;  %s2790_s9 = inlined_call_operand.vmem [shape: f32[32,32], index: 9, kind: input, shape index: {}]   ;;  %s2791_s10 = inlined_call_operand.hbm [shape: f32[1,32], index: 10, kind: input, shape index: {}]   ;;  %s2792_s11 = inlined_call_operand.vmem [shape: f32[32,32], index: 11, kind: input, shape index: {}]   ;;  %s2793_s12 = inlined_call_operand.hbm [shape: f32[1,32], index: 12, kind: input, shape index: {}]   ;;  %s2794_s13 = inlined_call_operand.hbm [shape: f32[1,32], index: 13, kind: input, shape index: {}]   ;;  %s2795_s14 = inlined_call_operand.hbm [shape: f32[1,32], index: 14, kind: input, shape index: {}]   ;;  %s2796_s15 = inlined_call_operand.hbm [shape: f32[1,32], index: 15, kind: input, shape index: {}]   ;;  %s2797_s16 = inlined_call_operand.hbm [shape: f32[1,32], index: 16, kind: input, shape index: {}]   ;;  %s2798_s17 = inlined_call_operand.vmem [shape: f32[16,32], index: 17, kind: output, shape index: {0}]   ;;  %s2799_s18 = inlined_call_operand.vmem [shape: f32[4,2,8,8], index: 18, kind: output, shape index: {1}]   ;;  %s2800_s19 = inlined_call_operand.vmem [shape: f32[4,2,8,8], index: 19, kind: output, shape index: {2}]  }
   0x1   :  { %2805 = sst [smem:[#allocation16_spill]] %s2781_s0 }
   0x2   :  { %2806 = sst [smem:[#allocation17_spill]] %s2782_s1 }
   0x3   :  { %2807 = sst [smem:[#allocation18_spill]] %s2783_s2 }
   0x4   :  { %2808 = sst [smem:[#allocation19_spill]] %s2784_s3 }
   0x5   :  { %25 = vsyncpa [#allocation3], 0 }
   0x6   :  { %26 = vsyncpa [#allocation5], 0 }
   0x7   :  { %27 = vsyncpa [#allocation8], 0  ;;  %s67_s20 = sshll.u32 %s2793_s12, 4  ;;  %s68_s20 = int_to_ptr.hbm [resolvable:$true] %s67_s20 }
   0x8   :  { %28 = vsyncpa [#allocation11], 0  ;;  %s2167_s21 = smov [#allocation4]   ;;  %s89_s23 = sshll.u32 %s2795_s14, 4  ;;  %s90_s23 = int_to_ptr.hbm [resolvable:$true] %s89_s23 }
   0x9   :  { %s69_s1 = sshll.u32 %s2167_s21, 4  ;;  %s2168_s24 = smov [#allocation7]   ;;  %s70_s1 = int_to_ptr.vmem [resolvable:$true] %s69_s1 }
   0xa   :  { %72 = dma.hbm_to_vmem [thread:$0]  %s68_s20, 16, %s70_s1, [#allocation5]  }
   0xb   :  { %s91_s25 = sshll.u32 %s2168_s24, 4  ;;  %s54_s27 = sshll.u32 %s2791_s10, 4  ;;  %s92_s25 = int_to_ptr.vmem [resolvable:$true] %s91_s25  ;;  %s55_s27 = int_to_ptr.hbm [resolvable:$true] %s54_s27 }
   0xc   :  { %94 = dma.hbm_to_vmem [thread:$0]  %s90_s23, 16, %s92_s25, [#allocation8]  }
   0xd   :  { %s78_s29 = sshll.u32 %s2794_s13, 4  ;;  %s2169_s0 = smov [#allocation2]   ;;  %s79_s29 = int_to_ptr.hbm [resolvable:$true] %s78_s29 }
   0xe   :  { %s56_s30 = sshll.u32 %s2169_s0, 4  ;;  %s2170_s14 = smov [#allocation6]   ;;  %s57_s30 = int_to_ptr.vmem [resolvable:$true] %s56_s30 }
   0xf   :  { %59 = dma.hbm_to_vmem [thread:$0]  %s55_s27, 16, %s57_s30, [#allocation3]  }
  0x10   :  { %s80_s20 = sshll.u32 %s2170_s14, 4  ;;  %s100_s22 = sshll.u32 %s2796_s15, 4  ;;  %s81_s20 = int_to_ptr.vmem [resolvable:$true] %s80_s20  ;;  %s101_s22 = int_to_ptr.hbm [resolvable:$true] %s100_s22 }
  0x11   :  { %83 = dma.hbm_to_vmem [thread:$0]  %s79_s29, 16, %s81_s20, [#allocation5]  }
  0x12   :  { %s111_s23 = sshll.u32 %s2797_s16, 4  ;;  %s2171_s24 = smov [#allocation9]   ;;  %s112_s23 = int_to_ptr.hbm [resolvable:$true] %s111_s23 }
  0x13   :  { %s102_s13 = sshll.u32 %s2171_s24, 4  ;;  %s2172_s25 = smov [#allocation10]   ;;  %s103_s13 = int_to_ptr.vmem [resolvable:$true] %s102_s13 }
  0x14   :  { %105 = dma.hbm_to_vmem [thread:$0]  %s101_s22, 16, %s103_s13, [#allocation8]  }
  0x15   :  { %s113_s3 = sshll.u32 %s2172_s25, 4  ;;  %s114_s3 = int_to_ptr.vmem [resolvable:$true] %s113_s3 }
  0x16   :  { %116 = dma.hbm_to_vmem [thread:$0]  %s112_s23, 16, %s114_s3, [#allocation11]  }
  0x17   :  { %2159 = dma.done.wait [#allocation3], 16  }
  0x18   :  { %2160 = vsyncadd [#allocation3], 4294967280 }
  0x19   :  { %2161 = dma.done.wait [#allocation5], 32  }
  0x1a   :  { %2162 = vsyncadd [#allocation5], 4294967264 }
  0x1b   :  { %2163 = dma.done.wait [#allocation8], 32  }
  0x1c   :  { %2164 = vsyncadd [#allocation8], 4294967264 }
  0x1d   :  { %2165 = dma.done.wait [#allocation11], 16  }
  0x1e   :  { %2166 = vsyncadd [#allocation11], 4294967280  ;;  %v148_v0 = vld [vmem:[%s2785_s4 + $0x18] sm:$0xff]  ;;  %v147_v1 = vld [vmem:[%s2785_s4 + $0x10] sm:$0xff]  ;;  %s2809_s20 = sld [smem:[#allocation16_spill]]  ;;  %vm149_vm0 = vcmask 261120  }
  0x1f   :  { %168 = vmatpush.msra.mxu0 %v148_v0  ;;  %v146_v2 = vld [vmem:[%s2785_s4 + $0x8] sm:$0xff]  ;;  %v145_v3 = vld [vmem:[%s2785_s4] sm:$0xff]  ;;  %s2173_s4 = smov 88   ;;  %s2174_s22 = smov 96   ;;  %vm190_vm1 = vcmask 64512  }
  0x20   :  { %s2175_s10 = smov 120   ;;  %s2810_s24 = sld [smem:[#allocation18_spill]]  ;;  %v179_v56 = vld [vmem:[%s2786_s5] sm:$0xff] }
  0x21   :  { %169 = vmatpush.msra.mxu0 %v147_v1  ;;  %s2176_s3 = smov 64   ;;  %s2177_s15 = smov 80  }
  0x22   :  { %s2178_s26 = smov 112   ;;  %s2179_s16 = smov 56  }
  0x23   :  { %170 = vmatpush.msra.mxu0 %v146_v2  ;;  %s2180_s27 = smov 72   ;;  %s2181_s12 = smov 104  }
  0x24   :  { %v2318_v4 = vld [vmem:[%s2809_s20] sm:$0xff]  ;;  %v2325_v5 = vld [vmem:[%s2809_s20 + $0x8] sm:$0xff]  ;;  %s2182_s28 = smov 48   ;;  %s2811_s20 = sld [smem:[#allocation17_spill]] }
  0x25   :  { %171 = vmatpush.msra.mxu0 %v145_v3 }
  0x26   :  { %1827 = vmatmul.msk.f32.vlgmr.msra.gmra.mxu0 %vm149_vm0, %v2318_v4  ;;  %v2364_v16 = vld [vmem:[%s2810_s24] sm:$0xff]  ;;  %v2373_v23 = vld [vmem:[%s2810_s24 + $0x8] sm:$0xff] }
  0x2e   :  { %1828 = vmatmul.msk.f32.gmra.mxu0 %vm149_vm0, %v2325_v5 }
  0xa3   :  { %v2329_v6 = vpop.f32.mrf.mxu0 }
  0xa4   :  { %322 = vrot.lane.b32.xlu1 %v2329_v6, %s2173_s4  ;;  %188 = vrot.lane.b32.xlu0 %v2329_v6, %s2174_s22  ;;  %v2336_v7 = vmul.f32 0.35355338, %v2329_v6 }
  0xab   :  { %v2338_v8 = vpop.f32.mrf.mxu0 }
  0xac   :  { %320 = vrot.lane.b32.xlu1 %v2336_v7, %s2175_s10  ;;  %350 = vrot.lane.b32.xlu2 %v2338_v8, %s2173_s4  ;;  %v2347_v9 = vmul.f32 0.35355338, %v2338_v8 }
  0xad   :  { %217 = vrot.lane.b32.xlu0 %v2338_v8, %s2174_s22 }
  0xb4   :  { %348 = vrot.lane.b32.xlu2 %v2347_v9, %s2175_s10 }
 0x106   :  { %v351_v14 = vpop.permute.xlu2 %350 }
 0x10e   :  { %v349_v15 = vpop.permute.xlu2 %348 }
 0x116   :  { %v323_v10 = vpop.permute.xlu1 %322  ;;  %v189_v11 = vpop.permute.xlu0 %188 }
 0x117   :  { %1829 = vmatpush.xpose.msk.msrb.mxu0 %vm190_vm1, %v189_v11  ;;  %1835 = vmatpush.xpose.msk.msra.mxu1 %vm190_vm1, %v323_v10 }
 0x11a   :  { %1830 = vmatmul.msk.f32.vlgmr.msrb.gmra.mxu0 %vm190_vm1, %v2336_v7 }
 0x11b   :  { %503 = vmatpush.msra.mxu0 %v179_v56 }
 0x11e   :  { %v321_v12 = vpop.permute.xlu1 %320 }
 0x11f   :  { %v218_v13 = vpop.permute.xlu0 %217  ;;  %1836 = vmatmul.msk.f32.vlgmr.msra.gmra.mxu1 %vm190_vm1, %v321_v12 }
 0x120   :  { %1831 = vmatpush.xpose.msk.msra.mxu2 %vm190_vm1, %v218_v13 }
 0x123   :  { %1832 = vmatmul.msk.f32.vlgmr.msra.gmra.mxu2 %vm190_vm1, %v2347_v9 }
 0x124   :  { %1837 = vmatpush.xpose.msk.msrb.mxu2 %vm190_vm1, %v351_v14 }
 0x12b   :  { %1838 = vmatmul.msk.f32.vlgmr.msrb.gmra.mxu2 %vm190_vm1, %v349_v15 }
 0x197   :  { %v213_v17 = vpop.f32.mrf.mxu0 }
 0x198   :  { %v214_v18 = vadd.f32 %v213_v17, %v2364_v16  ;;  %v180_v17 = vld [vmem:[%s2786_s5 + $0x8] sm:$0xff] }
 0x199   :  { %474 = vmatpush.msra.mxu2 %v180_v17 }
 0x19a   :  { %v244_v19 = vsel %vm190_vm1, %v214_v18, -inf }
 0x19b   :  { %245 = vmax.xlane.f32.xlu0 %v244_v19 }
 0x19c   :  { %v345_v20 = vpop.f32.mrf.mxu1 }
 0x19d   :  { %v346_v21 = vadd.f32 %v345_v20, %v2364_v16 }
 0x19f   :  { %v376_v22 = vsel %vm190_vm1, %v346_v21, -inf }
 0x1a0   :  { %377 = vmax.xlane.f32.xlu2 %v376_v22 }
 0x1a6   :  { %v241_v24 = vpop.f32.mrf.mxu2 }
 0x1a7   :  { %v242_v25 = vadd.f32 %v241_v24, %v2373_v23 }
 0x1a9   :  { %v247_v26 = vsel %vm190_vm1, %v242_v25, -inf }
 0x1aa   :  { %248 = vmax.xlane.f32.xlu1 %v247_v26 }
 0x1ae   :  { %v373_v27 = vpop.f32.mrf.mxu2 }
 0x1af   :  { %v374_v28 = vadd.f32 %v373_v27, %v2373_v23 }
 0x1b1   :  { %v379_v29 = vsel %vm190_vm1, %v374_v28, -inf }
 0x1c3   :  { %268 = vrot.lane.b32.xlu1 %v2329_v6, %s2176_s3 }
 0x1cb   :  { %513 = vrot.lane.b32.xlu1 %v2329_v6, %s2177_s15 }
 0x1f5   :  { %380 = vmax.xlane.f32.xlu1 %v379_v29 }
 0x20e   :  { %v246_v30 = vpop.xlane.xlu0 %245 }
 0x20f   :  { %v250_v31 = vsub.f32 %v214_v18, %v246_v30 }
 0x211   :  { %v252_v32 = vmul.f32 1.442695, %v250_v31 }
 0x213   :  { %1937 = vpow2.f32 %v252_v32  ;;  %v378_v35 = vpop.xlane.xlu2 %377 }
 0x214   :  { %v382_v38 = vsub.f32 %v346_v21, %v378_v35 }
 0x216   :  { %v384_v40 = vmul.f32 1.442695, %v382_v38 }
 0x219   :  { %v1938_v33 = vpop.eup %1937 }
 0x21a   :  { %v256_v34 = vsel %vm190_vm1, %v1938_v33, 0.0 }
 0x21b   :  { %257 = vadd.xlane.f32.xlu2 %v256_v34 }
 0x21d   :  { %v249_v36 = vpop.xlane.xlu1 %248 }
 0x21e   :  { %v251_v37 = vsub.f32 %v242_v25, %v249_v36 }
 0x220   :  { %v254_v39 = vmul.f32 1.442695, %v251_v37 }
 0x222   :  { %1939 = vpow2.f32 %v254_v39 }
 0x223   :  { %1941 = vpow2.f32 %v384_v40 }
 0x228   :  { %v1940_v41 = vpop.eup %1939 }
 0x229   :  { %v259_v42 = vsel %vm190_vm1, %v1940_v41, 0.0  ;;  %v1942_v43 = vpop.eup %1941 }
 0x22a   :  { %260 = vadd.xlane.f32.xlu0 %v259_v42  ;;  %v388_v44 = vsel %vm190_vm1, %v1942_v43, 0.0 }
 0x232   :  { %389 = vadd.xlane.f32.xlu0 %v388_v44 }
 0x233   :  { %294 = vrot.lane.b32.xlu2 %v2338_v8, %s2176_s3  ;;  %s2183_s3 = smov 40  }
 0x235   :  { %v269_v45 = vpop.permute.xlu1 %268 }
 0x236   :  { %289 = vmatpush.msra.mxu3 %v269_v45 }
 0x23b   :  { %511 = vrot.lane.b32.xlu2 %v2336_v7, %s2178_s26 }
 0x23d   :  { %v514_v46 = vpop.permute.xlu1 %513 }
 0x243   :  { %427 = vrot.lane.b32.xlu2 %v2338_v8, %s2179_s16 }
 0x246   :  { %401 = vrot.lane.b32.xlu0 %v2329_v6, %s2179_s16 }
 0x24b   :  { %541 = vrot.lane.b32.xlu2 %v2338_v8, %s2177_s15 }
 0x253   :  { %539 = vrot.lane.b32.xlu2 %v2347_v9, %s2178_s26 }
 0x25b   :  { %677 = vrot.lane.b32.xlu2 %v2329_v6, %s2180_s27 }
 0x263   :  { %675 = vrot.lane.b32.xlu2 %v2336_v7, %s2181_s12 }
 0x268   :  { %v381_v47 = vpop.xlane.xlu1 %380 }
 0x269   :  { %v383_v48 = vsub.f32 %v374_v28, %v381_v47 }
 0x26b   :  { %v386_v49 = vmul.f32 1.442695, %v383_v48  ;;  %592 = vrot.lane.b32.xlu2 %v2329_v6, %s2182_s28 }
 0x26d   :  { %1943 = vpow2.f32 %v386_v49 }
 0x273   :  { %v1944_v50 = vpop.eup %1943 }
 0x274   :  { %v391_v51 = vsel %vm190_vm1, %v1944_v50, 0.0 }
 0x275   :  { %392 = vadd.xlane.f32.xlu0 %v391_v51 }
 0x28e   :  { %v258_v52 = vpop.xlane.xlu2 %257 }
 0x28f   :  { %1945 = vrcp.f32 %v258_v52 }
 0x295   :  { %v1946_v53 = vpop.eup %1945 }
 0x296   :  { %v295_v54 = vpop.permute.xlu2 %294  ;;  %v264_v55 = vmul.f32 %v1946_v53, %v1938_v33  ;;  %v181_v53 = vld [vmem:[%s2786_s5 + $0x10] sm:$0xff] }
 0x297   :  { %315 = vmatpush.msrb.mxu3 %v295_v54  ;;  %665 = vmatpush.msrb.mxu2 %v181_v53 }
 0x298   :  { %266 = vst.msk [vmem:[%s2799_s18] sm:$0xff] %vm190_vm1, %v264_v55  ;;  %1833 = vmatmul.msk.f32.vlgmr.msra.gmra.mxu3 %vm190_vm1, %v264_v55 }
 0x29d   :  { %v261_v57 = vpop.xlane.xlu0 %260 }
 0x29e   :  { %1947 = vrcp.f32 %v261_v57  ;;  %v512_v58 = vpop.permute.xlu2 %511 }
 0x2a4   :  { %v1948_v59 = vpop.eup %1947 }
 0x2a5   :  { %v390_v60 = vpop.xlane.xlu0 %389  ;;  %v265_v61 = vmul.f32 %v1948_v59, %v1940_v41 }
 0x2a6   :  { %1949 = vrcp.f32 %v390_v60  ;;  %v428_v62 = vpop.permute.xlu2 %427 }
 0x2a7   :  { %267 = vst.msk [vmem:[%s2799_s18 + $0x8] sm:$0xff] %vm190_vm1, %v265_v61  ;;  %1834 = vmatmul.msk.f32.vlgmr.msrb.gmra.mxu3 %vm190_vm1, %v265_v61  ;;  %448 = vmatpush.msrb.mxu1 %v428_v62 }
 0x2ac   :  { %v1950_v63 = vpop.eup %1949 }
 0x2ad   :  { %v396_v0 = vmul.f32 %v1950_v63, %v1942_v43 }
 0x2ae   :  { %v542_v1 = vpop.permute.xlu2 %541 }
 0x2af   :  { %1839 = vst.msk [vmem:[%s2799_s18 + $0x10] sm:$0xff] %vm190_vm1, %v396_v0  ;;  %1849 = vmatpush.xpose.msk.msra.mxu1 %vm190_vm1, %v542_v1 }
 0x2b6   :  { %v540_v2 = vpop.permute.xlu2 %539 }
 0x2b8   :  { %v402_v3 = vpop.permute.xlu0 %401 }
 0x2b9   :  { %422 = vmatpush.msra.mxu3 %v402_v3  ;;  %v182_v3 = vld [vmem:[%s2786_s5 + $0x18] sm:$0xff] }
 0x2ba   :  { %1841 = vmatmul.msk.f32.vlgmr.msra.gmra.mxu3 %vm190_vm1, %v396_v0 }
 0x2bb   :  { %1847 = vmatpush.xpose.msk.msrb.mxu3 %vm190_vm1, %v514_v46 }
 0x2be   :  { %v678_v7 = vpop.permute.xlu2 %677 }
 0x2bf   :  { %1857 = vmatpush.xpose.msk.msrb.mxu0 %vm190_vm1, %v678_v7 }
 0x2c2   :  { %1848 = vmatmul.msk.f32.vlgmr.msrb.gmra.mxu3 %vm190_vm1, %v512_v58 }
 0x2c6   :  { %v676_v10 = vpop.permute.xlu2 %675 }
 0x2ce   :  { %v593_v11 = vpop.permute.xlu2 %592 }
 0x2cf   :  { %613 = vmatpush.msra.mxu3 %v593_v11 }
 0x2e8   :  { %v393_v12 = vpop.xlane.xlu0 %392 }
 0x2e9   :  { %1951 = vrcp.f32 %v393_v12 }
 0x2ef   :  { %v1952_v13 = vpop.eup %1951 }
 0x2f0   :  { %v397_v14 = vmul.f32 %v1952_v13, %v1944_v50 }
 0x2f2   :  { %1840 = vst.msk [vmem:[%s2799_s18 + $0x18] sm:$0xff] %vm190_vm1, %v397_v14  ;;  %1842 = vmatmul.msk.f32.vlgmr.msrb.gmra.mxu1 %vm190_vm1, %v397_v14 }
 0x2fa   :  { %1850 = vmatmul.msk.f32.vlgmr.msra.gmra.mxu1 %vm190_vm1, %v540_v2 }
 0x31b   :  { %v291_v15 = vpop.f32.mrf.mxu3 }
 0x31c   :  { %1845 = vmatmul.msk.f32.vlgmr.msra.gmra.mxu0 %vm190_vm1, %v291_v15 }
 0x32a   :  { %v317_v18 = vpop.f32.mrf.mxu3 }
 0x32b   :  { %1846 = vmatmul.msk.f32.gmra.mxu0 %vm190_vm1, %v317_v18 }
 0x333   :  { %1858 = vmatmul.msk.f32.vlgmr.msrb.gmra.mxu0 %vm190_vm1, %v676_v10 }
 0x33d   :  { %v424_v19 = vpop.f32.mrf.mxu3 }
 0x33e   :  { %1843 = vmatmul.msk.f32.vlgmr.msra.gmra.mxu2 %vm190_vm1, %v424_v19 }
 0x345   :  { %v536_v20 = vpop.f32.mrf.mxu3 }
 0x346   :  { %v537_v21 = vadd.f32 %v536_v20, %v2364_v16 }
 0x348   :  { %v567_v22 = vsel %vm190_vm1, %v537_v21, -inf }
 0x349   :  { %568 = vmax.xlane.f32.xlu1 %v567_v22 }
 0x362   :  { %705 = vrot.lane.b32.xlu1 %v2338_v8, %s2180_s27 }
 0x36f   :  { %v450_v24 = vpop.f32.mrf.mxu1 }
 0x370   :  { %1844 = vmatmul.msk.f32.gmra.mxu2 %vm190_vm1, %v450_v24 }
 0x377   :  { %v564_v25 = vpop.f32.mrf.mxu1 }
 0x378   :  { %v565_v26 = vadd.f32 %v564_v25, %v2373_v23 }
 0x37a   :  { %v570_v27 = vsel %vm190_vm1, %v565_v26, -inf }
 0x37b   :  { %571 = vmax.xlane.f32.xlu2 %v570_v27  ;;  %v940_v27 = vld [vmem:[%s2788_s7 + $0x18] sm:$0xff] }
 0x37c   :  { %959 = vmatpush.msra.mxu2 %v940_v27 }
 0x399   :  { %v2447_v34 = vpop.f32.mrf.mxu0 }
 0x3a8   :  { %v2449_v38 = vpop.f32.mrf.mxu0 }
 0x3b0   :  { %v700_v41 = vpop.f32.mrf.mxu0 }
 0x3b1   :  { %v701_v42 = vadd.f32 %v700_v41, %v2364_v16 }
 0x3b3   :  { %v731_v43 = vsel %vm190_vm1, %v701_v42, -inf }
 0x3bc   :  { %v569_v28 = vpop.xlane.xlu1 %568 }
 0x3bd   :  { %v573_v29 = vsub.f32 %v537_v21, %v569_v28  ;;  %v939_v28 = vld [vmem:[%s2788_s7 + $0x10] sm:$0xff] }
 0x3be   :  { %960 = vmatpush.msra.mxu2 %v939_v28 }
 0x3bf   :  { %v575_v30 = vmul.f32 1.442695, %v573_v29 }
 0x3c1   :  { %1953 = vpow2.f32 %v575_v30  ;;  %v476_v14 = vpop.f32.mrf.mxu2  ;;  %v937_v30 = vld [vmem:[%s2788_s7] sm:$0xff] }
 0x3c2   :  { %v506_v18 = vadd.f32 %v2447_v34, %v476_v14 }
 0x3c7   :  { %v1954_v31 = vpop.eup %1953 }
 0x3c8   :  { %v579_v32 = vsel %vm190_vm1, %v1954_v31, 0.0 }
 0x3c9   :  { %580 = vadd.xlane.f32.xlu0 %v579_v32 }
 0x3d4   :  { %v706_v33 = vpop.permute.xlu1 %705 }
 0x3d5   :  { %1859 = vmatpush.xpose.msk.msrb.mxu3 %vm190_vm1, %v706_v33 }
 0x3dd   :  { %703 = vrot.lane.b32.xlu0 %v2347_v9, %s2181_s12 }
 0x3ee   :  { %v572_v35 = vpop.xlane.xlu2 %571 }
 0x3ef   :  { %v574_v36 = vsub.f32 %v565_v26, %v572_v35  ;;  %v2184_v26 = vmov 32.0  }
 0x3f1   :  { %v577_v37 = vmul.f32 1.442695, %v574_v36 }
 0x3f3   :  { %1955 = vpow2.f32 %v577_v37  ;;  %v479_v15 = vpop.f32.mrf.mxu2 }
 0x3f9   :  { %v1956_v39 = vpop.eup %1955 }
 0x3fa   :  { %v582_v40 = vsel %vm190_vm1, %v1956_v39, 0.0 }
 0x3fb   :  { %583 = vadd.xlane.f32.xlu1 %v582_v40 }
 0x407   :  { %732 = vmax.xlane.f32.xlu0 %v731_v43 }
 0x41b   :  { %756 = vrot.lane.b32.xlu0 %v2329_v6, %s2183_s3 }
 0x43c   :  { %v581_v9 = vpop.xlane.xlu0 %580 }
 0x43d   :  { %1957 = vrcp.f32 %v581_v9  ;;  %v509_v9 = vadd.f32 %v2449_v38, %v479_v15  ;;  %v905_v38 = vld [vmem:[%s2787_s6 + $0x8] sm:$0xff] }
 0x443   :  { %v1958_v44 = vpop.eup %1957 }
 0x444   :  { %v587_v45 = vmul.f32 %v1958_v44, %v1954_v31  ;;  %v143_v31 = vld [vmem:[%s2811_s20] sm:$0xff] }
 0x446   :  { %1851 = vst.msk [vmem:[%s2799_s18 + $0x20] sm:$0xff] %vm190_vm1, %v587_v45  ;;  %1853 = vmatmul.msk.f32.vlgmr.msra.gmra.mxu3 %vm190_vm1, %v587_v45 }
 0x447   :  { %829 = vmatpush.msra.mxu3 %v182_v3 }
 0x44f   :  { %v704_v46 = vpop.permute.xlu0 %703 }
 0x450   :  { %1860 = vmatmul.msk.f32.vlgmr.msrb.gmra.mxu3 %vm190_vm1, %v704_v46 }
 0x46e   :  { %v584_v16 = vpop.xlane.xlu1 %583 }
 0x46f   :  { %1959 = vrcp.f32 %v584_v16 }
 0x475   :  { %v1960_v47 = vpop.eup %1959 }
 0x476   :  { %v588_v48 = vmul.f32 %v1960_v47, %v1956_v39 }
 0x478   :  { %1852 = vst.msk [vmem:[%s2799_s18 + $0x28] sm:$0xff] %vm190_vm1, %v588_v48 }
 0x47a   :  { %v733_v6 = vpop.xlane.xlu0 %732 }
 0x47b   :  { %v737_v49 = vsub.f32 %v701_v42, %v733_v6  ;;  %v906_v6 = vld [vmem:[%s2787_s6 + $0x10] sm:$0xff] }
 0x47d   :  { %v739_v50 = vmul.f32 1.442695, %v737_v49 }
 0x47f   :  { %1961 = vpow2.f32 %v739_v50 }
 0x485   :  { %v1962_v51 = vpop.eup %1961 }
 0x486   :  { %v743_v52 = vsel %vm190_vm1, %v1962_v51, 0.0 }
 0x487   :  { %744 = vadd.xlane.f32.xlu2 %v743_v52 }
 0x49f   :  { %618 = vrot.lane.b32.xlu2 %v2338_v8, %s2182_s28 }
 0x4a7   :  { %782 = vrot.lane.b32.xlu2 %v2338_v8, %s2183_s3  ;;  %v757_v8 = vpop.permute.xlu0 %756  ;;  %s2812_s3 = sld [smem:[#allocation19_spill]] }
 0x4c9   :  { %v615_v54 = vpop.f32.mrf.mxu3 }
 0x4ca   :  { %1855 = vmatmul.msk.f32.vlgmr.msrb.gmra.mxu2 %vm190_vm1, %v615_v54 }
 0x4d3   :  { %v728_v55 = vpop.f32.mrf.mxu3 }
 0x4d4   :  { %v729_v56 = vadd.f32 %v728_v55, %v2373_v23 }
 0x4d6   :  { %v734_v57 = vsel %vm190_vm1, %v729_v56, -inf }
 0x4d7   :  { %735 = vmax.xlane.f32.xlu1 %v734_v57 }
 0x4fa   :  { %v745_v58 = vpop.xlane.xlu2 %744 }
 0x4fb   :  { %1963 = vrcp.f32 %v745_v58 }
 0x501   :  { %v1964_v59 = vpop.eup %1963 }
 0x502   :  { %v751_v60 = vmul.f32 %v1964_v59, %v1962_v51  ;;  %v619_v61 = vpop.permute.xlu2 %618  ;;  %v1931_v59 = vld [vmem:[#allocation6] ss:$0 sm:$0xff] }
 0x503   :  { %639 = vmatpush.msrb.mxu1 %v619_v61 }
 0x504   :  { %1861 = vst.msk [vmem:[%s2799_s18 + $0x30] sm:$0xff] %vm190_vm1, %v751_v60  ;;  %1854 = vmatmul.msk.f32.vlgmr.msrb.gmra.mxu1 %vm190_vm1, %v588_v48  ;;  %v907_v48 = vld [vmem:[%s2787_s6 + $0x18] sm:$0xff] }
 0x505   :  { %777 = vmatpush.msra.mxu1 %v757_v8  ;;  %v1932_v8 = vld [vmem:[#allocation7] ss:$0 sm:$0xff] }
 0x507   :  { %926 = vmatpush.msrb.mxu1 %v907_v48 }
 0x509   :  { %927 = vmatpush.msrb.mxu1 %v906_v6 }
 0x50a   :  { %v783_v62 = vpop.permute.xlu2 %782 }
 0x50b   :  { %803 = vmatpush.msra.mxu0 %v783_v62  ;;  %928 = vmatpush.msrb.mxu1 %v905_v38 }
 0x50c   :  { %1863 = vmatmul.msk.f32.vlgmr.msra.gmra.mxu1 %vm190_vm1, %v751_v60 }
 0x54a   :  { %v736_v23 = vpop.xlane.xlu1 %735 }
 0x54b   :  { %v738_v63 = vsub.f32 %v729_v56, %v736_v23 }
 0x54d   :  { %v741_v0 = vmul.f32 1.442695, %v738_v63  ;;  %v667_v17 = vpop.f32.mrf.mxu2 }
 0x54e   :  { %v673_v19 = vadd.f32 %v667_v17, %v506_v18 }
 0x54f   :  { %1965 = vpow2.f32 %v741_v0 }
 0x555   :  { %v1966_v1 = vpop.eup %1965 }
 0x556   :  { %v746_v2 = vsel %vm190_vm1, %v1966_v1, 0.0 }
 0x557   :  { %747 = vadd.xlane.f32.xlu1 %v746_v2 }
 0x581   :  { %v641_v7 = vpop.f32.mrf.mxu1 }
 0x582   :  { %1856 = vmatmul.msk.f32.gmra.mxu2 %vm190_vm1, %v641_v7 }
 0x589   :  { %v779_v10 = vpop.f32.mrf.mxu1 }
 0x58a   :  { %1865 = vmatmul.msk.f32.vlgmr.msra.gmra.mxu3 %vm190_vm1, %v779_v10 }
 0x5ca   :  { %v748_v11 = vpop.xlane.xlu1 %747 }
 0x5cb   :  { %1967 = vrcp.f32 %v748_v11 }
 0x5cc   :  { %1969 = vrcp.f32 %v2184_v26 }
 0x5d1   :  { %v1968_v12 = vpop.eup %1967 }
 0x5d2   :  { %v752_v13 = vmul.f32 %v1968_v12, %v1966_v1  ;;  %v1970_v29 = vpop.eup %1969  ;;  %v144_v12 = vld [vmem:[%s2811_s20 + $0x8] sm:$0xff] }
 0x5d3   :  { %v850_v32 = vmul.f32 32.0, %v1970_v29  ;;  %vm854_vm2 = vweird.f32 %v1970_v29 }
 0x5d4   :  { %1862 = vst.msk [vmem:[%s2799_s18 + $0x38] sm:$0xff] %vm190_vm1, %v752_v13  ;;  %1864 = vmatmul.msk.f32.vlgmr.msra.gmra.mxu0 %vm190_vm1, %v752_v13 }
 0x5d5   :  { %v851_v33 = vsub.f32 1.0, %v850_v32 }
 0x5d7   :  { %v852_v34 = vmul.f32 %v1970_v29, %v851_v33 }
 0x5d9   :  { %v853_v35 = vadd.f32 %v1970_v29, %v852_v34 }
 0x5db   :  { %v2512_v36 = vsel %vm854_vm2, %v1970_v29, %v853_v35 }
 0x605   :  { %v670_v43 = vpop.f32.mrf.mxu2 }
 0x606   :  { %v674_v44 = vadd.f32 %v670_v43, %v509_v9 }
 0x60d   :  { %v831_v20 = vpop.f32.mrf.mxu3 }
 0x60e   :  { %v837_v21 = vadd.f32 %v831_v20, %v673_v19 }
 0x610   :  { %v839_v22 = vadd.f32 %v837_v21, %v2318_v4  ;;  %v938_v4 = vld [vmem:[%s2788_s7 + $0x8] sm:$0xff] }
 0x611   :  { %961 = vmatpush.msra.mxu2 %v938_v4  ;;  %v2564_v4 = vld [vmem:[%s2812_s3] sm:$0xff] }
 0x612   :  { %v843_v24 = vsel %vm149_vm0, %v839_v22, 0.0 }
 0x613   :  { %844 = vadd.xlane.f32.xlu1 %v843_v24  ;;  %962 = vmatpush.msra.mxu2 %v937_v30 }
 0x614   :  { %1869 = vmatmul.msk.f32.vlgmr.msra.gmra.mxu2 %vm149_vm0, %v143_v31 }
 0x61c   :  { %1870 = vmatmul.msk.f32.gmra.mxu2 %vm149_vm0, %v144_v12 }
 0x651   :  { %v805_v25 = vpop.f32.mrf.mxu0 }
 0x652   :  { %1866 = vmatmul.msk.f32.gmra.mxu3 %vm190_vm1, %v805_v25 }
 0x686   :  { %v845_v37 = vpop.xlane.xlu1 %844 }
 0x687   :  { %v856_v39 = vmul.f32 %v2512_v36, %v845_v37 }
 0x689   :  { %v858_v40 = vsub.f32 %v839_v22, %v856_v39 }
 0x68b   :  { %v860_v41 = vmul.f32 %v858_v40, %v858_v40 }
 0x68d   :  { %v862_v42 = vsel %vm149_vm0, %v860_v41, 0.0 }
 0x68e   :  { %863 = vadd.xlane.f32.xlu0 %v862_v42 }
 0x697   :  { %v2531_v49 = vpop.f32.mrf.mxu2 }
 0x698   :  { %1108 = vrot.lane.b32.xlu1 %v2531_v49, %s2175_s10  ;;  %1871 = vmatpush.xpose.msk.msrb.mxu0 %vm190_vm1, %v2531_v49 }
 0x69f   :  { %v2570_v32 = vpop.f32.mrf.mxu2 }
 0x6a0   :  { %1873 = vmatpush.xpose.msk.msra.mxu0 %vm190_vm1, %v2570_v32 }
 0x6d5   :  { %v834_v45 = vpop.f32.mrf.mxu3 }
 0x6d6   :  { %v838_v46 = vadd.f32 %v834_v45, %v674_v44  ;;  %v2594_v44 = vld [vmem:[%s2812_s3 + $0x8] sm:$0xff] }
 0x6d8   :  { %v840_v16 = vadd.f32 %v838_v46, %v2325_v5  ;;  %v904_v5 = vld [vmem:[%s2787_s6] sm:$0xff] }
 0x6d9   :  { %929 = vmatpush.msrb.mxu1 %v904_v5 }
 0x6da   :  { %v846_v47 = vsel %vm149_vm0, %v840_v16, 0.0 }
 0x6db   :  { %847 = vadd.xlane.f32.xlu2 %v846_v47 }
 0x701   :  { %v864_v50 = vpop.xlane.xlu0 %863 }
 0x702   :  { %v868_v51 = vmul.f32 %v864_v50, %v2512_v36 }
 0x704   :  { %v870_v52 = vadd.f32 1e-05, %v868_v51 }
 0x706   :  { %1971 = vrsqrt.f32 %v870_v52  ;;  %vm878_vm4 = vweird.f32 %v870_v52 }
 0x70a   :  { %v1109_v7 = vpop.permute.xlu1 %1108 }
 0x70b   :  { %1877 = vmatpush.xpose.msk.msrb.mxu2 %vm190_vm1, %v1109_v7 }
 0x70c   :  { %v1972_v53 = vpop.eup %1971 }
 0x70d   :  { %v873_v54 = vmul.f32 %v1972_v53, %v870_v52  ;;  %vm879_vm3 = vweird.f32 %v1972_v53 }
 0x70e   :  { %vm880_vm5 = vmor %vm878_vm4, %vm879_vm3 }
 0x70f   :  { %v874_v55 = vmul.f32 %v1972_v53, %v873_v54 }
 0x711   :  { %v875_v56 = vmul.f32 0.5, %v874_v55 }
 0x713   :  { %v876_v57 = vsub.f32 1.5, %v875_v56 }
 0x715   :  { %v877_v58 = vmul.f32 %v1972_v53, %v876_v57 }
 0x717   :  { %v881_v60 = vsel %vm880_vm5, %v1972_v53, %v877_v58 }
 0x718   :  { %v892_v61 = vmul.f32 %v881_v60, %v858_v40 }
 0x71a   :  { %v897_v62 = vmul.f32 %v1931_v59, %v892_v61 }
 0x71c   :  { %v2538_v23 = vadd.f32 %v1932_v8, %v897_v62 }
 0x71e   :  { %1867 = vmatmul.msk.f32.vlgmr.msrb.gmra.mxu1 %vm149_vm0, %v2538_v23 }
 0x74e   :  { %v848_v63 = vpop.xlane.xlu2 %847 }
 0x74f   :  { %v857_v0 = vmul.f32 %v2512_v36, %v848_v63  ;;  %v970_v63 = vld [vmem:[%s2789_s8] sm:$0xff] }
 0x751   :  { %v859_v1 = vsub.f32 %v840_v16, %v857_v0 }
 0x753   :  { %v861_v2 = vmul.f32 %v859_v1, %v859_v1 }
 0x755   :  { %v865_v3 = vsel %vm149_vm0, %v861_v2, 0.0 }
 0x756   :  { %866 = vadd.xlane.f32.xlu1 %v865_v3 }
 0x79b   :  { %v931_v10 = vpop.f32.mrf.mxu1 }
 0x79c   :  { %v2545_v11 = vmul.f32 0.35355338, %v931_v10 }
 0x79e   :  { %1106 = vrot.lane.b32.xlu1 %v2545_v11, %s2175_s10  ;;  %1872 = vmatmul.msk.f32.vlgmr.msrb.gmra.mxu0 %vm190_vm1, %v2545_v11 }
 0x7c9   :  { %v867_v13 = vpop.xlane.xlu1 %866 }
 0x7ca   :  { %v869_v14 = vmul.f32 %v867_v13, %v2512_v36 }
 0x7cc   :  { %v871_v15 = vadd.f32 1e-05, %v869_v14 }
 0x7ce   :  { %1973 = vrsqrt.f32 %v871_v15  ;;  %vm888_vm7 = vweird.f32 %v871_v15 }
 0x7d4   :  { %v1974_v17 = vpop.eup %1973 }
 0x7d5   :  { %v883_v18 = vmul.f32 %v1974_v17, %v871_v15  ;;  %vm889_vm6 = vweird.f32 %v1974_v17 }
 0x7d6   :  { %vm890_vm8 = vmor %vm888_vm7, %vm889_vm6 }
 0x7d7   :  { %v884_v19 = vmul.f32 %v1974_v17, %v883_v18  ;;  %v971_v18 = vld [vmem:[%s2789_s8 + $0x8] sm:$0xff] }
 0x7d8   :  { %1260 = vmatpush.msra.mxu2 %v971_v18 }
 0x7d9   :  { %v885_v20 = vmul.f32 0.5, %v884_v19 }
 0x7db   :  { %v886_v21 = vsub.f32 1.5, %v885_v20 }
 0x7dd   :  { %v887_v22 = vmul.f32 %v1974_v17, %v886_v21 }
 0x7df   :  { %v891_v24 = vsel %vm890_vm8, %v1974_v17, %v887_v22 }
 0x7e0   :  { %v893_v25 = vmul.f32 %v891_v24, %v859_v1 }
 0x7e2   :  { %v898_v26 = vmul.f32 %v1931_v59, %v893_v25 }
 0x7e4   :  { %v2556_v27 = vadd.f32 %v1932_v8, %v898_v26 }
 0x7e6   :  { %1868 = vmatmul.msk.f32.gmra.mxu1 %vm149_vm0, %v2556_v27 }
 0x810   :  { %v1107_v28 = vpop.permute.xlu1 %1106 }
 0x811   :  { %1878 = vmatmul.msk.f32.vlgmr.msrb.gmra.mxu2 %vm190_vm1, %v1107_v28 }
 0x81b   :  { %v1001_v29 = vpop.f32.mrf.mxu0 }
 0x81c   :  { %v1002_v30 = vadd.f32 %v1001_v29, %v2564_v4 }
 0x81e   :  { %v1030_v31 = vsel %vm190_vm1, %v1002_v30, -inf }
 0x81f   :  { %1031 = vmax.xlane.f32.xlu2 %v1030_v31 }
 0x837   :  { %1187 = vrot.lane.b32.xlu2 %v2531_v49, %s2173_s4 }
 0x863   :  { %v934_v33 = vpop.f32.mrf.mxu1 }
 0x864   :  { %v2574_v34 = vmul.f32 0.35355338, %v934_v33 }
 0x866   :  { %1874 = vmatmul.msk.f32.vlgmr.msra.gmra.mxu0 %vm190_vm1, %v2574_v34 }
 0x892   :  { %v1032_v35 = vpop.xlane.xlu2 %1031 }
 0x893   :  { %v1036_v37 = vsub.f32 %v1002_v30, %v1032_v35 }
 0x894   :  { %v1131_v39 = vpop.f32.mrf.mxu2 }
 0x895   :  { %v1038_v40 = vmul.f32 1.442695, %v1036_v37  ;;  %v1132_v41 = vadd.f32 %v1131_v39, %v2564_v4 }
 0x897   :  { %1975 = vpow2.f32 %v1038_v40  ;;  %v1162_v42 = vsel %vm190_vm1, %v1132_v41, -inf }
 0x898   :  { %1163 = vmax.xlane.f32.xlu0 %v1162_v42 }
 0x89a   :  { %v1188_v54 = vpop.permute.xlu2 %1187 }
 0x89d   :  { %v1976_v43 = vpop.eup %1975 }
 0x89e   :  { %v1042_v9 = vsel %vm190_vm1, %v1976_v43, 0.0 }
 0x89f   :  { %1043 = vadd.xlane.f32.xlu1 %v1042_v9 }
 0x8ac   :  { %1054 = vrot.lane.b32.xlu0 %v2531_v49, %s2174_s22 }
 0x8b4   :  { %1136 = vrot.lane.b32.xlu0 %v2570_v32, %s2175_s10 }
 0x8bc   :  { %1134 = vrot.lane.b32.xlu0 %v2574_v34, %s2175_s10 }
 0x8c4   :  { %1297 = vrot.lane.b32.xlu0 %v2545_v11, %s2178_s26 }
 0x8cc   :  { %1080 = vrot.lane.b32.xlu0 %v2570_v32, %s2174_s22 }
 0x8e3   :  { %v1027_v45 = vpop.f32.mrf.mxu0 }
 0x8e4   :  { %v1028_v46 = vadd.f32 %v1027_v45, %v2594_v44 }
 0x8e6   :  { %v1033_v16 = vsel %vm190_vm1, %v1028_v46, -inf }
 0x8e7   :  { %1034 = vmax.xlane.f32.xlu1 %v1033_v16 }
 0x90b   :  { %v1164_v47 = vpop.xlane.xlu0 %1163 }
 0x90c   :  { %v1168_v48 = vsub.f32 %v1132_v41, %v1164_v47 }
 0x90e   :  { %v1170_v6 = vmul.f32 1.442695, %v1168_v48 }
 0x910   :  { %1977 = vpow2.f32 %v1170_v6 }
 0x912   :  { %v1044_v38 = vpop.xlane.xlu1 %1043 }
 0x913   :  { %1979 = vrcp.f32 %v1044_v38 }
 0x916   :  { %v1978_v5 = vpop.eup %1977 }
 0x917   :  { %v1174_v50 = vsel %vm190_vm1, %v1978_v5, 0.0 }
 0x918   :  { %1175 = vadd.xlane.f32.xlu2 %v1174_v50 }
 0x919   :  { %v1980_v51 = vpop.eup %1979 }
 0x91a   :  { %v1050_v52 = vmul.f32 %v1980_v51, %v1976_v43 }
 0x91c   :  { %1052 = vst.msk [vmem:[%s2800_s19] sm:$0xff] %vm190_vm1, %v1050_v52 }
 0x91e   :  { %v1055_v53 = vpop.permute.xlu0 %1054 }
 0x91f   :  { %1075 = vmatpush.msrb.mxu3 %v1055_v53 }
 0x920   :  { %1875 = vmatmul.msk.f32.vlgmr.msrb.gmra.mxu3 %vm190_vm1, %v1050_v52 }
 0x921   :  { %1208 = vmatpush.msra.mxu3 %v1188_v54 }
 0x926   :  { %v1137_v55 = vpop.permute.xlu0 %1136 }
 0x927   :  { %1879 = vmatpush.xpose.msk.msrb.mxu0 %vm190_vm1, %v1137_v55 }
 0x92b   :  { %1289 = vmatpush.msra.mxu0 %v970_v63 }
 0x92e   :  { %v1135_v56 = vpop.permute.xlu0 %1134 }
 0x92f   :  { %1880 = vmatmul.msk.f32.vlgmr.msrb.gmra.mxu0 %vm190_vm1, %v1135_v56 }
 0x930   :  { %1299 = vrot.lane.b32.xlu2 %v2531_v49, %s2178_s26 }
 0x936   :  { %v1298_v57 = vpop.permute.xlu0 %1297 }
 0x93e   :  { %v1081_v58 = vpop.permute.xlu0 %1080 }
 0x93f   :  { %1101 = vmatpush.msra.mxu1 %v1081_v58  ;;  %v972_v58 = vld [vmem:[%s2789_s8 + $0x10] sm:$0xff] }
 0x940   :  { %1451 = vmatpush.msrb.mxu2 %v972_v58 }
 0x95a   :  { %v1035_v59 = vpop.xlane.xlu1 %1034 }
 0x95b   :  { %v1037_v60 = vsub.f32 %v1028_v46, %v1035_v59 }
 0x95d   :  { %v1040_v61 = vmul.f32 1.442695, %v1037_v60 }
 0x95f   :  { %1981 = vpow2.f32 %v1040_v61 }
 0x965   :  { %v1982_v8 = vpop.eup %1981 }
 0x966   :  { %v1045_v62 = vsel %vm190_vm1, %v1982_v8, 0.0 }
 0x967   :  { %1046 = vadd.xlane.f32.xlu2 %v1045_v62 }
 0x97f   :  { %1325 = vrot.lane.b32.xlu2 %v2574_v34, %s2178_s26 }
 0x98b   :  { %v1176_v0 = vpop.xlane.xlu2 %1175 }
 0x98c   :  { %1983 = vrcp.f32 %v1176_v0 }
 0x992   :  { %v1984_v1 = vpop.eup %1983 }
 0x993   :  { %v1182_v2 = vmul.f32 %v1984_v1, %v1978_v5  ;;  %v1300_v3 = vpop.permute.xlu2 %1299 }
 0x994   :  { %1889 = vmatpush.xpose.msk.msrb.mxu3 %vm190_vm1, %v1300_v3 }
 0x995   :  { %1881 = vst.msk [vmem:[%s2800_s19 + $0x10] sm:$0xff] %vm190_vm1, %v1182_v2  ;;  %1883 = vmatmul.msk.f32.vlgmr.msra.gmra.mxu3 %vm190_vm1, %v1182_v2 }
 0x99d   :  { %1890 = vmatmul.msk.f32.vlgmr.msrb.gmra.mxu3 %vm190_vm1, %v1298_v57 }
 0x9a3   :  { %v1077_v7 = vpop.f32.mrf.mxu3 }
 0x9a4   :  { %1887 = vmatmul.msk.f32.vlgmr.msra.gmra.mxu0 %vm190_vm1, %v1077_v7 }
 0x9ac   :  { %v1159_v10 = vpop.f32.mrf.mxu0 }
 0x9ad   :  { %v1160_v12 = vadd.f32 %v1159_v10, %v2594_v44 }
 0x9af   :  { %v1165_v13 = vsel %vm190_vm1, %v1160_v12, -inf }
 0x9b0   :  { %1166 = vmax.xlane.f32.xlu1 %v1165_v13 }
 0x9c9   :  { %1213 = vrot.lane.b32.xlu1 %v2570_v32, %s2173_s4 }
 0x9d1   :  { %1327 = vrot.lane.b32.xlu1 %v2570_v32, %s2178_s26 }
 0x9d9   :  { %1463 = vrot.lane.b32.xlu1 %v2531_v49, %s2181_s12 }
 0x9da   :  { %v1047_v14 = vpop.xlane.xlu2 %1046 }
 0x9db   :  { %1985 = vrcp.f32 %v1047_v14 }
 0x9e1   :  { %v1986_v15 = vpop.eup %1985  ;;  %1491 = vrot.lane.b32.xlu1 %v2570_v32, %s2181_s12 }
 0x9e2   :  { %v1051_v17 = vmul.f32 %v1986_v15, %v1982_v8  ;;  %v1326_v16 = vpop.permute.xlu2 %1325 }
 0x9e4   :  { %1053 = vst.msk [vmem:[%s2800_s19 + $0x8] sm:$0xff] %vm190_vm1, %v1051_v17  ;;  %1876 = vmatmul.msk.f32.vlgmr.msra.gmra.mxu1 %vm190_vm1, %v1051_v17 }
 0xa18   :  { %v1210_v19 = vpop.f32.mrf.mxu3 }
 0xa19   :  { %1885 = vmatmul.msk.f32.vlgmr.msra.gmra.mxu2 %vm190_vm1, %v1210_v19 }
 0xa20   :  { %v1322_v20 = vpop.f32.mrf.mxu3 }
 0xa21   :  { %v1323_v21 = vadd.f32 %v1322_v20, %v2564_v4  ;;  %v2667_v50 = vpop.f32.mrf.mxu0 }
 0xa23   :  { %v1167_v22 = vpop.xlane.xlu1 %1166  ;;  %v1353_v24 = vsel %vm190_vm1, %v1323_v21, -inf }
 0xa24   :  { %v1169_v25 = vsub.f32 %v1160_v12, %v1167_v22  ;;  %1354 = vmax.xlane.f32.xlu0 %v1353_v24 }
 0xa26   :  { %v1172_v26 = vmul.f32 1.442695, %v1169_v25 }
 0xa28   :  { %1987 = vpow2.f32 %v1172_v26  ;;  %v973_v26 = vld [vmem:[%s2789_s8 + $0x18] sm:$0xff] }
 0xa2e   :  { %v1988_v28 = vpop.eup %1987 }
 0xa2f   :  { %v1177_v29 = vsel %vm190_vm1, %v1988_v28, 0.0 }
 0xa30   :  { %1178 = vadd.xlane.f32.xlu1 %v1177_v29 }
 0xa38   :  { %1378 = vrot.lane.b32.xlu0 %v2531_v49, %s2177_s15 }
 0xa3b   :  { %v1214_v30 = vpop.permute.xlu1 %1213 }
 0xa3c   :  { %1234 = vmatpush.msrb.mxu1 %v1214_v30 }
 0xa43   :  { %v1328_v31 = vpop.permute.xlu1 %1327 }
 0xa44   :  { %1891 = vmatpush.xpose.msk.msra.mxu1 %vm190_vm1, %v1328_v31 }
 0xa49   :  { %1461 = vrot.lane.b32.xlu1 %v2545_v11, %s2181_s12 }
 0xa4b   :  { %v1464_v33 = vpop.permute.xlu1 %1463 }
 0xa4c   :  { %1899 = vmatpush.xpose.msk.msrb.mxu0 %vm190_vm1, %v1464_v33 }
 0xa53   :  { %v1492_v41 = vpop.permute.xlu1 %1491 }
 0xa61   :  { %v1103_v35 = vpop.f32.mrf.mxu1 }
 0xa62   :  { %1888 = vmatmul.msk.f32.gmra.mxu0 %vm190_vm1, %v1103_v35 }
 0xa97   :  { %v1355_v37 = vpop.xlane.xlu0 %1354 }
 0xa98   :  { %v1359_v39 = vsub.f32 %v1323_v21, %v1355_v37 }
 0xa9a   :  { %v1361_v40 = vmul.f32 1.442695, %v1359_v39 }
 0xa9c   :  { %1989 = vpow2.f32 %v1361_v40  ;;  %v1262_v35 = vpop.f32.mrf.mxu2 }
 0xaa2   :  { %v1990_v42 = vpop.eup %1989 }
 0xaa3   :  { %v1179_v43 = vpop.xlane.xlu1 %1178  ;;  %v1365_v9 = vsel %vm190_vm1, %v1990_v42, 0.0 }
 0xaa4   :  { %1991 = vrcp.f32 %v1179_v43  ;;  %1366 = vadd.xlane.f32.xlu2 %v1365_v9 }
 0xaaa   :  { %v1992_v45 = vpop.eup %1991  ;;  %v1379_v46 = vpop.permute.xlu0 %1378 }
 0xaab   :  { %v1183_v11 = vmul.f32 %v1992_v45, %v1988_v28  ;;  %1399 = vmatpush.msra.mxu3 %v1379_v46 }
 0xaad   :  { %1901 = vmatpush.xpose.msk.msrb.mxu3 %vm190_vm1, %v1492_v41  ;;  %1882 = vst.msk [vmem:[%s2800_s19 + $0x18] sm:$0xff] %vm190_vm1, %v1183_v11  ;;  %1884 = vmatmul.msk.f32.vlgmr.msrb.gmra.mxu1 %vm190_vm1, %v1183_v11  ;;  %v1292_v41 = vadd.f32 %v2667_v50, %v1262_v35 }
 0xab5   :  { %1892 = vmatmul.msk.f32.vlgmr.msra.gmra.mxu1 %vm190_vm1, %v1326_v16 }
 0xabb   :  { %v1462_v47 = vpop.permute.xlu1 %1461 }
 0xabc   :  { %1489 = vrot.lane.b32.xlu2 %v2574_v34, %s2181_s12  ;;  %1900 = vmatmul.msk.f32.vlgmr.msrb.gmra.mxu0 %vm190_vm1, %v1462_v47 }
 0xadf   :  { %v2671_v34 = vpop.f32.mrf.mxu0 }
 0xb17   :  { %v1367_v48 = vpop.xlane.xlu2 %1366 }
 0xb18   :  { %1993 = vrcp.f32 %v1367_v48 }
 0xb1e   :  { %v1994_v6 = vpop.eup %1993 }
 0xb1f   :  { %v1373_v38 = vmul.f32 %v1994_v6, %v1990_v42  ;;  %v1490_v5 = vpop.permute.xlu2 %1489 }
 0xb21   :  { %1893 = vst.msk [vmem:[%s2800_s19 + $0x20] sm:$0xff] %vm190_vm1, %v1373_v38  ;;  %1895 = vmatmul.msk.f32.vlgmr.msra.gmra.mxu3 %vm190_vm1, %v1373_v38 }
 0xb22   :  { %1615 = vmatpush.msra.mxu3 %v973_v26 }
 0xb29   :  { %1902 = vmatmul.msk.f32.vlgmr.msrb.gmra.mxu3 %vm190_vm1, %v1490_v5 }
 0xb2a   :  { %v1236_v51 = vpop.f32.mrf.mxu1 }
 0xb2b   :  { %1886 = vmatmul.msk.f32.gmra.mxu2 %vm190_vm1, %v1236_v51 }
 0xb32   :  { %v1350_v52 = vpop.f32.mrf.mxu1 }
 0xb33   :  { %v1351_v53 = vadd.f32 %v1350_v52, %v2594_v44 }
 0xb35   :  { %v1356_v54 = vsel %vm190_vm1, %v1351_v53, -inf }
 0xb36   :  { %1357 = vmax.xlane.f32.xlu0 %v1356_v54  ;;  %v1686_v54 = vld [vmem:[%s2790_s9 + $0x18] sm:$0xff] }
 0xb39   :  { %v1486_v55 = vpop.f32.mrf.mxu0 }
 0xb3a   :  { %v1487_v56 = vadd.f32 %v1486_v55, %v2564_v4  ;;  %v1684_v55 = vld [vmem:[%s2790_s9 + $0x8] sm:$0xff] }
 0xb3c   :  { %v1517_v57 = vsel %vm190_vm1, %v1487_v56, -inf }
 0xb3d   :  { %1518 = vmax.xlane.f32.xlu1 %v1517_v57 }
 0xb56   :  { %1404 = vrot.lane.b32.xlu1 %v2570_v32, %s2177_s15 }
 0xba4   :  { %v1401_v59 = vpop.f32.mrf.mxu3 }
 0xba5   :  { %1897 = vmatmul.msk.f32.vlgmr.msrb.gmra.mxu2 %vm190_vm1, %v1401_v59 }
 0xba9   :  { %v1358_v60 = vpop.xlane.xlu0 %1357 }
 0xbaa   :  { %v1360_v61 = vsub.f32 %v1351_v53, %v1358_v60 }
 0xbac   :  { %v1363_v8 = vmul.f32 1.442695, %v1360_v61  ;;  %v1514_v62 = vpop.f32.mrf.mxu3 }
 0xbad   :  { %v1515_v4 = vadd.f32 %v1514_v62, %v2594_v44 }
 0xbae   :  { %1995 = vpow2.f32 %v1363_v8  ;;  %v1265_v37 = vpop.f32.mrf.mxu2 }
 0xbaf   :  { %v1520_v63 = vsel %vm190_vm1, %v1515_v4, -inf  ;;  %v1295_v47 = vadd.f32 %v2671_v34, %v1265_v37  ;;  %v1685_v34 = vld [vmem:[%s2790_s9 + $0x10] sm:$0xff] }
 0xbb0   :  { %1521 = vmax.xlane.f32.xlu2 %v1520_v63  ;;  %v1519_v0 = vpop.xlane.xlu1 %1518 }
 0xbb1   :  { %v1523_v1 = vsub.f32 %v1487_v56, %v1519_v0 }
 0xbb3   :  { %v1525_v2 = vmul.f32 1.442695, %v1523_v1 }
 0xbb4   :  { %v1996_v3 = vpop.eup %1995 }
 0xbb5   :  { %1997 = vpow2.f32 %v1525_v2  ;;  %v1368_v7 = vsel %vm190_vm1, %v1996_v3, 0.0 }
 0xbb6   :  { %1369 = vadd.xlane.f32.xlu0 %v1368_v7  ;;  %v2736_v7 = vld [vmem:[#allocation9] ss:$0 sm:$0xff] }
 0xbbb   :  { %v1998_v10 = vpop.eup %1997 }
 0xbbc   :  { %v1529_v12 = vsel %vm190_vm1, %v1998_v10, 0.0 }
 0xbbd   :  { %1530 = vadd.xlane.f32.xlu2 %v1529_v12 }
 0xbc8   :  { %v1405_v13 = vpop.permute.xlu1 %1404 }
 0xbc9   :  { %1425 = vmatpush.msrb.mxu1 %v1405_v13  ;;  %v2738_v13 = vld [vmem:[#allocation10] ss:$0 sm:$0xff] }
 0xbd5   :  { %1542 = vrot.lane.b32.xlu2 %v2531_v49, %s2180_s27 }
 0xc23   :  { %v1522_v44 = vpop.xlane.xlu2 %1521 }
 0xc24   :  { %v1524_v14 = vsub.f32 %v1515_v4, %v1522_v44 }
 0xc26   :  { %v1527_v15 = vmul.f32 1.442695, %v1524_v14 }
 0xc28   :  { %1999 = vpow2.f32 %v1527_v15  ;;  %v1453_v40 = vpop.f32.mrf.mxu2  ;;  %v1725_v15 = vld [vmem:[%s2792_s11 + $0x18] sm:$0xff] }
 0xc29   :  { %v1370_v17 = vpop.xlane.xlu0 %1369  ;;  %v1459_v42 = vadd.f32 %v1453_v40, %v1292_v41  ;;  %1748 = vmatpush.msra.mxu2 %v1725_v15 }
 0xc2a   :  { %2001 = vrcp.f32 %v1370_v17  ;;  %v1724_v17 = vld [vmem:[%s2792_s11 + $0x10] sm:$0xff] }
 0xc2b   :  { %1749 = vmatpush.msra.mxu2 %v1724_v17 }
 0xc2e   :  { %v2000_v18 = vpop.eup %1999 }
 0xc2f   :  { %v1532_v19 = vsel %vm190_vm1, %v2000_v18, 0.0 }
 0xc30   :  { %v2002_v20 = vpop.eup %2001  ;;  %1533 = vadd.xlane.f32.xlu0 %v1532_v19  ;;  %v1531_v21 = vpop.xlane.xlu2 %1530 }
 0xc31   :  { %v1374_v22 = vmul.f32 %v2002_v20, %v1996_v3  ;;  %2003 = vrcp.f32 %v1531_v21  ;;  %v1722_v20 = vld [vmem:[%s2792_s11] sm:$0xff] }
 0xc33   :  { %1894 = vst.msk [vmem:[%s2800_s19 + $0x28] sm:$0xff] %vm190_vm1, %v1374_v22  ;;  %1896 = vmatmul.msk.f32.vlgmr.msrb.gmra.mxu1 %vm190_vm1, %v1374_v22 }
 0xc37   :  { %v2004_v49 = vpop.eup %2003 }
 0xc38   :  { %v1537_v24 = vmul.f32 %v2004_v49, %v1998_v10  ;;  %v1543_v25 = vpop.permute.xlu2 %1542 }
 0xc39   :  { %1563 = vmatpush.msra.mxu1 %v1543_v25 }
 0xc3a   :  { %1903 = vst.msk [vmem:[%s2800_s19 + $0x30] sm:$0xff] %vm190_vm1, %v1537_v24 }
 0xc3b   :  { %1905 = vmatmul.msk.f32.vlgmr.msra.gmra.mxu1 %vm190_vm1, %v1537_v24 }
 0xc3c   :  { %1709 = vmatpush.msrb.mxu1 %v1686_v54 }
 0xc3e   :  { %1710 = vmatpush.msrb.mxu1 %v1685_v34 }
 0xc40   :  { %1711 = vmatpush.msrb.mxu1 %v1684_v55 }
 0xc44   :  { %1568 = vrot.lane.b32.xlu0 %v2570_v32, %s2180_s27 }
 0xca3   :  { %v1534_v28 = vpop.xlane.xlu0 %1533 }
 0xca4   :  { %2005 = vrcp.f32 %v1534_v28 }
 0xcaa   :  { %v2006_v29 = vpop.eup %2005 }
 0xcab   :  { %v1538_v30 = vmul.f32 %v2006_v29, %v2000_v18  ;;  %v1723_v18 = vld [vmem:[%s2792_s11 + $0x8] sm:$0xff] }
 0xcac   :  { %1750 = vmatpush.msra.mxu2 %v1723_v18 }
 0xcad   :  { %1904 = vst.msk [vmem:[%s2800_s19 + $0x38] sm:$0xff] %vm190_vm1, %v1538_v30 }
 0xcae   :  { %1751 = vmatpush.msra.mxu2 %v1722_v20 }
 0xcb0   :  { %v1427_v31 = vpop.f32.mrf.mxu1 }
 0xcb1   :  { %1898 = vmatmul.msk.f32.gmra.mxu2 %vm190_vm1, %v1427_v31 }
 0xcb6   :  { %v1569_v33 = vpop.permute.xlu0 %1568 }
 0xcb7   :  { %1589 = vmatpush.msra.mxu0 %v1569_v33 }
 0xcb8   :  { %v1565_v32 = vpop.f32.mrf.mxu1  ;;  %1906 = vmatmul.msk.f32.vlgmr.msra.gmra.mxu0 %vm190_vm1, %v1538_v30 }
 0xcb9   :  { %1907 = vmatmul.msk.f32.vlgmr.msra.gmra.mxu3 %vm190_vm1, %v1565_v32  ;;  %v1935_v32 = vld [vmem:[#allocation2] ss:$0 sm:$0xff] }
 0xd34   :  { %v1456_v11 = vpop.f32.mrf.mxu2 }
 0xd35   :  { %v1591_v39 = vpop.f32.mrf.mxu0  ;;  %v1460_v6 = vadd.f32 %v1456_v11, %v1295_v47 }
 0xd36   :  { %1908 = vmatmul.msk.f32.gmra.mxu3 %vm190_vm1, %v1591_v39 }
 0xd3c   :  { %v1617_v43 = vpop.f32.mrf.mxu3 }
 0xd3d   :  { %v1623_v9 = vadd.f32 %v1617_v43, %v1459_v42 }
 0xd3f   :  { %v1625_v45 = vadd.f32 %v1623_v9, %v2538_v23  ;;  %v1936_v9 = vld [vmem:[#allocation4] ss:$0 sm:$0xff] }
 0xd41   :  { %v1629_v46 = vsel %vm149_vm0, %v1625_v45, 0.0 }
 0xd42   :  { %1630 = vadd.xlane.f32.xlu1 %v1629_v46 }
 0xdb5   :  { %v1631_v16 = vpop.xlane.xlu1 %1630 }
 0xdb6   :  { %v1635_v48 = vmul.f32 %v1631_v16, %v2512_v36 }
 0xdb8   :  { %v1637_v38 = vsub.f32 %v1625_v45, %v1635_v48 }
 0xdb9   :  { %v1620_v5 = vpop.f32.mrf.mxu3 }
 0xdba   :  { %v1624_v51 = vadd.f32 %v1620_v5, %v1460_v6  ;;  %v1639_v52 = vmul.f32 %v1637_v38, %v1637_v38 }
 0xdbc   :  { %v1641_v50 = vsel %vm149_vm0, %v1639_v52, 0.0  ;;  %v1626_v53 = vadd.f32 %v1624_v51, %v2556_v27  ;;  %v1683_v27 = vld [vmem:[%s2790_s9] sm:$0xff] }
 0xdbd   :  { %1642 = vadd.xlane.f32.xlu2 %v1641_v50  ;;  %1712 = vmatpush.msrb.mxu1 %v1683_v27 }
 0xdbe   :  { %v1632_v23 = vsel %vm149_vm0, %v1626_v53, 0.0 }
 0xdbf   :  { %1633 = vadd.xlane.f32.xlu0 %v1632_v23 }
 0xe30   :  { %v1643_v56 = vpop.xlane.xlu2 %1642 }
 0xe31   :  { %v1647_v57 = vmul.f32 %v1643_v56, %v2512_v36 }
 0xe32   :  { %v1634_v58 = vpop.xlane.xlu0 %1633 }
 0xe33   :  { %v1649_v59 = vadd.f32 1e-05, %v1647_v57  ;;  %v1636_v60 = vmul.f32 %v1634_v58, %v2512_v36 }
 0xe35   :  { %2007 = vrsqrt.f32 %v1649_v59  ;;  %v1638_v61 = vsub.f32 %v1626_v53, %v1636_v60  ;;  %vm1657_vm10 = vweird.f32 %v1649_v59 }
 0xe37   :  { %v1640_v8 = vmul.f32 %v1638_v61, %v1638_v61 }
 0xe39   :  { %v1644_v62 = vsel %vm149_vm0, %v1640_v8, 0.0 }
 0xe3a   :  { %1645 = vadd.xlane.f32.xlu1 %v1644_v62 }
 0xe3b   :  { %v2008_v4 = vpop.eup %2007 }
 0xe3c   :  { %v1652_v63 = vmul.f32 %v2008_v4, %v1649_v59  ;;  %vm1658_vm9 = vweird.f32 %v2008_v4 }
 0xe3d   :  { %vm1659_vm11 = vmor %vm1657_vm10, %vm1658_vm9 }
 0xe3e   :  { %v1653_v0 = vmul.f32 %v2008_v4, %v1652_v63 }
 0xe40   :  { %v1654_v1 = vmul.f32 0.5, %v1653_v0 }
 0xe42   :  { %v1655_v2 = vsub.f32 1.5, %v1654_v1 }
 0xe44   :  { %v1656_v3 = vmul.f32 %v2008_v4, %v1655_v2 }
 0xe46   :  { %v1660_v10 = vsel %vm1659_vm11, %v2008_v4, %v1656_v3 }
 0xe47   :  { %v1671_v12 = vmul.f32 %v1660_v10, %v1637_v38 }
 0xe49   :  { %v1676_v44 = vmul.f32 %v2736_v7, %v1671_v12 }
 0xe4b   :  { %v1681_v14 = vadd.f32 %v2738_v13, %v1676_v44 }
 0xe4d   :  { %1909 = vmatmul.msk.f32.vlgmr.msrb.gmra.mxu1 %vm149_vm0, %v1681_v14 }
 0xead   :  { %v1646_v19 = vpop.xlane.xlu1 %1645 }
 0xeae   :  { %v1648_v21 = vmul.f32 %v1646_v19, %v2512_v36 }
 0xeb0   :  { %v1650_v22 = vadd.f32 1e-05, %v1648_v21 }
 0xeb2   :  { %2009 = vrsqrt.f32 %v1650_v22  ;;  %vm1667_vm13 = vweird.f32 %v1650_v22 }
 0xeb8   :  { %v2010_v49 = vpop.eup %2009 }
 0xeb9   :  { %v1662_v24 = vmul.f32 %v2010_v49, %v1650_v22  ;;  %vm1668_vm12 = vweird.f32 %v2010_v49 }
 0xeba   :  { %vm1669_vm14 = vmor %vm1667_vm13, %vm1668_vm12 }
 0xebb   :  { %v1663_v25 = vmul.f32 %v2010_v49, %v1662_v24 }
 0xebd   :  { %v1664_v26 = vmul.f32 0.5, %v1663_v25 }
 0xebf   :  { %v1665_v28 = vsub.f32 1.5, %v1664_v26 }
 0xec1   :  { %v1666_v29 = vmul.f32 %v2010_v49, %v1665_v28 }
 0xec3   :  { %v1670_v30 = vsel %vm1669_vm14, %v2010_v49, %v1666_v29 }
 0xec4   :  { %v1672_v31 = vmul.f32 %v1670_v30, %v1638_v61 }
 0xec6   :  { %v1677_v33 = vmul.f32 %v2736_v7, %v1672_v31 }
 0xec8   :  { %v1682_v35 = vadd.f32 %v2738_v13, %v1677_v33 }
 0xeca   :  { %v1714_v37 = vpop.f32.mrf.mxu1  ;;  %1910 = vmatmul.msk.f32.gmra.mxu1 %vm149_vm0, %v1682_v35 }
 0xecb   :  { %v1715_v39 = vadd.f32 %v1935_v32, %v1714_v37 }
 0xecd   :  { %v1720_v40 = vmax.f32 %v1715_v39, 0.0 }
 0xecf   :  { %1911 = vmatmul.msk.f32.vlgmr.msra.gmra.mxu2 %vm149_vm0, %v1720_v40 }
 0xf47   :  { %v1717_v41 = vpop.f32.mrf.mxu1 }
 0xf48   :  { %v1718_v42 = vadd.f32 %v1935_v32, %v1717_v41 }
 0xf4a   :  { %v1721_v43 = vmax.f32 %v1718_v42, 0.0 }
 0xf4c   :  { %1912 = vmatmul.msk.f32.gmra.mxu2 %vm149_vm0, %v1721_v43 }
 0xf52   :  { %v1753_v45 = vpop.f32.mrf.mxu2 }
 0xf53   :  { %v1754_v46 = vadd.f32 %v1936_v9, %v1753_v45 }
 0xf55   :  { %v1759_v11 = vadd.f32 %v1754_v46, %v1681_v14 }
 0xf57   :  { %v1761_v16 = vsel %vm149_vm0, %v1759_v11, 0.0 }
 0xf58   :  { %1762 = vadd.xlane.f32.xlu0 %v1761_v16 }
 0xfcb   :  { %v1763_v47 = vpop.xlane.xlu0 %1762 }
 0xfcc   :  { %v1767_v48 = vmul.f32 %v1763_v47, %v2512_v36 }
 0xfce   :  { %v1769_v6 = vsub.f32 %v1759_v11, %v1767_v48 }
 0xfcf   :  { %v1756_v38 = vpop.f32.mrf.mxu2 }
 0xfd0   :  { %v1757_v5 = vadd.f32 %v1936_v9, %v1756_v38  ;;  %v1771_v51 = vmul.f32 %v1769_v6, %v1769_v6 }
 0xfd2   :  { %v1773_v52 = vsel %vm149_vm0, %v1771_v51, 0.0  ;;  %v1760_v50 = vadd.f32 %v1757_v5, %v1682_v35 }
 0xfd3   :  { %1774 = vadd.xlane.f32.xlu1 %v1773_v52 }
 0xfd4   :  { %v1764_v53 = vsel %vm149_vm0, %v1760_v50, 0.0 }
 0xfd5   :  { %1765 = vadd.xlane.f32.xlu2 %v1764_v53 }
0x1046   :  { %v1775_v23 = vpop.xlane.xlu1 %1774 }
0x1047   :  { %v1779_v54 = vmul.f32 %v1775_v23, %v2512_v36 }
0x1048   :  { %v1766_v34 = vpop.xlane.xlu2 %1765 }
0x1049   :  { %v1781_v55 = vadd.f32 1e-05, %v1779_v54  ;;  %v1768_v27 = vmul.f32 %v1766_v34, %v2512_v36 }
0x104b   :  { %2011 = vrsqrt.f32 %v1781_v55  ;;  %v1770_v56 = vsub.f32 %v1760_v50, %v1768_v27  ;;  %vm1789_vm1 = vweird.f32 %v1781_v55 }
0x104d   :  { %v1772_v57 = vmul.f32 %v1770_v56, %v1770_v56 }
0x104f   :  { %v1776_v58 = vsel %vm149_vm0, %v1772_v57, 0.0 }
0x1050   :  { %1777 = vadd.xlane.f32.xlu0 %v1776_v58 }
0x1051   :  { %v2012_v59 = vpop.eup %2011 }
0x1052   :  { %v1784_v60 = vmul.f32 %v2012_v59, %v1781_v55  ;;  %vm1790_vm15 = vweird.f32 %v2012_v59 }
0x1053   :  { %vm1791_vm2 = vmor %vm1789_vm1, %vm1790_vm15 }
0x1054   :  { %v1785_v61 = vmul.f32 %v2012_v59, %v1784_v60 }
0x1056   :  { %v1786_v8 = vmul.f32 0.5, %v1785_v61 }
0x1058   :  { %v1787_v62 = vsub.f32 1.5, %v1786_v8 }
0x105a   :  { %v1788_v4 = vmul.f32 %v2012_v59, %v1787_v62 }
0x105c   :  { %v1792_v63 = vsel %vm1791_vm2, %v2012_v59, %v1788_v4 }
0x105d   :  { %v1803_v0 = vmul.f32 %v1792_v63, %v1769_v6 }
0x105f   :  { %v1805_v1 = vmul.f32 %v2736_v7, %v1803_v0 }
0x1061   :  { %v1807_v2 = vadd.f32 %v2738_v13, %v1805_v1 }
0x1063   :  { %1809 = vst.msk [vmem:[%s2798_s17] sm:$0xff] %vm149_vm0, %v1807_v2 }
0x10c3   :  { %v1778_v3 = vpop.xlane.xlu0 %1777 }
0x10c4   :  { %v1780_v10 = vmul.f32 %v1778_v3, %v2512_v36 }
0x10c6   :  { %v1782_v12 = vadd.f32 1e-05, %v1780_v10 }
0x10c8   :  { %2013 = vrsqrt.f32 %v1782_v12  ;;  %vm1799_vm4 = vweird.f32 %v1782_v12 }
0x10ce   :  { %v2014_v44 = vpop.eup %2013 }
0x10cf   :  { %v1794_v14 = vmul.f32 %v2014_v44, %v1782_v12  ;;  %vm1800_vm3 = vweird.f32 %v2014_v44 }
0x10d0   :  { %vm1801_vm5 = vmor %vm1799_vm4, %vm1800_vm3 }
0x10d1   :  { %v1795_v15 = vmul.f32 %v2014_v44, %v1794_v14 }
0x10d3   :  { %v1796_v17 = vmul.f32 0.5, %v1795_v15 }
0x10d5   :  { %v1797_v18 = vsub.f32 1.5, %v1796_v17 }
0x10d7   :  { %v1798_v19 = vmul.f32 %v2014_v44, %v1797_v18 }
0x10d9   :  { %v1802_v20 = vsel %vm1801_vm5, %v2014_v44, %v1798_v19 }
0x10da   :  { %v1804_v21 = vmul.f32 %v1802_v20, %v1770_v56 }
0x10dc   :  { %v1806_v22 = vmul.f32 %v2736_v7, %v1804_v21 }
0x10de   :  { %v1808_v49 = vadd.f32 %v2738_v13, %v1806_v22 }
0x10e0   :  { %1810 = vst.msk [vmem:[%s2798_s17 + $0x8] sm:$0xff] %vm149_vm0, %v1808_v49 }
0x10e1   :  { %1823 = vsyncpa [#allocation3], 1 }
0x10e2   :  { %1824 = vsyncpa [#allocation5], 1 }
0x10e3   :  { %1825 = vsyncpa [#allocation8], 1 }
0x10e4   :  { %1826 = vsyncpa [#allocation11], 1 }

</bundles_post_ra>
